<compile_context>
chip_gen: v7x
topology: tpu7x:2x2x1
jax: 0.10.0
libtpu: 0.0.40
codegen_flags: <defaults>
</compile_context>

<pallas_src>
import math

import jax
import jax.numpy as jnp
from jax import lax
from jax.experimental import pallas as pl
from jax.experimental.pallas import tpu as pltpu  # noqa: F401  (TPU backend)

# ----------------------------- model config ---------------------------------
D_MODEL = 32
N_HEADS = 4
D_K = D_MODEL // N_HEADS
D_FF = 64
N_LAYERS = 2
SRC_VOCAB = 16
TGT_VOCAB = 16
MAX_LEN = 64
EPS = 1e-6                      # LayerNorm eps of the Annotated Transformer
ATTN_SCALE = 1.0 / math.sqrt(D_K)
LANE = 128
NEG_INF = -1e9


# ------------------------- static parameter layout ---------------------------
def _build_layout():
    """Static row/col layout of the two packed parameter blobs."""
    w_off, v_off = {}, {}
    wn, vn = 0, 0

    def add_w(name, r, c):
        nonlocal wn
        w_off[name] = (wn, r, c)
        wn += r

    def add_v(name, c):
        nonlocal vn
        v_off[name] = (vn, c)
        vn += 1

    # ---- encoder layers ----
    for l in range(N_LAYERS):
        p = f"e{l}"
        add_w(f"{p}_wqkv", D_MODEL, 3 * D_MODEL)
        add_w(f"{p}_wo", D_MODEL, D_MODEL)
        add_w(f"{p}_w1", D_MODEL, D_FF)
        add_w(f"{p}_w2", D_FF, D_MODEL)
        for nm in ("ln1_g", "ln1_b", "ln2_g", "ln2_b"):
            add_v(f"{p}_{nm}", D_MODEL)
        add_v(f"{p}_bqkv", 3 * D_MODEL)
        add_v(f"{p}_bo", D_MODEL)
        add_v(f"{p}_b1", D_FF)
        add_v(f"{p}_b2", D_MODEL)
    add_v("enc_ng", D_MODEL)
    add_v("enc_nb", D_MODEL)

    # ---- decoder layers ----
    for l in range(N_LAYERS):
        p = f"d{l}"
        add_w(f"{p}_s_wqkv", D_MODEL, 3 * D_MODEL)
        add_w(f"{p}_s_wo", D_MODEL, D_MODEL)
        add_w(f"{p}_c_wq", D_MODEL, D_MODEL)
        add_w(f"{p}_c_wkv", D_MODEL, 2 * D_MODEL)
        add_w(f"{p}_c_wo", D_MODEL, D_MODEL)
        add_w(f"{p}_w1", D_MODEL, D_FF)
        add_w(f"{p}_w2", D_FF, D_MODEL)
        for nm in ("ln1_g", "ln1_b", "ln2_g", "ln2_b", "ln3_g", "ln3_b"):
            add_v(f"{p}_{nm}", D_MODEL)
        add_v(f"{p}_s_bqkv", 3 * D_MODEL)
        add_v(f"{p}_s_bo", D_MODEL)
        add_v(f"{p}_c_bq", D_MODEL)
        add_v(f"{p}_c_bkv", 2 * D_MODEL)
        add_v(f"{p}_c_bo", D_MODEL)
        add_v(f"{p}_b1", D_FF)
        add_v(f"{p}_b2", D_MODEL)
    add_v("dec_ng", D_MODEL)
    add_v("dec_nb", D_MODEL)

    return w_off, v_off, wn, vn


_W_OFF, _V_OFF, _W_ROWS, _V_ROWS = _build_layout()


# ------------------------------ the fused kernel ------------------------------
def _encdec_kernel(src_x_ref, tgt_x_ref, enc_m_ref, self_m_ref, cross_m_ref,
                   w_ref, v_ref, o_ref):
    # --- static, free ref views into the packed blobs (load at point of use) ---
    def W(name):
        off, r, c = _W_OFF[name]
        return w_ref[off:off + r, 0:c]

    def V(name):
        off, c = _V_OFF[name]
        return v_ref[off:off + 1, 0:c]

    def layer_norm(x, gname, bname):
        # Annotated-Transformer LayerNorm: UNBIASED std (N-1) and division by
        # (std + eps) -- intentionally NOT sqrt(var + eps). Do not "fix".
        mean = jnp.mean(x, axis=-1, keepdims=True)
        var = jnp.sum((x - mean) ** 2, axis=-1, keepdims=True) * (1.0 / (D_MODEL - 1))
        std = jnp.sqrt(var)
        inv = pl.reciprocal(std + EPS, approx=True)
        return V(gname) * (x - mean) * inv + V(bname)

    def softmax_rows(s):
        s = s - jnp.max(s, axis=-1, keepdims=True)
        p = jnp.exp(s)
        return p * pl.reciprocal(jnp.sum(p, axis=-1, keepdims=True), approx=True)

    def attn_core(q, k, v, add_mask, wo_name, bo_name):
        """q:[Nq,D] k,v:[Nk,D] (head-major lanes, scale already folded into q)."""
        wo_off, _, wo_c = _W_OFF[wo_name]
        out = None
        for h in range(N_HEADS):
            qh = q[:, h * D_K:(h + 1) * D_K]
            kh = k[:, h * D_K:(h + 1) * D_K]
            vh = v[:, h * D_K:(h + 1) * D_K]
            # Contract feature dims directly (no explicit transpose).
            s = lax.dot_general(qh, kh, (((1,), (1,)), ((), ())),
                                preferred_element_type=jnp.float32)     # [Nq, Nk]
            p = softmax_rows(s + add_mask)
            oh = jnp.dot(p, vh, preferred_element_type=jnp.float32)     # [Nq, Dk]
            # sum_h (o_h @ Wo[h*Dk:(h+1)*Dk, :]) == concat_h(o_h) @ Wo
            wo_h = w_ref[wo_off + h * D_K: wo_off + (h + 1) * D_K, 0:wo_c]
            ch = jnp.dot(oh, wo_h, preferred_element_type=jnp.float32)  # [Nq, D]
            out = ch if out is None else out + ch
        return out + V(bo_name)

    def self_attn(x, add_mask, prefix):
        qkv = jnp.dot(x, W(prefix + "_wqkv"),
                      preferred_element_type=jnp.float32) + V(prefix + "_bqkv")
        q = qkv[:, 0:D_MODEL]
        k = qkv[:, D_MODEL:2 * D_MODEL]
        v = qkv[:, 2 * D_MODEL:3 * D_MODEL]
        return attn_core(q, k, v, add_mask, prefix + "_wo", prefix + "_bo")

    def cross_attn(xq, xkv, add_mask, prefix):
        q = jnp.dot(xq, W(prefix + "_wq"),
                    preferred_element_type=jnp.float32) + V(prefix + "_bq")
        kv = jnp.dot(xkv, W(prefix + "_wkv"),
                     preferred_element_type=jnp.float32) + V(prefix + "_bkv")
        k = kv[:, 0:D_MODEL]
        v = kv[:, D_MODEL:2 * D_MODEL]
        return attn_core(q, k, v, add_mask, prefix + "_wo", prefix + "_bo")

    def feed_forward(x, prefix):
        h = jnp.maximum(jnp.dot(x, W(prefix + "_w1"),
                                preferred_element_type=jnp.float32) + V(prefix + "_b1"),
                        0.0)
        return jnp.dot(h, W(prefix + "_w2"),
                       preferred_element_type=jnp.float32) + V(prefix + "_b2")

    # ------------------------------- encode ----------------------------------
    x = src_x_ref[...]                               # [B*Ss, D], batch fused
    for l in range(N_LAYERS):
        p = f"e{l}"
        # SublayerConnection (pre-norm): x + sublayer(norm(x)); dropout = id
        x = x + self_attn(layer_norm(x, f"{p}_ln1_g", f"{p}_ln1_b"),
                          enc_m_ref[...], p)
        x = x + feed_forward(layer_norm(x, f"{p}_ln2_g", f"{p}_ln2_b"), p)
    mem = layer_norm(x, "enc_ng", "enc_nb")          # encoder final LayerNorm

    # ------------------------------- decode ----------------------------------
    y = tgt_x_ref[...]                               # [B*St, D]
    for l in range(N_LAYERS):
        p = f"d{l}"
        y = y + self_attn(layer_norm(y, f"{p}_ln1_g", f"{p}_ln1_b"),
                          self_m_ref[...], f"{p}_s")
        y = y + cross_attn(layer_norm(y, f"{p}_ln2_g", f"{p}_ln2_b"), mem,
                           cross_m_ref[...], f"{p}_c")
        y = y + feed_forward(layer_norm(y, f"{p}_ln3_g", f"{p}_ln3_b"), p)
    o_ref[...] = layer_norm(y, "dec_ng", "dec_nb")   # decoder final LayerNorm


# --------------------------- host-side wrapper --------------------------------
def embed(lut, ids, pe):
    # Embeddings: lut(x) * sqrt(d_model); PositionalEncoding: + pe[:S]
    # TODO(synk): embedding gather stays in plain JAX (no clean Pallas gather here).
    return jnp.take(lut, ids, axis=0) * math.sqrt(D_MODEL) + pe[: ids.shape[1]][None, :, :]


def _additive_block_mask(mask, B, Sq, Sk):
    """Block-diagonal additive mask [B*Sq, B*Sk]: 0 = visible, -1e9 = masked.

    Query (b,i) may attend key (c,j) iff b == c and mask[b, i or 0, j] != 0.
    """
    m = jnp.broadcast_to(mask != 0, (B, Sq, Sk))
    eye = jnp.eye(B, dtype=bool)
    big = jnp.logical_and(eye[:, None, :, None], m[:, :, None, :])   # [B,Sq,B,Sk]
    big = big.reshape(B * Sq, B * Sk)
    return jnp.where(big, 0.0, NEG_INF).astype(jnp.float32)


def encoder_decoder_forward(params, src, tgt, src_mask, tgt_mask):
    """EncoderDecoder.forward == decode(encode(src, src_mask), src_mask, tgt, tgt_mask).

    The entire encoder + decoder runs in ONE fused, gridless pallas_call with
    all weights resident in VMEM (2 packed parameter blobs). Only embedding
    lookup + positional encoding + mask packing stay in plain JAX. The
    generator is not applied (matching the reference forward()).
    """
    B, Ss = src.shape
    St = tgt.shape[1]

    src_x = embed(params["src_emb"], src, params["pe"]).reshape(B * Ss, D_MODEL)
    tgt_x = embed(params["tgt_emb"], tgt, params["pe"]).reshape(B * St, D_MODEL)

    enc_add = _additive_block_mask(src_mask, B, Ss, Ss)     # [B*Ss, B*Ss]
    self_add = _additive_block_mask(tgt_mask, B, St, St)    # [B*St, B*St]
    cross_add = _additive_block_mask(src_mask, B, St, Ss)   # [B*St, B*Ss]

    out = pl.pallas_call(
        _encdec_kernel,
        out_shape=jax.ShapeDtypeStruct((B * St, D_MODEL), jnp.float32),
    )(src_x, tgt_x, enc_add, self_add, cross_add,
      params["wblob"], params["vblob"])
    return out.reshape(B, St, D_MODEL)


# ------------------------------ init / packing --------------------------------
def _linear_params(key, d_in, d_out):
    w = jax.random.normal(key, (d_in, d_out), jnp.float32) * 0.05
    b = jnp.zeros((1, d_out), jnp.float32)
    return w, b


def _attn_params(key):
    ks = jax.random.split(key, 4)
    wq, bq = _linear_params(ks[0], D_MODEL, D_MODEL)
    wk, bk = _linear_params(ks[1], D_MODEL, D_MODEL)
    wv, bv = _linear_params(ks[2], D_MODEL, D_MODEL)
    wo, bo = _linear_params(ks[3], D_MODEL, D_MODEL)
    return dict(wq=wq, bq=bq, wk=wk, bk=bk, wv=wv, bv=bv, wo=wo, bo=bo)


def _ff_params(key):
    k1, k2 = jax.random.split(key)
    w1, b1 = _linear_params(k1, D_MODEL, D_FF)
    w2, b2 = _linear_params(k2, D_FF, D_MODEL)
    return dict(w1=w1, b1=b1, w2=w2, b2=b2)


def make_positional_encoding():
    pos = jnp.arange(MAX_LEN, dtype=jnp.float32)[:, None]
    div = jnp.exp(jnp.arange(0, D_MODEL, 2, dtype=jnp.float32)
                  * -(math.log(10000.0) / D_MODEL))
    pe = jnp.zeros((MAX_LEN, D_MODEL), jnp.float32)
    pe = pe.at[:, 0::2].set(jnp.sin(pos * div))
    pe = pe.at[:, 1::2].set(jnp.cos(pos * div))
    return pe


def _pack_blobs(named_w, named_v):
    """Pack named parameter arrays into the two lane-dense f32 blobs."""
    wblob = jnp.zeros((_W_ROWS, LANE), jnp.float32)
    for name, (off, r, c) in _W_OFF.items():
        wblob = wblob.at[off:off + r, 0:c].set(named_w[name])
    vblob = jnp.zeros((_V_ROWS, LANE), jnp.float32)
    for name, (off, c) in _V_OFF.items():
        vblob = vblob.at[off, 0:c].set(named_v[name].reshape(c))
    return wblob, vblob


def init_params(key):
    # keys: 2 embeddings + encoder (attn+ff)*L + decoder (self+cross+ff)*L
    keys = jax.random.split(key, 2 + 2 * N_LAYERS + 3 * N_LAYERS)
    it = iter(keys)

    src_emb = jax.random.normal(next(it), (SRC_VOCAB, D_MODEL), jnp.float32) * 0.05
    tgt_emb = jax.random.normal(next(it), (TGT_VOCAB, D_MODEL), jnp.float32) * 0.05

    named_w, named_v = {}, {}

    def add_self_attn(k, prefix):
        p = _attn_params(k)
        # Fold 1/sqrt(d_k) into the query projection at packing time.
        named_w[f"{prefix}_wqkv"] = jnp.concatenate(
            [p["wq"] * ATTN_SCALE, p["wk"], p["wv"]], axis=1)           # [D, 3D]
        named_v[f"{prefix}_bqkv"] = jnp.concatenate(
            [p["bq"] * ATTN_SCALE, p["bk"], p["bv"]], axis=1)           # [1, 3D]
        named_w[f"{prefix}_wo"] = p["wo"]
        named_v[f"{prefix}_bo"] = p["bo"]

    def add_cross_attn(k, prefix):
        p = _attn_params(k)
        named_w[f"{prefix}_wq"] = p["wq"] * ATTN_SCALE
        named_v[f"{prefix}_bq"] = p["bq"] * ATTN_SCALE
        named_w[f"{prefix}_wkv"] = jnp.concatenate([p["wk"], p["wv"]], axis=1)  # [D, 2D]
        named_v[f"{prefix}_bkv"] = jnp.concatenate([p["bk"], p["bv"]], axis=1)  # [1, 2D]
        named_w[f"{prefix}_wo"] = p["wo"]
        named_v[f"{prefix}_bo"] = p["bo"]

    def add_ffn(k, prefix):
        p = _ff_params(k)
        named_w[f"{prefix}_w1"] = p["w1"]
        named_v[f"{prefix}_b1"] = p["b1"]
        named_w[f"{prefix}_w2"] = p["w2"]
        named_v[f"{prefix}_b2"] = p["b2"]

    def add_ln(name):
        named_v[f"{name}_g"] = jnp.ones((1, D_MODEL), jnp.float32)
        named_v[f"{name}_b"] = jnp.zeros((1, D_MODEL), jnp.float32)

    # encoder
    for l in range(N_LAYERS):
        p = f"e{l}"
        add_self_attn(next(it), p)
        add_ffn(next(it), p)
        add_ln(f"{p}_ln1")
        add_ln(f"{p}_ln2")
    named_v["enc_ng"] = jnp.ones((1, D_MODEL), jnp.float32)
    named_v["enc_nb"] = jnp.zeros((1, D_MODEL), jnp.float32)

    # decoder
    for l in range(N_LAYERS):
        p = f"d{l}"
        add_self_attn(next(it), f"{p}_s")
        add_cross_attn(next(it), f"{p}_c")
        add_ffn(next(it), p)
        add_ln(f"{p}_ln1")
        add_ln(f"{p}_ln2")
        add_ln(f"{p}_ln3")
    named_v["dec_ng"] = jnp.ones((1, D_MODEL), jnp.float32)
    named_v["dec_nb"] = jnp.zeros((1, D_MODEL), jnp.float32)

    wblob, vblob = _pack_blobs(named_w, named_v)
    return {"src_emb": src_emb, "tgt_emb": tgt_emb,
            "pe": make_positional_encoding(),
            "wblob": wblob, "vblob": vblob}


# ------------------------------ main ------------------------------------------
if __name__ == "__main__":
    key = jax.random.PRNGKey(0)
    kp, ks, kt = jax.random.split(key, 3)

    B, S_SRC, S_TGT = 2, 8, 8
    params = init_params(kp)

    src = jax.random.randint(ks, (B, S_SRC), 1, SRC_VOCAB, dtype=jnp.int32)
    tgt = jax.random.randint(kt, (B, S_TGT), 1, TGT_VOCAB, dtype=jnp.int32)

    # src_mask: [B, 1, S_src] (all visible); tgt_mask: causal [B, S_tgt, S_tgt]
    src_mask = jnp.ones((B, 1, S_SRC), jnp.int32)
    tgt_mask = jnp.broadcast_to(
        jnp.tril(jnp.ones((S_TGT, S_TGT), jnp.int32))[None, :, :], (B, S_TGT, S_TGT))

    fwd = jax.jit(encoder_decoder_forward)
    out = jax.block_until_ready(fwd(params, src, tgt, src_mask, tgt_mask))

    assert out.shape == (B, S_TGT, D_MODEL), out.shape
    assert bool(jnp.all(jnp.isfinite(out)))
    print("KERNEL_OK")
</pallas_src>

<mosaic_0001>
module attributes {stable_mosaic.version = 11 : i64} {
  func.func @_encdec_kernel(%arg0: memref<16x32xf32, #tpu.memory_space<vmem>>, %arg1: memref<16x32xf32, #tpu.memory_space<vmem>>, %arg2: memref<16x16xf32, #tpu.memory_space<vmem>>, %arg3: memref<16x16xf32, #tpu.memory_space<vmem>>, %arg4: memref<16x16xf32, #tpu.memory_space<vmem>>, %arg5: memref<832x128xf32, #tpu.memory_space<vmem>>, %arg6: memref<46x128xf32, #tpu.memory_space<vmem>>, %arg7: memref<16x32xf32, #tpu.memory_space<vmem>>) attributes {dimension_semantics = [], scalar_prefetch = 0 : i64, scratch_operands = 0 : i64, tpu.core_type = #tpu.core_type<tc>} {
    %c0 = arith.constant 0 : index
    %c0_0 = arith.constant 0 : index
    %0 = vector.load %arg0[%c0, %c0_0] : memref<16x32xf32, #tpu.memory_space<vmem>>, vector<16x32xf32>
    %cst = arith.constant dense<0.000000e+00> : vector<16xf32>
    %1 = vector.multi_reduction <add>, %0, %cst [1] : vector<16x32xf32> to vector<16xf32>
    %2 = vector.shape_cast %1 : vector<16xf32> to vector<16x1xf32>
    %cst_1 = arith.constant 3.200000e+01 : f32
    %3 = vector.broadcast %cst_1 : f32 to vector<16x1xf32>
    %4 = arith.divf %2, %3 : vector<16x1xf32>
    %5 = vector.broadcast %4 : vector<16x1xf32> to vector<16x32xf32>
    %6 = arith.subf %0, %5 : vector<16x32xf32>
    %7 = arith.mulf %6, %6 : vector<16x32xf32>
    %cst_2 = arith.constant dense<0.000000e+00> : vector<16xf32>
    %8 = vector.multi_reduction <add>, %7, %cst_2 [1] : vector<16x32xf32> to vector<16xf32>
    %9 = vector.shape_cast %8 : vector<16xf32> to vector<16x1xf32>
    %cst_3 = arith.constant 0.0322580636 : f32
    %10 = vector.broadcast %cst_3 : f32 to vector<16x1xf32>
    %11 = arith.mulf %9, %10 : vector<16x1xf32>
    %12 = math.sqrt %11 : vector<16x1xf32>
    %cst_4 = arith.constant 9.99999997E-7 : f32
    %13 = vector.broadcast %cst_4 : f32 to vector<16x1xf32>
    %14 = arith.addf %12, %13 : vector<16x1xf32>
    %15 = tpu.reciprocal %14 {approx = true} : vector<16x1xf32> -> vector<16x1xf32>
    %c0_5 = arith.constant 0 : index
    %c0_6 = arith.constant 0 : index
    %16 = vector.load %arg6[%c0_5, %c0_6] : memref<46x128xf32, #tpu.memory_space<vmem>>, vector<1x32xf32>
    %17 = vector.broadcast %4 : vector<16x1xf32> to vector<16x32xf32>
    %18 = arith.subf %0, %17 : vector<16x32xf32>
    %19 = vector.broadcast %16 : vector<1x32xf32> to vector<16x32xf32>
    %20 = arith.mulf %19, %18 : vector<16x32xf32>
    %21 = vector.broadcast %15 : vector<16x1xf32> to vector<16x32xf32>
    %22 = arith.mulf %20, %21 : vector<16x32xf32>
    %c1 = arith.constant 1 : index
    %c0_7 = arith.constant 0 : index
    %23 = vector.load %arg6[%c1, %c0_7] : memref<46x128xf32, #tpu.memory_space<vmem>>, vector<1x32xf32>
    %24 = vector.broadcast %23 : vector<1x32xf32> to vector<16x32xf32>
    %25 = arith.addf %22, %24 : vector<16x32xf32>
    %c0_8 = arith.constant 0 : index
    %c0_9 = arith.constant 0 : index
    %26 = vector.load %arg2[%c0_8, %c0_9] : memref<16x16xf32, #tpu.memory_space<vmem>>, vector<16x16xf32>
    %c0_10 = arith.constant 0 : index
    %c0_11 = arith.constant 0 : index
    %27 = vector.load %arg5[%c0_10, %c0_11] : memref<832x128xf32, #tpu.memory_space<vmem>>, vector<32x96xf32>
    %cst_12 = arith.constant dense<0.000000e+00> : vector<16x96xf32>
    %28 = tpu.matmul %25, %27, %cst_12 {dimension_numbers = #tpu.dot_dimension_numbers<[1], [0], [0], [1], [0, 0, 1, 1], [], []>} : vector<16x32xf32>, vector<32x96xf32>, vector<16x96xf32> -> vector<16x96xf32>
    %c4 = arith.constant 4 : index
    %c0_13 = arith.constant 0 : index
    %29 = vector.load %arg6[%c4, %c0_13] : memref<46x128xf32, #tpu.memory_space<vmem>>, vector<1x96xf32>
    %30 = vector.broadcast %29 : vector<1x96xf32> to vector<16x96xf32>
    %31 = arith.addf %28, %30 : vector<16x96xf32>
    %32 = vector.extract_strided_slice %31 {offsets = [0, 0], sizes = [16, 32], strides = [1, 1]} : vector<16x96xf32> to vector<16x32xf32>
    %33 = vector.extract_strided_slice %31 {offsets = [0, 32], sizes = [16, 32], strides = [1, 1]} : vector<16x96xf32> to vector<16x32xf32>
    %34 = vector.extract_strided_slice %31 {offsets = [0, 64], sizes = [16, 32], strides = [1, 1]} : vector<16x96xf32> to vector<16x32xf32>
    %35 = vector.extract_strided_slice %32 {offsets = [0, 0], sizes = [16, 8], strides = [1, 1]} : vector<16x32xf32> to vector<16x8xf32>
    %36 = vector.extract_strided_slice %33 {offsets = [0, 0], sizes = [16, 8], strides = [1, 1]} : vector<16x32xf32> to vector<16x8xf32>
    %37 = vector.extract_strided_slice %34 {offsets = [0, 0], sizes = [16, 8], strides = [1, 1]} : vector<16x32xf32> to vector<16x8xf32>
    %cst_14 = arith.constant dense<0.000000e+00> : vector<16x16xf32>
    %38 = tpu.matmul %35, %36, %cst_14 {dimension_numbers = #tpu.dot_dimension_numbers<[1], [1], [0], [0], [0, 0, 1, 0], [], []>} : vector<16x8xf32>, vector<16x8xf32>, vector<16x16xf32> -> vector<16x16xf32>
    %39 = arith.addf %38, %26 : vector<16x16xf32>
    %cst_15 = arith.constant dense<0xFF800000> : vector<16xf32>
    %40 = vector.multi_reduction <maximumf>, %39, %cst_15 [1] : vector<16x16xf32> to vector<16xf32>
    %41 = vector.shape_cast %40 : vector<16xf32> to vector<16x1xf32>
    %42 = vector.broadcast %41 : vector<16x1xf32> to vector<16x16xf32>
    %43 = arith.subf %39, %42 : vector<16x16xf32>
    %44 = math.exp %43 : vector<16x16xf32>
    %cst_16 = arith.constant dense<0.000000e+00> : vector<16xf32>
    %45 = vector.multi_reduction <add>, %44, %cst_16 [1] : vector<16x16xf32> to vector<16xf32>
    %46 = vector.shape_cast %45 : vector<16xf32> to vector<16x1xf32>
    %47 = tpu.reciprocal %46 {approx = true} : vector<16x1xf32> -> vector<16x1xf32>
    %48 = vector.broadcast %47 : vector<16x1xf32> to vector<16x16xf32>
    %49 = arith.mulf %44, %48 : vector<16x16xf32>
    %cst_17 = arith.constant dense<0.000000e+00> : vector<16x8xf32>
    %50 = tpu.matmul %49, %37, %cst_17 {dimension_numbers = #tpu.dot_dimension_numbers<[1], [0], [0], [1], [0, 0, 1, 1], [], []>} : vector<16x16xf32>, vector<16x8xf32>, vector<16x8xf32> -> vector<16x8xf32>
    %c32 = arith.constant 32 : index
    %c0_18 = arith.constant 0 : index
    %51 = vector.load %arg5[%c32, %c0_18] : memref<832x128xf32, #tpu.memory_space<vmem>>, vector<8x32xf32>
    %cst_19 = arith.constant dense<0.000000e+00> : vector<16x32xf32>
    %52 = tpu.matmul %50, %51, %cst_19 {dimension_numbers = #tpu.dot_dimension_numbers<[1], [0], [0], [1], [0, 0, 1, 1], [], []>} : vector<16x8xf32>, vector<8x32xf32>, vector<16x32xf32> -> vector<16x32xf32>
    %53 = vector.extract_strided_slice %32 {offsets = [0, 8], sizes = [16, 8], strides = [1, 1]} : vector<16x32xf32> to vector<16x8xf32>
    %54 = vector.extract_strided_slice %33 {offsets = [0, 8], sizes = [16, 8], strides = [1, 1]} : vector<16x32xf32> to vector<16x8xf32>
    %55 = vector.extract_strided_slice %34 {offsets = [0, 8], sizes = [16, 8], strides = [1, 1]} : vector<16x32xf32> to vector<16x8xf32>
    %cst_20 = arith.constant dense<0.000000e+00> : vector<16x16xf32>
    %56 = tpu.matmul %53, %54, %cst_20 {dimension_numbers = #tpu.dot_dimension_numbers<[1], [1], [0], [0], [0, 0, 1, 0], [], []>} : vector<16x8xf32>, vector<16x8xf32>, vector<16x16xf32> -> vector<16x16xf32>
    %57 = arith.addf %56, %26 : vector<16x16xf32>
    %cst_21 = arith.constant dense<0xFF800000> : vector<16xf32>
    %58 = vector.multi_reduction <maximumf>, %57, %cst_21 [1] : vector<16x16xf32> to vector<16xf32>
    %59 = vector.shape_cast %58 : vector<16xf32> to vector<16x1xf32>
    %60 = vector.broadcast %59 : vector<16x1xf32> to vector<16x16xf32>
    %61 = arith.subf %57, %60 : vector<16x16xf32>
    %62 = math.exp %61 : vector<16x16xf32>
    %cst_22 = arith.constant dense<0.000000e+00> : vector<16xf32>
    %63 = vector.multi_reduction <add>, %62, %cst_22 [1] : vector<16x16xf32> to vector<16xf32>
    %64 = vector.shape_cast %63 : vector<16xf32> to vector<16x1xf32>
    %65 = tpu.reciprocal %64 {approx = true} : vector<16x1xf32> -> vector<16x1xf32>
    %66 = vector.broadcast %65 : vector<16x1xf32> to vector<16x16xf32>
    %67 = arith.mulf %62, %66 : vector<16x16xf32>
    %cst_23 = arith.constant dense<0.000000e+00> : vector<16x8xf32>
    %68 = tpu.matmul %67, %55, %cst_23 {dimension_numbers = #tpu.dot_dimension_numbers<[1], [0], [0], [1], [0, 0, 1, 1], [], []>} : vector<16x16xf32>, vector<16x8xf32>, vector<16x8xf32> -> vector<16x8xf32>
    %c40 = arith.constant 40 : index
    %c0_24 = arith.constant 0 : index
    %69 = vector.load %arg5[%c40, %c0_24] : memref<832x128xf32, #tpu.memory_space<vmem>>, vector<8x32xf32>
    %cst_25 = arith.constant dense<0.000000e+00> : vector<16x32xf32>
    %70 = tpu.matmul %68, %69, %cst_25 {dimension_numbers = #tpu.dot_dimension_numbers<[1], [0], [0], [1], [0, 0, 1, 1], [], []>} : vector<16x8xf32>, vector<8x32xf32>, vector<16x32xf32> -> vector<16x32xf32>
    %71 = arith.addf %52, %70 : vector<16x32xf32>
    %72 = vector.extract_strided_slice %32 {offsets = [0, 16], sizes = [16, 8], strides = [1, 1]} : vector<16x32xf32> to vector<16x8xf32>
    %73 = vector.extract_strided_slice %33 {offsets = [0, 16], sizes = [16, 8], strides = [1, 1]} : vector<16x32xf32> to vector<16x8xf32>
    %74 = vector.extract_strided_slice %34 {offsets = [0, 16], sizes = [16, 8], strides = [1, 1]} : vector<16x32xf32> to vector<16x8xf32>
    %cst_26 = arith.constant dense<0.000000e+00> : vector<16x16xf32>
    %75 = tpu.matmul %72, %73, %cst_26 {dimension_numbers = #tpu.dot_dimension_numbers<[1], [1], [0], [0], [0, 0, 1, 0], [], []>} : vector<16x8xf32>, vector<16x8xf32>, vector<16x16xf32> -> vector<16x16xf32>
    %76 = arith.addf %75, %26 : vector<16x16xf32>
    %cst_27 = arith.constant dense<0xFF800000> : vector<16xf32>
    %77 = vector.multi_reduction <maximumf>, %76, %cst_27 [1] : vector<16x16xf32> to vector<16xf32>
    %78 = vector.shape_cast %77 : vector<16xf32> to vector<16x1xf32>
    %79 = vector.broadcast %78 : vector<16x1xf32> to vector<16x16xf32>
    %80 = arith.subf %76, %79 : vector<16x16xf32>
    %81 = math.exp %80 : vector<16x16xf32>
    %cst_28 = arith.constant dense<0.000000e+00> : vector<16xf32>
    %82 = vector.multi_reduction <add>, %81, %cst_28 [1] : vector<16x16xf32> to vector<16xf32>
    %83 = vector.shape_cast %82 : vector<16xf32> to vector<16x1xf32>
    %84 = tpu.reciprocal %83 {approx = true} : vector<16x1xf32> -> vector<16x1xf32>
    %85 = vector.broadcast %84 : vector<16x1xf32> to vector<16x16xf32>
    %86 = arith.mulf %81, %85 : vector<16x16xf32>
    %cst_29 = arith.constant dense<0.000000e+00> : vector<16x8xf32>
    %87 = tpu.matmul %86, %74, %cst_29 {dimension_numbers = #tpu.dot_dimension_numbers<[1], [0], [0], [1], [0, 0, 1, 1], [], []>} : vector<16x16xf32>, vector<16x8xf32>, vector<16x8xf32> -> vector<16x8xf32>
    %c48 = arith.constant 48 : index
    %c0_30 = arith.constant 0 : index
    %88 = vector.load %arg5[%c48, %c0_30] : memref<832x128xf32, #tpu.memory_space<vmem>>, vector<8x32xf32>
    %cst_31 = arith.constant dense<0.000000e+00> : vector<16x32xf32>
    %89 = tpu.matmul %87, %88, %cst_31 {dimension_numbers = #tpu.dot_dimension_numbers<[1], [0], [0], [1], [0, 0, 1, 1], [], []>} : vector<16x8xf32>, vector<8x32xf32>, vector<16x32xf32> -> vector<16x32xf32>
    %90 = arith.addf %71, %89 : vector<16x32xf32>
    %91 = vector.extract_strided_slice %32 {offsets = [0, 24], sizes = [16, 8], strides = [1, 1]} : vector<16x32xf32> to vector<16x8xf32>
    %92 = vector.extract_strided_slice %33 {offsets = [0, 24], sizes = [16, 8], strides = [1, 1]} : vector<16x32xf32> to vector<16x8xf32>
    %93 = vector.extract_strided_slice %34 {offsets = [0, 24], sizes = [16, 8], strides = [1, 1]} : vector<16x32xf32> to vector<16x8xf32>
    %cst_32 = arith.constant dense<0.000000e+00> : vector<16x16xf32>
    %94 = tpu.matmul %91, %92, %cst_32 {dimension_numbers = #tpu.dot_dimension_numbers<[1], [1], [0], [0], [0, 0, 1, 0], [], []>} : vector<16x8xf32>, vector<16x8xf32>, vector<16x16xf32> -> vector<16x16xf32>
    %95 = arith.addf %94, %26 : vector<16x16xf32>
    %cst_33 = arith.constant dense<0xFF800000> : vector<16xf32>
    %96 = vector.multi_reduction <maximumf>, %95, %cst_33 [1] : vector<16x16xf32> to vector<16xf32>
    %97 = vector.shape_cast %96 : vector<16xf32> to vector<16x1xf32>
    %98 = vector.broadcast %97 : vector<16x1xf32> to vector<16x16xf32>
    %99 = arith.subf %95, %98 : vector<16x16xf32>
    %100 = math.exp %99 : vector<16x16xf32>
    %cst_34 = arith.constant dense<0.000000e+00> : vector<16xf32>
    %101 = vector.multi_reduction <add>, %100, %cst_34 [1] : vector<16x16xf32> to vector<16xf32>
    %102 = vector.shape_cast %101 : vector<16xf32> to vector<16x1xf32>
    %103 = tpu.reciprocal %102 {approx = true} : vector<16x1xf32> -> vector<16x1xf32>
    %104 = vector.broadcast %103 : vector<16x1xf32> to vector<16x16xf32>
    %105 = arith.mulf %100, %104 : vector<16x16xf32>
    %cst_35 = arith.constant dense<0.000000e+00> : vector<16x8xf32>
    %106 = tpu.matmul %105, %93, %cst_35 {dimension_numbers = #tpu.dot_dimension_numbers<[1], [0], [0], [1], [0, 0, 1, 1], [], []>} : vector<16x16xf32>, vector<16x8xf32>, vector<16x8xf32> -> vector<16x8xf32>
    %c56 = arith.constant 56 : index
    %c0_36 = arith.constant 0 : index
    %107 = vector.load %arg5[%c56, %c0_36] : memref<832x128xf32, #tpu.memory_space<vmem>>, vector<8x32xf32>
    %cst_37 = arith.constant dense<0.000000e+00> : vector<16x32xf32>
    %108 = tpu.matmul %106, %107, %cst_37 {dimension_numbers = #tpu.dot_dimension_numbers<[1], [0], [0], [1], [0, 0, 1, 1], [], []>} : vector<16x8xf32>, vector<8x32xf32>, vector<16x32xf32> -> vector<16x32xf32>
    %109 = arith.addf %90, %108 : vector<16x32xf32>
    %c5 = arith.constant 5 : index
    %c0_38 = arith.constant 0 : index
    %110 = vector.load %arg6[%c5, %c0_38] : memref<46x128xf32, #tpu.memory_space<vmem>>, vector<1x32xf32>
    %111 = vector.broadcast %110 : vector<1x32xf32> to vector<16x32xf32>
    %112 = arith.addf %109, %111 : vector<16x32xf32>
    %113 = arith.addf %0, %112 : vector<16x32xf32>
    %cst_39 = arith.constant dense<0.000000e+00> : vector<16xf32>
    %114 = vector.multi_reduction <add>, %113, %cst_39 [1] : vector<16x32xf32> to vector<16xf32>
    %115 = vector.shape_cast %114 : vector<16xf32> to vector<16x1xf32>
    %cst_40 = arith.constant 3.200000e+01 : f32
    %116 = vector.broadcast %cst_40 : f32 to vector<16x1xf32>
    %117 = arith.divf %115, %116 : vector<16x1xf32>
    %118 = vector.broadcast %117 : vector<16x1xf32> to vector<16x32xf32>
    %119 = arith.subf %113, %118 : vector<16x32xf32>
    %120 = arith.mulf %119, %119 : vector<16x32xf32>
    %cst_41 = arith.constant dense<0.000000e+00> : vector<16xf32>
    %121 = vector.multi_reduction <add>, %120, %cst_41 [1] : vector<16x32xf32> to vector<16xf32>
    %122 = vector.shape_cast %121 : vector<16xf32> to vector<16x1xf32>
    %cst_42 = arith.constant 0.0322580636 : f32
    %123 = vector.broadcast %cst_42 : f32 to vector<16x1xf32>
    %124 = arith.mulf %122, %123 : vector<16x1xf32>
    %125 = math.sqrt %124 : vector<16x1xf32>
    %cst_43 = arith.constant 9.99999997E-7 : f32
    %126 = vector.broadcast %cst_43 : f32 to vector<16x1xf32>
    %127 = arith.addf %125, %126 : vector<16x1xf32>
    %128 = tpu.reciprocal %127 {approx = true} : vector<16x1xf32> -> vector<16x1xf32>
    %c2 = arith.constant 2 : index
    %c0_44 = arith.constant 0 : index
    %129 = vector.load %arg6[%c2, %c0_44] : memref<46x128xf32, #tpu.memory_space<vmem>>, vector<1x32xf32>
    %130 = vector.broadcast %117 : vector<16x1xf32> to vector<16x32xf32>
    %131 = arith.subf %113, %130 : vector<16x32xf32>
    %132 = vector.broadcast %129 : vector<1x32xf32> to vector<16x32xf32>
    %133 = arith.mulf %132, %131 : vector<16x32xf32>
    %134 = vector.broadcast %128 : vector<16x1xf32> to vector<16x32xf32>
    %135 = arith.mulf %133, %134 : vector<16x32xf32>
    %c3 = arith.constant 3 : index
    %c0_45 = arith.constant 0 : index
    %136 = vector.load %arg6[%c3, %c0_45] : memref<46x128xf32, #tpu.memory_space<vmem>>, vector<1x32xf32>
    %137 = vector.broadcast %136 : vector<1x32xf32> to vector<16x32xf32>
    %138 = arith.addf %135, %137 : vector<16x32xf32>
    %c64 = arith.constant 64 : index
    %c0_46 = arith.constant 0 : index
    %139 = vector.load %arg5[%c64, %c0_46] : memref<832x128xf32, #tpu.memory_space<vmem>>, vector<32x64xf32>
    %cst_47 = arith.constant dense<0.000000e+00> : vector<16x64xf32>
    %140 = tpu.matmul %138, %139, %cst_47 {dimension_numbers = #tpu.dot_dimension_numbers<[1], [0], [0], [1], [0, 0, 1, 1], [], []>} : vector<16x32xf32>, vector<32x64xf32>, vector<16x64xf32> -> vector<16x64xf32>
    %c6 = arith.constant 6 : index
    %c0_48 = arith.constant 0 : index
    %141 = vector.load %arg6[%c6, %c0_48] : memref<46x128xf32, #tpu.memory_space<vmem>>, vector<1x64xf32>
    %142 = vector.broadcast %141 : vector<1x64xf32> to vector<16x64xf32>
    %143 = arith.addf %140, %142 : vector<16x64xf32>
    %cst_49 = arith.constant 0.000000e+00 : f32
    %144 = vector.broadcast %cst_49 : f32 to vector<16x64xf32>
    %145 = arith.maximumf %143, %144 : vector<16x64xf32>
    %c96 = arith.constant 96 : index
    %c0_50 = arith.constant 0 : index
    %146 = vector.load %arg5[%c96, %c0_50] : memref<832x128xf32, #tpu.memory_space<vmem>>, vector<64x32xf32>
    %cst_51 = arith.constant dense<0.000000e+00> : vector<16x32xf32>
    %147 = tpu.matmul %145, %146, %cst_51 {dimension_numbers = #tpu.dot_dimension_numbers<[1], [0], [0], [1], [0, 0, 1, 1], [], []>} : vector<16x64xf32>, vector<64x32xf32>, vector<16x32xf32> -> vector<16x32xf32>
    %c7 = arith.constant 7 : index
    %c0_52 = arith.constant 0 : index
    %148 = vector.load %arg6[%c7, %c0_52] : memref<46x128xf32, #tpu.memory_space<vmem>>, vector<1x32xf32>
    %149 = vector.broadcast %148 : vector<1x32xf32> to vector<16x32xf32>
    %150 = arith.addf %147, %149 : vector<16x32xf32>
    %151 = arith.addf %113, %150 : vector<16x32xf32>
    %cst_53 = arith.constant dense<0.000000e+00> : vector<16xf32>
    %152 = vector.multi_reduction <add>, %151, %cst_53 [1] : vector<16x32xf32> to vector<16xf32>
    %153 = vector.shape_cast %152 : vector<16xf32> to vector<16x1xf32>
    %cst_54 = arith.constant 3.200000e+01 : f32
    %154 = vector.broadcast %cst_54 : f32 to vector<16x1xf32>
    %155 = arith.divf %153, %154 : vector<16x1xf32>
    %156 = vector.broadcast %155 : vector<16x1xf32> to vector<16x32xf32>
    %157 = arith.subf %151, %156 : vector<16x32xf32>
    %158 = arith.mulf %157, %157 : vector<16x32xf32>
    %cst_55 = arith.constant dense<0.000000e+00> : vector<16xf32>
    %159 = vector.multi_reduction <add>, %158, %cst_55 [1] : vector<16x32xf32> to vector<16xf32>
    %160 = vector.shape_cast %159 : vector<16xf32> to vector<16x1xf32>
    %cst_56 = arith.constant 0.0322580636 : f32
    %161 = vector.broadcast %cst_56 : f32 to vector<16x1xf32>
    %162 = arith.mulf %160, %161 : vector<16x1xf32>
    %163 = math.sqrt %162 : vector<16x1xf32>
    %cst_57 = arith.constant 9.99999997E-7 : f32
    %164 = vector.broadcast %cst_57 : f32 to vector<16x1xf32>
    %165 = arith.addf %163, %164 : vector<16x1xf32>
    %166 = tpu.reciprocal %165 {approx = true} : vector<16x1xf32> -> vector<16x1xf32>
    %c8 = arith.constant 8 : index
    %c0_58 = arith.constant 0 : index
    %167 = vector.load %arg6[%c8, %c0_58] : memref<46x128xf32, #tpu.memory_space<vmem>>, vector<1x32xf32>
    %168 = vector.broadcast %155 : vector<16x1xf32> to vector<16x32xf32>
    %169 = arith.subf %151, %168 : vector<16x32xf32>
    %170 = vector.broadcast %167 : vector<1x32xf32> to vector<16x32xf32>
    %171 = arith.mulf %170, %169 : vector<16x32xf32>
    %172 = vector.broadcast %166 : vector<16x1xf32> to vector<16x32xf32>
    %173 = arith.mulf %171, %172 : vector<16x32xf32>
    %c9 = arith.constant 9 : index
    %c0_59 = arith.constant 0 : index
    %174 = vector.load %arg6[%c9, %c0_59] : memref<46x128xf32, #tpu.memory_space<vmem>>, vector<1x32xf32>
    %175 = vector.broadcast %174 : vector<1x32xf32> to vector<16x32xf32>
    %176 = arith.addf %173, %175 : vector<16x32xf32>
    %c0_60 = arith.constant 0 : index
    %c0_61 = arith.constant 0 : index
    %177 = vector.load %arg2[%c0_60, %c0_61] : memref<16x16xf32, #tpu.memory_space<vmem>>, vector<16x16xf32>
    %c160 = arith.constant 160 : index
    %c0_62 = arith.constant 0 : index
    %178 = vector.load %arg5[%c160, %c0_62] : memref<832x128xf32, #tpu.memory_space<vmem>>, vector<32x96xf32>
    %cst_63 = arith.constant dense<0.000000e+00> : vector<16x96xf32>
    %179 = tpu.matmul %176, %178, %cst_63 {dimension_numbers = #tpu.dot_dimension_numbers<[1], [0], [0], [1], [0, 0, 1, 1], [], []>} : vector<16x32xf32>, vector<32x96xf32>, vector<16x96xf32> -> vector<16x96xf32>
    %c12 = arith.constant 12 : index
    %c0_64 = arith.constant 0 : index
    %180 = vector.load %arg6[%c12, %c0_64] : memref<46x128xf32, #tpu.memory_space<vmem>>, vector<1x96xf32>
    %181 = vector.broadcast %180 : vector<1x96xf32> to vector<16x96xf32>
    %182 = arith.addf %179, %181 : vector<16x96xf32>
    %183 = vector.extract_strided_slice %182 {offsets = [0, 0], sizes = [16, 32], strides = [1, 1]} : vector<16x96xf32> to vector<16x32xf32>
    %184 = vector.extract_strided_slice %182 {offsets = [0, 32], sizes = [16, 32], strides = [1, 1]} : vector<16x96xf32> to vector<16x32xf32>
    %185 = vector.extract_strided_slice %182 {offsets = [0, 64], sizes = [16, 32], strides = [1, 1]} : vector<16x96xf32> to vector<16x32xf32>
    %186 = vector.extract_strided_slice %183 {offsets = [0, 0], sizes = [16, 8], strides = [1, 1]} : vector<16x32xf32> to vector<16x8xf32>
    %187 = vector.extract_strided_slice %184 {offsets = [0, 0], sizes = [16, 8], strides = [1, 1]} : vector<16x32xf32> to vector<16x8xf32>
    %188 = vector.extract_strided_slice %185 {offsets = [0, 0], sizes = [16, 8], strides = [1, 1]} : vector<16x32xf32> to vector<16x8xf32>
    %cst_65 = arith.constant dense<0.000000e+00> : vector<16x16xf32>
    %189 = tpu.matmul %186, %187, %cst_65 {dimension_numbers = #tpu.dot_dimension_numbers<[1], [1], [0], [0], [0, 0, 1, 0], [], []>} : vector<16x8xf32>, vector<16x8xf32>, vector<16x16xf32> -> vector<16x16xf32>
    %190 = arith.addf %189, %177 : vector<16x16xf32>
    %cst_66 = arith.constant dense<0xFF800000> : vector<16xf32>
    %191 = vector.multi_reduction <maximumf>, %190, %cst_66 [1] : vector<16x16xf32> to vector<16xf32>
    %192 = vector.shape_cast %191 : vector<16xf32> to vector<16x1xf32>
    %193 = vector.broadcast %192 : vector<16x1xf32> to vector<16x16xf32>
    %194 = arith.subf %190, %193 : vector<16x16xf32>
    %195 = math.exp %194 : vector<16x16xf32>
    %cst_67 = arith.constant dense<0.000000e+00> : vector<16xf32>
    %196 = vector.multi_reduction <add>, %195, %cst_67 [1] : vector<16x16xf32> to vector<16xf32>
    %197 = vector.shape_cast %196 : vector<16xf32> to vector<16x1xf32>
    %198 = tpu.reciprocal %197 {approx = true} : vector<16x1xf32> -> vector<16x1xf32>
    %199 = vector.broadcast %198 : vector<16x1xf32> to vector<16x16xf32>
    %200 = arith.mulf %195, %199 : vector<16x16xf32>
    %cst_68 = arith.constant dense<0.000000e+00> : vector<16x8xf32>
    %201 = tpu.matmul %200, %188, %cst_68 {dimension_numbers = #tpu.dot_dimension_numbers<[1], [0], [0], [1], [0, 0, 1, 1], [], []>} : vector<16x16xf32>, vector<16x8xf32>, vector<16x8xf32> -> vector<16x8xf32>
    %c192 = arith.constant 192 : index
    %c0_69 = arith.constant 0 : index
    %202 = vector.load %arg5[%c192, %c0_69] : memref<832x128xf32, #tpu.memory_space<vmem>>, vector<8x32xf32>
    %cst_70 = arith.constant dense<0.000000e+00> : vector<16x32xf32>
    %203 = tpu.matmul %201, %202, %cst_70 {dimension_numbers = #tpu.dot_dimension_numbers<[1], [0], [0], [1], [0, 0, 1, 1], [], []>} : vector<16x8xf32>, vector<8x32xf32>, vector<16x32xf32> -> vector<16x32xf32>
    %204 = vector.extract_strided_slice %183 {offsets = [0, 8], sizes = [16, 8], strides = [1, 1]} : vector<16x32xf32> to vector<16x8xf32>
    %205 = vector.extract_strided_slice %184 {offsets = [0, 8], sizes = [16, 8], strides = [1, 1]} : vector<16x32xf32> to vector<16x8xf32>
    %206 = vector.extract_strided_slice %185 {offsets = [0, 8], sizes = [16, 8], strides = [1, 1]} : vector<16x32xf32> to vector<16x8xf32>
    %cst_71 = arith.constant dense<0.000000e+00> : vector<16x16xf32>
    %207 = tpu.matmul %204, %205, %cst_71 {dimension_numbers = #tpu.dot_dimension_numbers<[1], [1], [0], [0], [0, 0, 1, 0], [], []>} : vector<16x8xf32>, vector<16x8xf32>, vector<16x16xf32> -> vector<16x16xf32>
    %208 = arith.addf %207, %177 : vector<16x16xf32>
    %cst_72 = arith.constant dense<0xFF800000> : vector<16xf32>
    %209 = vector.multi_reduction <maximumf>, %208, %cst_72 [1] : vector<16x16xf32> to vector<16xf32>
    %210 = vector.shape_cast %209 : vector<16xf32> to vector<16x1xf32>
    %211 = vector.broadcast %210 : vector<16x1xf32> to vector<16x16xf32>
    %212 = arith.subf %208, %211 : vector<16x16xf32>
    %213 = math.exp %212 : vector<16x16xf32>
    %cst_73 = arith.constant dense<0.000000e+00> : vector<16xf32>
    %214 = vector.multi_reduction <add>, %213, %cst_73 [1] : vector<16x16xf32> to vector<16xf32>
    %215 = vector.shape_cast %214 : vector<16xf32> to vector<16x1xf32>
    %216 = tpu.reciprocal %215 {approx = true} : vector<16x1xf32> -> vector<16x1xf32>
    %217 = vector.broadcast %216 : vector<16x1xf32> to vector<16x16xf32>
    %218 = arith.mulf %213, %217 : vector<16x16xf32>
    %cst_74 = arith.constant dense<0.000000e+00> : vector<16x8xf32>
    %219 = tpu.matmul %218, %206, %cst_74 {dimension_numbers = #tpu.dot_dimension_numbers<[1], [0], [0], [1], [0, 0, 1, 1], [], []>} : vector<16x16xf32>, vector<16x8xf32>, vector<16x8xf32> -> vector<16x8xf32>
    %c200 = arith.constant 200 : index
    %c0_75 = arith.constant 0 : index
    %220 = vector.load %arg5[%c200, %c0_75] : memref<832x128xf32, #tpu.memory_space<vmem>>, vector<8x32xf32>
    %cst_76 = arith.constant dense<0.000000e+00> : vector<16x32xf32>
    %221 = tpu.matmul %219, %220, %cst_76 {dimension_numbers = #tpu.dot_dimension_numbers<[1], [0], [0], [1], [0, 0, 1, 1], [], []>} : vector<16x8xf32>, vector<8x32xf32>, vector<16x32xf32> -> vector<16x32xf32>
    %222 = arith.addf %203, %221 : vector<16x32xf32>
    %223 = vector.extract_strided_slice %183 {offsets = [0, 16], sizes = [16, 8], strides = [1, 1]} : vector<16x32xf32> to vector<16x8xf32>
    %224 = vector.extract_strided_slice %184 {offsets = [0, 16], sizes = [16, 8], strides = [1, 1]} : vector<16x32xf32> to vector<16x8xf32>
    %225 = vector.extract_strided_slice %185 {offsets = [0, 16], sizes = [16, 8], strides = [1, 1]} : vector<16x32xf32> to vector<16x8xf32>
    %cst_77 = arith.constant dense<0.000000e+00> : vector<16x16xf32>
    %226 = tpu.matmul %223, %224, %cst_77 {dimension_numbers = #tpu.dot_dimension_numbers<[1], [1], [0], [0], [0, 0, 1, 0], [], []>} : vector<16x8xf32>, vector<16x8xf32>, vector<16x16xf32> -> vector<16x16xf32>
    %227 = arith.addf %226, %177 : vector<16x16xf32>
    %cst_78 = arith.constant dense<0xFF800000> : vector<16xf32>
    %228 = vector.multi_reduction <maximumf>, %227, %cst_78 [1] : vector<16x16xf32> to vector<16xf32>
    %229 = vector.shape_cast %228 : vector<16xf32> to vector<16x1xf32>
    %230 = vector.broadcast %229 : vector<16x1xf32> to vector<16x16xf32>
    %231 = arith.subf %227, %230 : vector<16x16xf32>
    %232 = math.exp %231 : vector<16x16xf32>
    %cst_79 = arith.constant dense<0.000000e+00> : vector<16xf32>
    %233 = vector.multi_reduction <add>, %232, %cst_79 [1] : vector<16x16xf32> to vector<16xf32>
    %234 = vector.shape_cast %233 : vector<16xf32> to vector<16x1xf32>
    %235 = tpu.reciprocal %234 {approx = true} : vector<16x1xf32> -> vector<16x1xf32>
    %236 = vector.broadcast %235 : vector<16x1xf32> to vector<16x16xf32>
    %237 = arith.mulf %232, %236 : vector<16x16xf32>
    %cst_80 = arith.constant dense<0.000000e+00> : vector<16x8xf32>
    %238 = tpu.matmul %237, %225, %cst_80 {dimension_numbers = #tpu.dot_dimension_numbers<[1], [0], [0], [1], [0, 0, 1, 1], [], []>} : vector<16x16xf32>, vector<16x8xf32>, vector<16x8xf32> -> vector<16x8xf32>
    %c208 = arith.constant 208 : index
    %c0_81 = arith.constant 0 : index
    %239 = vector.load %arg5[%c208, %c0_81] : memref<832x128xf32, #tpu.memory_space<vmem>>, vector<8x32xf32>
    %cst_82 = arith.constant dense<0.000000e+00> : vector<16x32xf32>
    %240 = tpu.matmul %238, %239, %cst_82 {dimension_numbers = #tpu.dot_dimension_numbers<[1], [0], [0], [1], [0, 0, 1, 1], [], []>} : vector<16x8xf32>, vector<8x32xf32>, vector<16x32xf32> -> vector<16x32xf32>
    %241 = arith.addf %222, %240 : vector<16x32xf32>
    %242 = vector.extract_strided_slice %183 {offsets = [0, 24], sizes = [16, 8], strides = [1, 1]} : vector<16x32xf32> to vector<16x8xf32>
    %243 = vector.extract_strided_slice %184 {offsets = [0, 24], sizes = [16, 8], strides = [1, 1]} : vector<16x32xf32> to vector<16x8xf32>
    %244 = vector.extract_strided_slice %185 {offsets = [0, 24], sizes = [16, 8], strides = [1, 1]} : vector<16x32xf32> to vector<16x8xf32>
    %cst_83 = arith.constant dense<0.000000e+00> : vector<16x16xf32>
    %245 = tpu.matmul %242, %243, %cst_83 {dimension_numbers = #tpu.dot_dimension_numbers<[1], [1], [0], [0], [0, 0, 1, 0], [], []>} : vector<16x8xf32>, vector<16x8xf32>, vector<16x16xf32> -> vector<16x16xf32>
    %246 = arith.addf %245, %177 : vector<16x16xf32>
    %cst_84 = arith.constant dense<0xFF800000> : vector<16xf32>
    %247 = vector.multi_reduction <maximumf>, %246, %cst_84 [1] : vector<16x16xf32> to vector<16xf32>
    %248 = vector.shape_cast %247 : vector<16xf32> to vector<16x1xf32>
    %249 = vector.broadcast %248 : vector<16x1xf32> to vector<16x16xf32>
    %250 = arith.subf %246, %249 : vector<16x16xf32>
    %251 = math.exp %250 : vector<16x16xf32>
    %cst_85 = arith.constant dense<0.000000e+00> : vector<16xf32>
    %252 = vector.multi_reduction <add>, %251, %cst_85 [1] : vector<16x16xf32> to vector<16xf32>
    %253 = vector.shape_cast %252 : vector<16xf32> to vector<16x1xf32>
    %254 = tpu.reciprocal %253 {approx = true} : vector<16x1xf32> -> vector<16x1xf32>
    %255 = vector.broadcast %254 : vector<16x1xf32> to vector<16x16xf32>
    %256 = arith.mulf %251, %255 : vector<16x16xf32>
    %cst_86 = arith.constant dense<0.000000e+00> : vector<16x8xf32>
    %257 = tpu.matmul %256, %244, %cst_86 {dimension_numbers = #tpu.dot_dimension_numbers<[1], [0], [0], [1], [0, 0, 1, 1], [], []>} : vector<16x16xf32>, vector<16x8xf32>, vector<16x8xf32> -> vector<16x8xf32>
    %c216 = arith.constant 216 : index
    %c0_87 = arith.constant 0 : index
    %258 = vector.load %arg5[%c216, %c0_87] : memref<832x128xf32, #tpu.memory_space<vmem>>, vector<8x32xf32>
    %cst_88 = arith.constant dense<0.000000e+00> : vector<16x32xf32>
    %259 = tpu.matmul %257, %258, %cst_88 {dimension_numbers = #tpu.dot_dimension_numbers<[1], [0], [0], [1], [0, 0, 1, 1], [], []>} : vector<16x8xf32>, vector<8x32xf32>, vector<16x32xf32> -> vector<16x32xf32>
    %260 = arith.addf %241, %259 : vector<16x32xf32>
    %c13 = arith.constant 13 : index
    %c0_89 = arith.constant 0 : index
    %261 = vector.load %arg6[%c13, %c0_89] : memref<46x128xf32, #tpu.memory_space<vmem>>, vector<1x32xf32>
    %262 = vector.broadcast %261 : vector<1x32xf32> to vector<16x32xf32>
    %263 = arith.addf %260, %262 : vector<16x32xf32>
    %264 = arith.addf %151, %263 : vector<16x32xf32>
    %cst_90 = arith.constant dense<0.000000e+00> : vector<16xf32>
    %265 = vector.multi_reduction <add>, %264, %cst_90 [1] : vector<16x32xf32> to vector<16xf32>
    %266 = vector.shape_cast %265 : vector<16xf32> to vector<16x1xf32>
    %cst_91 = arith.constant 3.200000e+01 : f32
    %267 = vector.broadcast %cst_91 : f32 to vector<16x1xf32>
    %268 = arith.divf %266, %267 : vector<16x1xf32>
    %269 = vector.broadcast %268 : vector<16x1xf32> to vector<16x32xf32>
    %270 = arith.subf %264, %269 : vector<16x32xf32>
    %271 = arith.mulf %270, %270 : vector<16x32xf32>
    %cst_92 = arith.constant dense<0.000000e+00> : vector<16xf32>
    %272 = vector.multi_reduction <add>, %271, %cst_92 [1] : vector<16x32xf32> to vector<16xf32>
    %273 = vector.shape_cast %272 : vector<16xf32> to vector<16x1xf32>
    %cst_93 = arith.constant 0.0322580636 : f32
    %274 = vector.broadcast %cst_93 : f32 to vector<16x1xf32>
    %275 = arith.mulf %273, %274 : vector<16x1xf32>
    %276 = math.sqrt %275 : vector<16x1xf32>
    %cst_94 = arith.constant 9.99999997E-7 : f32
    %277 = vector.broadcast %cst_94 : f32 to vector<16x1xf32>
    %278 = arith.addf %276, %277 : vector<16x1xf32>
    %279 = tpu.reciprocal %278 {approx = true} : vector<16x1xf32> -> vector<16x1xf32>
    %c10 = arith.constant 10 : index
    %c0_95 = arith.constant 0 : index
    %280 = vector.load %arg6[%c10, %c0_95] : memref<46x128xf32, #tpu.memory_space<vmem>>, vector<1x32xf32>
    %281 = vector.broadcast %268 : vector<16x1xf32> to vector<16x32xf32>
    %282 = arith.subf %264, %281 : vector<16x32xf32>
    %283 = vector.broadcast %280 : vector<1x32xf32> to vector<16x32xf32>
    %284 = arith.mulf %283, %282 : vector<16x32xf32>
    %285 = vector.broadcast %279 : vector<16x1xf32> to vector<16x32xf32>
    %286 = arith.mulf %284, %285 : vector<16x32xf32>
    %c11 = arith.constant 11 : index
    %c0_96 = arith.constant 0 : index
    %287 = vector.load %arg6[%c11, %c0_96] : memref<46x128xf32, #tpu.memory_space<vmem>>, vector<1x32xf32>
    %288 = vector.broadcast %287 : vector<1x32xf32> to vector<16x32xf32>
    %289 = arith.addf %286, %288 : vector<16x32xf32>
    %c224 = arith.constant 224 : index
    %c0_97 = arith.constant 0 : index
    %290 = vector.load %arg5[%c224, %c0_97] : memref<832x128xf32, #tpu.memory_space<vmem>>, vector<32x64xf32>
    %cst_98 = arith.constant dense<0.000000e+00> : vector<16x64xf32>
    %291 = tpu.matmul %289, %290, %cst_98 {dimension_numbers = #tpu.dot_dimension_numbers<[1], [0], [0], [1], [0, 0, 1, 1], [], []>} : vector<16x32xf32>, vector<32x64xf32>, vector<16x64xf32> -> vector<16x64xf32>
    %c14 = arith.constant 14 : index
    %c0_99 = arith.constant 0 : index
    %292 = vector.load %arg6[%c14, %c0_99] : memref<46x128xf32, #tpu.memory_space<vmem>>, vector<1x64xf32>
    %293 = vector.broadcast %292 : vector<1x64xf32> to vector<16x64xf32>
    %294 = arith.addf %291, %293 : vector<16x64xf32>
    %cst_100 = arith.constant 0.000000e+00 : f32
    %295 = vector.broadcast %cst_100 : f32 to vector<16x64xf32>
    %296 = arith.maximumf %294, %295 : vector<16x64xf32>
    %c256 = arith.constant 256 : index
    %c0_101 = arith.constant 0 : index
    %297 = vector.load %arg5[%c256, %c0_101] : memref<832x128xf32, #tpu.memory_space<vmem>>, vector<64x32xf32>
    %cst_102 = arith.constant dense<0.000000e+00> : vector<16x32xf32>
    %298 = tpu.matmul %296, %297, %cst_102 {dimension_numbers = #tpu.dot_dimension_numbers<[1], [0], [0], [1], [0, 0, 1, 1], [], []>} : vector<16x64xf32>, vector<64x32xf32>, vector<16x32xf32> -> vector<16x32xf32>
    %c15 = arith.constant 15 : index
    %c0_103 = arith.constant 0 : index
    %299 = vector.load %arg6[%c15, %c0_103] : memref<46x128xf32, #tpu.memory_space<vmem>>, vector<1x32xf32>
    %300 = vector.broadcast %299 : vector<1x32xf32> to vector<16x32xf32>
    %301 = arith.addf %298, %300 : vector<16x32xf32>
    %302 = arith.addf %264, %301 : vector<16x32xf32>
    %cst_104 = arith.constant dense<0.000000e+00> : vector<16xf32>
    %303 = vector.multi_reduction <add>, %302, %cst_104 [1] : vector<16x32xf32> to vector<16xf32>
    %304 = vector.shape_cast %303 : vector<16xf32> to vector<16x1xf32>
    %cst_105 = arith.constant 3.200000e+01 : f32
    %305 = vector.broadcast %cst_105 : f32 to vector<16x1xf32>
    %306 = arith.divf %304, %305 : vector<16x1xf32>
    %307 = vector.broadcast %306 : vector<16x1xf32> to vector<16x32xf32>
    %308 = arith.subf %302, %307 : vector<16x32xf32>
    %309 = arith.mulf %308, %308 : vector<16x32xf32>
    %cst_106 = arith.constant dense<0.000000e+00> : vector<16xf32>
    %310 = vector.multi_reduction <add>, %309, %cst_106 [1] : vector<16x32xf32> to vector<16xf32>
    %311 = vector.shape_cast %310 : vector<16xf32> to vector<16x1xf32>
    %cst_107 = arith.constant 0.0322580636 : f32
    %312 = vector.broadcast %cst_107 : f32 to vector<16x1xf32>
    %313 = arith.mulf %311, %312 : vector<16x1xf32>
    %314 = math.sqrt %313 : vector<16x1xf32>
    %cst_108 = arith.constant 9.99999997E-7 : f32
    %315 = vector.broadcast %cst_108 : f32 to vector<16x1xf32>
    %316 = arith.addf %314, %315 : vector<16x1xf32>
    %317 = tpu.reciprocal %316 {approx = true} : vector<16x1xf32> -> vector<16x1xf32>
    %c16 = arith.constant 16 : index
    %c0_109 = arith.constant 0 : index
    %318 = vector.load %arg6[%c16, %c0_109] : memref<46x128xf32, #tpu.memory_space<vmem>>, vector<1x32xf32>
    %319 = vector.broadcast %306 : vector<16x1xf32> to vector<16x32xf32>
    %320 = arith.subf %302, %319 : vector<16x32xf32>
    %321 = vector.broadcast %318 : vector<1x32xf32> to vector<16x32xf32>
    %322 = arith.mulf %321, %320 : vector<16x32xf32>
    %323 = vector.broadcast %317 : vector<16x1xf32> to vector<16x32xf32>
    %324 = arith.mulf %322, %323 : vector<16x32xf32>
    %c17 = arith.constant 17 : index
    %c0_110 = arith.constant 0 : index
    %325 = vector.load %arg6[%c17, %c0_110] : memref<46x128xf32, #tpu.memory_space<vmem>>, vector<1x32xf32>
    %326 = vector.broadcast %325 : vector<1x32xf32> to vector<16x32xf32>
    %327 = arith.addf %324, %326 : vector<16x32xf32>
    %c0_111 = arith.constant 0 : index
    %c0_112 = arith.constant 0 : index
    %328 = vector.load %arg1[%c0_111, %c0_112] : memref<16x32xf32, #tpu.memory_space<vmem>>, vector<16x32xf32>
    %cst_113 = arith.constant dense<0.000000e+00> : vector<16xf32>
    %329 = vector.multi_reduction <add>, %328, %cst_113 [1] : vector<16x32xf32> to vector<16xf32>
    %330 = vector.shape_cast %329 : vector<16xf32> to vector<16x1xf32>
    %cst_114 = arith.constant 3.200000e+01 : f32
    %331 = vector.broadcast %cst_114 : f32 to vector<16x1xf32>
    %332 = arith.divf %330, %331 : vector<16x1xf32>
    %333 = vector.broadcast %332 : vector<16x1xf32> to vector<16x32xf32>
    %334 = arith.subf %328, %333 : vector<16x32xf32>
    %335 = arith.mulf %334, %334 : vector<16x32xf32>
    %cst_115 = arith.constant dense<0.000000e+00> : vector<16xf32>
    %336 = vector.multi_reduction <add>, %335, %cst_115 [1] : vector<16x32xf32> to vector<16xf32>
    %337 = vector.shape_cast %336 : vector<16xf32> to vector<16x1xf32>
    %cst_116 = arith.constant 0.0322580636 : f32
    %338 = vector.broadcast %cst_116 : f32 to vector<16x1xf32>
    %339 = arith.mulf %337, %338 : vector<16x1xf32>
    %340 = math.sqrt %339 : vector<16x1xf32>
    %cst_117 = arith.constant 9.99999997E-7 : f32
    %341 = vector.broadcast %cst_117 : f32 to vector<16x1xf32>
    %342 = arith.addf %340, %341 : vector<16x1xf32>
    %343 = tpu.reciprocal %342 {approx = true} : vector<16x1xf32> -> vector<16x1xf32>
    %c18 = arith.constant 18 : index
    %c0_118 = arith.constant 0 : index
    %344 = vector.load %arg6[%c18, %c0_118] : memref<46x128xf32, #tpu.memory_space<vmem>>, vector<1x32xf32>
    %345 = vector.broadcast %332 : vector<16x1xf32> to vector<16x32xf32>
    %346 = arith.subf %328, %345 : vector<16x32xf32>
    %347 = vector.broadcast %344 : vector<1x32xf32> to vector<16x32xf32>
    %348 = arith.mulf %347, %346 : vector<16x32xf32>
    %349 = vector.broadcast %343 : vector<16x1xf32> to vector<16x32xf32>
    %350 = arith.mulf %348, %349 : vector<16x32xf32>
    %c19 = arith.constant 19 : index
    %c0_119 = arith.constant 0 : index
    %351 = vector.load %arg6[%c19, %c0_119] : memref<46x128xf32, #tpu.memory_space<vmem>>, vector<1x32xf32>
    %352 = vector.broadcast %351 : vector<1x32xf32> to vector<16x32xf32>
    %353 = arith.addf %350, %352 : vector<16x32xf32>
    %c0_120 = arith.constant 0 : index
    %c0_121 = arith.constant 0 : index
    %354 = vector.load %arg3[%c0_120, %c0_121] : memref<16x16xf32, #tpu.memory_space<vmem>>, vector<16x16xf32>
    %c320 = arith.constant 320 : index
    %c0_122 = arith.constant 0 : index
    %355 = vector.load %arg5[%c320, %c0_122] : memref<832x128xf32, #tpu.memory_space<vmem>>, vector<32x96xf32>
    %cst_123 = arith.constant dense<0.000000e+00> : vector<16x96xf32>
    %356 = tpu.matmul %353, %355, %cst_123 {dimension_numbers = #tpu.dot_dimension_numbers<[1], [0], [0], [1], [0, 0, 1, 1], [], []>} : vector<16x32xf32>, vector<32x96xf32>, vector<16x96xf32> -> vector<16x96xf32>
    %c24 = arith.constant 24 : index
    %c0_124 = arith.constant 0 : index
    %357 = vector.load %arg6[%c24, %c0_124] : memref<46x128xf32, #tpu.memory_space<vmem>>, vector<1x96xf32>
    %358 = vector.broadcast %357 : vector<1x96xf32> to vector<16x96xf32>
    %359 = arith.addf %356, %358 : vector<16x96xf32>
    %360 = vector.extract_strided_slice %359 {offsets = [0, 0], sizes = [16, 32], strides = [1, 1]} : vector<16x96xf32> to vector<16x32xf32>
    %361 = vector.extract_strided_slice %359 {offsets = [0, 32], sizes = [16, 32], strides = [1, 1]} : vector<16x96xf32> to vector<16x32xf32>
    %362 = vector.extract_strided_slice %359 {offsets = [0, 64], sizes = [16, 32], strides = [1, 1]} : vector<16x96xf32> to vector<16x32xf32>
    %363 = vector.extract_strided_slice %360 {offsets = [0, 0], sizes = [16, 8], strides = [1, 1]} : vector<16x32xf32> to vector<16x8xf32>
    %364 = vector.extract_strided_slice %361 {offsets = [0, 0], sizes = [16, 8], strides = [1, 1]} : vector<16x32xf32> to vector<16x8xf32>
    %365 = vector.extract_strided_slice %362 {offsets = [0, 0], sizes = [16, 8], strides = [1, 1]} : vector<16x32xf32> to vector<16x8xf32>
    %cst_125 = arith.constant dense<0.000000e+00> : vector<16x16xf32>
    %366 = tpu.matmul %363, %364, %cst_125 {dimension_numbers = #tpu.dot_dimension_numbers<[1], [1], [0], [0], [0, 0, 1, 0], [], []>} : vector<16x8xf32>, vector<16x8xf32>, vector<16x16xf32> -> vector<16x16xf32>
    %367 = arith.addf %366, %354 : vector<16x16xf32>
    %cst_126 = arith.constant dense<0xFF800000> : vector<16xf32>
    %368 = vector.multi_reduction <maximumf>, %367, %cst_126 [1] : vector<16x16xf32> to vector<16xf32>
    %369 = vector.shape_cast %368 : vector<16xf32> to vector<16x1xf32>
    %370 = vector.broadcast %369 : vector<16x1xf32> to vector<16x16xf32>
    %371 = arith.subf %367, %370 : vector<16x16xf32>
    %372 = math.exp %371 : vector<16x16xf32>
    %cst_127 = arith.constant dense<0.000000e+00> : vector<16xf32>
    %373 = vector.multi_reduction <add>, %372, %cst_127 [1] : vector<16x16xf32> to vector<16xf32>
    %374 = vector.shape_cast %373 : vector<16xf32> to vector<16x1xf32>
    %375 = tpu.reciprocal %374 {approx = true} : vector<16x1xf32> -> vector<16x1xf32>
    %376 = vector.broadcast %375 : vector<16x1xf32> to vector<16x16xf32>
    %377 = arith.mulf %372, %376 : vector<16x16xf32>
    %cst_128 = arith.constant dense<0.000000e+00> : vector<16x8xf32>
    %378 = tpu.matmul %377, %365, %cst_128 {dimension_numbers = #tpu.dot_dimension_numbers<[1], [0], [0], [1], [0, 0, 1, 1], [], []>} : vector<16x16xf32>, vector<16x8xf32>, vector<16x8xf32> -> vector<16x8xf32>
    %c352 = arith.constant 352 : index
    %c0_129 = arith.constant 0 : index
    %379 = vector.load %arg5[%c352, %c0_129] : memref<832x128xf32, #tpu.memory_space<vmem>>, vector<8x32xf32>
    %cst_130 = arith.constant dense<0.000000e+00> : vector<16x32xf32>
    %380 = tpu.matmul %378, %379, %cst_130 {dimension_numbers = #tpu.dot_dimension_numbers<[1], [0], [0], [1], [0, 0, 1, 1], [], []>} : vector<16x8xf32>, vector<8x32xf32>, vector<16x32xf32> -> vector<16x32xf32>
    %381 = vector.extract_strided_slice %360 {offsets = [0, 8], sizes = [16, 8], strides = [1, 1]} : vector<16x32xf32> to vector<16x8xf32>
    %382 = vector.extract_strided_slice %361 {offsets = [0, 8], sizes = [16, 8], strides = [1, 1]} : vector<16x32xf32> to vector<16x8xf32>
    %383 = vector.extract_strided_slice %362 {offsets = [0, 8], sizes = [16, 8], strides = [1, 1]} : vector<16x32xf32> to vector<16x8xf32>
    %cst_131 = arith.constant dense<0.000000e+00> : vector<16x16xf32>
    %384 = tpu.matmul %381, %382, %cst_131 {dimension_numbers = #tpu.dot_dimension_numbers<[1], [1], [0], [0], [0, 0, 1, 0], [], []>} : vector<16x8xf32>, vector<16x8xf32>, vector<16x16xf32> -> vector<16x16xf32>
    %385 = arith.addf %384, %354 : vector<16x16xf32>
    %cst_132 = arith.constant dense<0xFF800000> : vector<16xf32>
    %386 = vector.multi_reduction <maximumf>, %385, %cst_132 [1] : vector<16x16xf32> to vector<16xf32>
    %387 = vector.shape_cast %386 : vector<16xf32> to vector<16x1xf32>
    %388 = vector.broadcast %387 : vector<16x1xf32> to vector<16x16xf32>
    %389 = arith.subf %385, %388 : vector<16x16xf32>
    %390 = math.exp %389 : vector<16x16xf32>
    %cst_133 = arith.constant dense<0.000000e+00> : vector<16xf32>
    %391 = vector.multi_reduction <add>, %390, %cst_133 [1] : vector<16x16xf32> to vector<16xf32>
    %392 = vector.shape_cast %391 : vector<16xf32> to vector<16x1xf32>
    %393 = tpu.reciprocal %392 {approx = true} : vector<16x1xf32> -> vector<16x1xf32>
    %394 = vector.broadcast %393 : vector<16x1xf32> to vector<16x16xf32>
    %395 = arith.mulf %390, %394 : vector<16x16xf32>
    %cst_134 = arith.constant dense<0.000000e+00> : vector<16x8xf32>
    %396 = tpu.matmul %395, %383, %cst_134 {dimension_numbers = #tpu.dot_dimension_numbers<[1], [0], [0], [1], [0, 0, 1, 1], [], []>} : vector<16x16xf32>, vector<16x8xf32>, vector<16x8xf32> -> vector<16x8xf32>
    %c360 = arith.constant 360 : index
    %c0_135 = arith.constant 0 : index
    %397 = vector.load %arg5[%c360, %c0_135] : memref<832x128xf32, #tpu.memory_space<vmem>>, vector<8x32xf32>
    %cst_136 = arith.constant dense<0.000000e+00> : vector<16x32xf32>
    %398 = tpu.matmul %396, %397, %cst_136 {dimension_numbers = #tpu.dot_dimension_numbers<[1], [0], [0], [1], [0, 0, 1, 1], [], []>} : vector<16x8xf32>, vector<8x32xf32>, vector<16x32xf32> -> vector<16x32xf32>
    %399 = arith.addf %380, %398 : vector<16x32xf32>
    %400 = vector.extract_strided_slice %360 {offsets = [0, 16], sizes = [16, 8], strides = [1, 1]} : vector<16x32xf32> to vector<16x8xf32>
    %401 = vector.extract_strided_slice %361 {offsets = [0, 16], sizes = [16, 8], strides = [1, 1]} : vector<16x32xf32> to vector<16x8xf32>
    %402 = vector.extract_strided_slice %362 {offsets = [0, 16], sizes = [16, 8], strides = [1, 1]} : vector<16x32xf32> to vector<16x8xf32>
    %cst_137 = arith.constant dense<0.000000e+00> : vector<16x16xf32>
    %403 = tpu.matmul %400, %401, %cst_137 {dimension_numbers = #tpu.dot_dimension_numbers<[1], [1], [0], [0], [0, 0, 1, 0], [], []>} : vector<16x8xf32>, vector<16x8xf32>, vector<16x16xf32> -> vector<16x16xf32>
    %404 = arith.addf %403, %354 : vector<16x16xf32>
    %cst_138 = arith.constant dense<0xFF800000> : vector<16xf32>
    %405 = vector.multi_reduction <maximumf>, %404, %cst_138 [1] : vector<16x16xf32> to vector<16xf32>
    %406 = vector.shape_cast %405 : vector<16xf32> to vector<16x1xf32>
    %407 = vector.broadcast %406 : vector<16x1xf32> to vector<16x16xf32>
    %408 = arith.subf %404, %407 : vector<16x16xf32>
    %409 = math.exp %408 : vector<16x16xf32>
    %cst_139 = arith.constant dense<0.000000e+00> : vector<16xf32>
    %410 = vector.multi_reduction <add>, %409, %cst_139 [1] : vector<16x16xf32> to vector<16xf32>
    %411 = vector.shape_cast %410 : vector<16xf32> to vector<16x1xf32>
    %412 = tpu.reciprocal %411 {approx = true} : vector<16x1xf32> -> vector<16x1xf32>
    %413 = vector.broadcast %412 : vector<16x1xf32> to vector<16x16xf32>
    %414 = arith.mulf %409, %413 : vector<16x16xf32>
    %cst_140 = arith.constant dense<0.000000e+00> : vector<16x8xf32>
    %415 = tpu.matmul %414, %402, %cst_140 {dimension_numbers = #tpu.dot_dimension_numbers<[1], [0], [0], [1], [0, 0, 1, 1], [], []>} : vector<16x16xf32>, vector<16x8xf32>, vector<16x8xf32> -> vector<16x8xf32>
    %c368 = arith.constant 368 : index
    %c0_141 = arith.constant 0 : index
    %416 = vector.load %arg5[%c368, %c0_141] : memref<832x128xf32, #tpu.memory_space<vmem>>, vector<8x32xf32>
    %cst_142 = arith.constant dense<0.000000e+00> : vector<16x32xf32>
    %417 = tpu.matmul %415, %416, %cst_142 {dimension_numbers = #tpu.dot_dimension_numbers<[1], [0], [0], [1], [0, 0, 1, 1], [], []>} : vector<16x8xf32>, vector<8x32xf32>, vector<16x32xf32> -> vector<16x32xf32>
    %418 = arith.addf %399, %417 : vector<16x32xf32>
    %419 = vector.extract_strided_slice %360 {offsets = [0, 24], sizes = [16, 8], strides = [1, 1]} : vector<16x32xf32> to vector<16x8xf32>
    %420 = vector.extract_strided_slice %361 {offsets = [0, 24], sizes = [16, 8], strides = [1, 1]} : vector<16x32xf32> to vector<16x8xf32>
    %421 = vector.extract_strided_slice %362 {offsets = [0, 24], sizes = [16, 8], strides = [1, 1]} : vector<16x32xf32> to vector<16x8xf32>
    %cst_143 = arith.constant dense<0.000000e+00> : vector<16x16xf32>
    %422 = tpu.matmul %419, %420, %cst_143 {dimension_numbers = #tpu.dot_dimension_numbers<[1], [1], [0], [0], [0, 0, 1, 0], [], []>} : vector<16x8xf32>, vector<16x8xf32>, vector<16x16xf32> -> vector<16x16xf32>
    %423 = arith.addf %422, %354 : vector<16x16xf32>
    %cst_144 = arith.constant dense<0xFF800000> : vector<16xf32>
    %424 = vector.multi_reduction <maximumf>, %423, %cst_144 [1] : vector<16x16xf32> to vector<16xf32>
    %425 = vector.shape_cast %424 : vector<16xf32> to vector<16x1xf32>
    %426 = vector.broadcast %425 : vector<16x1xf32> to vector<16x16xf32>
    %427 = arith.subf %423, %426 : vector<16x16xf32>
    %428 = math.exp %427 : vector<16x16xf32>
    %cst_145 = arith.constant dense<0.000000e+00> : vector<16xf32>
    %429 = vector.multi_reduction <add>, %428, %cst_145 [1] : vector<16x16xf32> to vector<16xf32>
    %430 = vector.shape_cast %429 : vector<16xf32> to vector<16x1xf32>
    %431 = tpu.reciprocal %430 {approx = true} : vector<16x1xf32> -> vector<16x1xf32>
    %432 = vector.broadcast %431 : vector<16x1xf32> to vector<16x16xf32>
    %433 = arith.mulf %428, %432 : vector<16x16xf32>
    %cst_146 = arith.constant dense<0.000000e+00> : vector<16x8xf32>
    %434 = tpu.matmul %433, %421, %cst_146 {dimension_numbers = #tpu.dot_dimension_numbers<[1], [0], [0], [1], [0, 0, 1, 1], [], []>} : vector<16x16xf32>, vector<16x8xf32>, vector<16x8xf32> -> vector<16x8xf32>
    %c376 = arith.constant 376 : index
    %c0_147 = arith.constant 0 : index
    %435 = vector.load %arg5[%c376, %c0_147] : memref<832x128xf32, #tpu.memory_space<vmem>>, vector<8x32xf32>
    %cst_148 = arith.constant dense<0.000000e+00> : vector<16x32xf32>
    %436 = tpu.matmul %434, %435, %cst_148 {dimension_numbers = #tpu.dot_dimension_numbers<[1], [0], [0], [1], [0, 0, 1, 1], [], []>} : vector<16x8xf32>, vector<8x32xf32>, vector<16x32xf32> -> vector<16x32xf32>
    %437 = arith.addf %418, %436 : vector<16x32xf32>
    %c25 = arith.constant 25 : index
    %c0_149 = arith.constant 0 : index
    %438 = vector.load %arg6[%c25, %c0_149] : memref<46x128xf32, #tpu.memory_space<vmem>>, vector<1x32xf32>
    %439 = vector.broadcast %438 : vector<1x32xf32> to vector<16x32xf32>
    %440 = arith.addf %437, %439 : vector<16x32xf32>
    %441 = arith.addf %328, %440 : vector<16x32xf32>
    %cst_150 = arith.constant dense<0.000000e+00> : vector<16xf32>
    %442 = vector.multi_reduction <add>, %441, %cst_150 [1] : vector<16x32xf32> to vector<16xf32>
    %443 = vector.shape_cast %442 : vector<16xf32> to vector<16x1xf32>
    %cst_151 = arith.constant 3.200000e+01 : f32
    %444 = vector.broadcast %cst_151 : f32 to vector<16x1xf32>
    %445 = arith.divf %443, %444 : vector<16x1xf32>
    %446 = vector.broadcast %445 : vector<16x1xf32> to vector<16x32xf32>
    %447 = arith.subf %441, %446 : vector<16x32xf32>
    %448 = arith.mulf %447, %447 : vector<16x32xf32>
    %cst_152 = arith.constant dense<0.000000e+00> : vector<16xf32>
    %449 = vector.multi_reduction <add>, %448, %cst_152 [1] : vector<16x32xf32> to vector<16xf32>
    %450 = vector.shape_cast %449 : vector<16xf32> to vector<16x1xf32>
    %cst_153 = arith.constant 0.0322580636 : f32
    %451 = vector.broadcast %cst_153 : f32 to vector<16x1xf32>
    %452 = arith.mulf %450, %451 : vector<16x1xf32>
    %453 = math.sqrt %452 : vector<16x1xf32>
    %cst_154 = arith.constant 9.99999997E-7 : f32
    %454 = vector.broadcast %cst_154 : f32 to vector<16x1xf32>
    %455 = arith.addf %453, %454 : vector<16x1xf32>
    %456 = tpu.reciprocal %455 {approx = true} : vector<16x1xf32> -> vector<16x1xf32>
    %c20 = arith.constant 20 : index
    %c0_155 = arith.constant 0 : index
    %457 = vector.load %arg6[%c20, %c0_155] : memref<46x128xf32, #tpu.memory_space<vmem>>, vector<1x32xf32>
    %458 = vector.broadcast %445 : vector<16x1xf32> to vector<16x32xf32>
    %459 = arith.subf %441, %458 : vector<16x32xf32>
    %460 = vector.broadcast %457 : vector<1x32xf32> to vector<16x32xf32>
    %461 = arith.mulf %460, %459 : vector<16x32xf32>
    %462 = vector.broadcast %456 : vector<16x1xf32> to vector<16x32xf32>
    %463 = arith.mulf %461, %462 : vector<16x32xf32>
    %c21 = arith.constant 21 : index
    %c0_156 = arith.constant 0 : index
    %464 = vector.load %arg6[%c21, %c0_156] : memref<46x128xf32, #tpu.memory_space<vmem>>, vector<1x32xf32>
    %465 = vector.broadcast %464 : vector<1x32xf32> to vector<16x32xf32>
    %466 = arith.addf %463, %465 : vector<16x32xf32>
    %c0_157 = arith.constant 0 : index
    %c0_158 = arith.constant 0 : index
    %467 = vector.load %arg4[%c0_157, %c0_158] : memref<16x16xf32, #tpu.memory_space<vmem>>, vector<16x16xf32>
    %c384 = arith.constant 384 : index
    %c0_159 = arith.constant 0 : index
    %468 = vector.load %arg5[%c384, %c0_159] : memref<832x128xf32, #tpu.memory_space<vmem>>, vector<32x32xf32>
    %cst_160 = arith.constant dense<0.000000e+00> : vector<16x32xf32>
    %469 = tpu.matmul %466, %468, %cst_160 {dimension_numbers = #tpu.dot_dimension_numbers<[1], [0], [0], [1], [0, 0, 1, 1], [], []>} : vector<16x32xf32>, vector<32x32xf32>, vector<16x32xf32> -> vector<16x32xf32>
    %c26 = arith.constant 26 : index
    %c0_161 = arith.constant 0 : index
    %470 = vector.load %arg6[%c26, %c0_161] : memref<46x128xf32, #tpu.memory_space<vmem>>, vector<1x32xf32>
    %471 = vector.broadcast %470 : vector<1x32xf32> to vector<16x32xf32>
    %472 = arith.addf %469, %471 : vector<16x32xf32>
    %c416 = arith.constant 416 : index
    %c0_162 = arith.constant 0 : index
    %473 = vector.load %arg5[%c416, %c0_162] : memref<832x128xf32, #tpu.memory_space<vmem>>, vector<32x64xf32>
    %cst_163 = arith.constant dense<0.000000e+00> : vector<16x64xf32>
    %474 = tpu.matmul %327, %473, %cst_163 {dimension_numbers = #tpu.dot_dimension_numbers<[1], [0], [0], [1], [0, 0, 1, 1], [], []>} : vector<16x32xf32>, vector<32x64xf32>, vector<16x64xf32> -> vector<16x64xf32>
    %c27 = arith.constant 27 : index
    %c0_164 = arith.constant 0 : index
    %475 = vector.load %arg6[%c27, %c0_164] : memref<46x128xf32, #tpu.memory_space<vmem>>, vector<1x64xf32>
    %476 = vector.broadcast %475 : vector<1x64xf32> to vector<16x64xf32>
    %477 = arith.addf %474, %476 : vector<16x64xf32>
    %478 = vector.extract_strided_slice %477 {offsets = [0, 0], sizes = [16, 32], strides = [1, 1]} : vector<16x64xf32> to vector<16x32xf32>
    %479 = vector.extract_strided_slice %477 {offsets = [0, 32], sizes = [16, 32], strides = [1, 1]} : vector<16x64xf32> to vector<16x32xf32>
    %480 = vector.extract_strided_slice %472 {offsets = [0, 0], sizes = [16, 8], strides = [1, 1]} : vector<16x32xf32> to vector<16x8xf32>
    %481 = vector.extract_strided_slice %478 {offsets = [0, 0], sizes = [16, 8], strides = [1, 1]} : vector<16x32xf32> to vector<16x8xf32>
    %482 = vector.extract_strided_slice %479 {offsets = [0, 0], sizes = [16, 8], strides = [1, 1]} : vector<16x32xf32> to vector<16x8xf32>
    %cst_165 = arith.constant dense<0.000000e+00> : vector<16x16xf32>
    %483 = tpu.matmul %480, %481, %cst_165 {dimension_numbers = #tpu.dot_dimension_numbers<[1], [1], [0], [0], [0, 0, 1, 0], [], []>} : vector<16x8xf32>, vector<16x8xf32>, vector<16x16xf32> -> vector<16x16xf32>
    %484 = arith.addf %483, %467 : vector<16x16xf32>
    %cst_166 = arith.constant dense<0xFF800000> : vector<16xf32>
    %485 = vector.multi_reduction <maximumf>, %484, %cst_166 [1] : vector<16x16xf32> to vector<16xf32>
    %486 = vector.shape_cast %485 : vector<16xf32> to vector<16x1xf32>
    %487 = vector.broadcast %486 : vector<16x1xf32> to vector<16x16xf32>
    %488 = arith.subf %484, %487 : vector<16x16xf32>
    %489 = math.exp %488 : vector<16x16xf32>
    %cst_167 = arith.constant dense<0.000000e+00> : vector<16xf32>
    %490 = vector.multi_reduction <add>, %489, %cst_167 [1] : vector<16x16xf32> to vector<16xf32>
    %491 = vector.shape_cast %490 : vector<16xf32> to vector<16x1xf32>
    %492 = tpu.reciprocal %491 {approx = true} : vector<16x1xf32> -> vector<16x1xf32>
    %493 = vector.broadcast %492 : vector<16x1xf32> to vector<16x16xf32>
    %494 = arith.mulf %489, %493 : vector<16x16xf32>
    %cst_168 = arith.constant dense<0.000000e+00> : vector<16x8xf32>
    %495 = tpu.matmul %494, %482, %cst_168 {dimension_numbers = #tpu.dot_dimension_numbers<[1], [0], [0], [1], [0, 0, 1, 1], [], []>} : vector<16x16xf32>, vector<16x8xf32>, vector<16x8xf32> -> vector<16x8xf32>
    %c448 = arith.constant 448 : index
    %c0_169 = arith.constant 0 : index
    %496 = vector.load %arg5[%c448, %c0_169] : memref<832x128xf32, #tpu.memory_space<vmem>>, vector<8x32xf32>
    %cst_170 = arith.constant dense<0.000000e+00> : vector<16x32xf32>
    %497 = tpu.matmul %495, %496, %cst_170 {dimension_numbers = #tpu.dot_dimension_numbers<[1], [0], [0], [1], [0, 0, 1, 1], [], []>} : vector<16x8xf32>, vector<8x32xf32>, vector<16x32xf32> -> vector<16x32xf32>
    %498 = vector.extract_strided_slice %472 {offsets = [0, 8], sizes = [16, 8], strides = [1, 1]} : vector<16x32xf32> to vector<16x8xf32>
    %499 = vector.extract_strided_slice %478 {offsets = [0, 8], sizes = [16, 8], strides = [1, 1]} : vector<16x32xf32> to vector<16x8xf32>
    %500 = vector.extract_strided_slice %479 {offsets = [0, 8], sizes = [16, 8], strides = [1, 1]} : vector<16x32xf32> to vector<16x8xf32>
    %cst_171 = arith.constant dense<0.000000e+00> : vector<16x16xf32>
    %501 = tpu.matmul %498, %499, %cst_171 {dimension_numbers = #tpu.dot_dimension_numbers<[1], [1], [0], [0], [0, 0, 1, 0], [], []>} : vector<16x8xf32>, vector<16x8xf32>, vector<16x16xf32> -> vector<16x16xf32>
    %502 = arith.addf %501, %467 : vector<16x16xf32>
    %cst_172 = arith.constant dense<0xFF800000> : vector<16xf32>
    %503 = vector.multi_reduction <maximumf>, %502, %cst_172 [1] : vector<16x16xf32> to vector<16xf32>
    %504 = vector.shape_cast %503 : vector<16xf32> to vector<16x1xf32>
    %505 = vector.broadcast %504 : vector<16x1xf32> to vector<16x16xf32>
    %506 = arith.subf %502, %505 : vector<16x16xf32>
    %507 = math.exp %506 : vector<16x16xf32>
    %cst_173 = arith.constant dense<0.000000e+00> : vector<16xf32>
    %508 = vector.multi_reduction <add>, %507, %cst_173 [1] : vector<16x16xf32> to vector<16xf32>
    %509 = vector.shape_cast %508 : vector<16xf32> to vector<16x1xf32>
    %510 = tpu.reciprocal %509 {approx = true} : vector<16x1xf32> -> vector<16x1xf32>
    %511 = vector.broadcast %510 : vector<16x1xf32> to vector<16x16xf32>
    %512 = arith.mulf %507, %511 : vector<16x16xf32>
    %cst_174 = arith.constant dense<0.000000e+00> : vector<16x8xf32>
    %513 = tpu.matmul %512, %500, %cst_174 {dimension_numbers = #tpu.dot_dimension_numbers<[1], [0], [0], [1], [0, 0, 1, 1], [], []>} : vector<16x16xf32>, vector<16x8xf32>, vector<16x8xf32> -> vector<16x8xf32>
    %c456 = arith.constant 456 : index
    %c0_175 = arith.constant 0 : index
    %514 = vector.load %arg5[%c456, %c0_175] : memref<832x128xf32, #tpu.memory_space<vmem>>, vector<8x32xf32>
    %cst_176 = arith.constant dense<0.000000e+00> : vector<16x32xf32>
    %515 = tpu.matmul %513, %514, %cst_176 {dimension_numbers = #tpu.dot_dimension_numbers<[1], [0], [0], [1], [0, 0, 1, 1], [], []>} : vector<16x8xf32>, vector<8x32xf32>, vector<16x32xf32> -> vector<16x32xf32>
    %516 = arith.addf %497, %515 : vector<16x32xf32>
    %517 = vector.extract_strided_slice %472 {offsets = [0, 16], sizes = [16, 8], strides = [1, 1]} : vector<16x32xf32> to vector<16x8xf32>
    %518 = vector.extract_strided_slice %478 {offsets = [0, 16], sizes = [16, 8], strides = [1, 1]} : vector<16x32xf32> to vector<16x8xf32>
    %519 = vector.extract_strided_slice %479 {offsets = [0, 16], sizes = [16, 8], strides = [1, 1]} : vector<16x32xf32> to vector<16x8xf32>
    %cst_177 = arith.constant dense<0.000000e+00> : vector<16x16xf32>
    %520 = tpu.matmul %517, %518, %cst_177 {dimension_numbers = #tpu.dot_dimension_numbers<[1], [1], [0], [0], [0, 0, 1, 0], [], []>} : vector<16x8xf32>, vector<16x8xf32>, vector<16x16xf32> -> vector<16x16xf32>
    %521 = arith.addf %520, %467 : vector<16x16xf32>
    %cst_178 = arith.constant dense<0xFF800000> : vector<16xf32>
    %522 = vector.multi_reduction <maximumf>, %521, %cst_178 [1] : vector<16x16xf32> to vector<16xf32>
    %523 = vector.shape_cast %522 : vector<16xf32> to vector<16x1xf32>
    %524 = vector.broadcast %523 : vector<16x1xf32> to vector<16x16xf32>
    %525 = arith.subf %521, %524 : vector<16x16xf32>
    %526 = math.exp %525 : vector<16x16xf32>
    %cst_179 = arith.constant dense<0.000000e+00> : vector<16xf32>
    %527 = vector.multi_reduction <add>, %526, %cst_179 [1] : vector<16x16xf32> to vector<16xf32>
    %528 = vector.shape_cast %527 : vector<16xf32> to vector<16x1xf32>
    %529 = tpu.reciprocal %528 {approx = true} : vector<16x1xf32> -> vector<16x1xf32>
    %530 = vector.broadcast %529 : vector<16x1xf32> to vector<16x16xf32>
    %531 = arith.mulf %526, %530 : vector<16x16xf32>
    %cst_180 = arith.constant dense<0.000000e+00> : vector<16x8xf32>
    %532 = tpu.matmul %531, %519, %cst_180 {dimension_numbers = #tpu.dot_dimension_numbers<[1], [0], [0], [1], [0, 0, 1, 1], [], []>} : vector<16x16xf32>, vector<16x8xf32>, vector<16x8xf32> -> vector<16x8xf32>
    %c464 = arith.constant 464 : index
    %c0_181 = arith.constant 0 : index
    %533 = vector.load %arg5[%c464, %c0_181] : memref<832x128xf32, #tpu.memory_space<vmem>>, vector<8x32xf32>
    %cst_182 = arith.constant dense<0.000000e+00> : vector<16x32xf32>
    %534 = tpu.matmul %532, %533, %cst_182 {dimension_numbers = #tpu.dot_dimension_numbers<[1], [0], [0], [1], [0, 0, 1, 1], [], []>} : vector<16x8xf32>, vector<8x32xf32>, vector<16x32xf32> -> vector<16x32xf32>
    %535 = arith.addf %516, %534 : vector<16x32xf32>
    %536 = vector.extract_strided_slice %472 {offsets = [0, 24], sizes = [16, 8], strides = [1, 1]} : vector<16x32xf32> to vector<16x8xf32>
    %537 = vector.extract_strided_slice %478 {offsets = [0, 24], sizes = [16, 8], strides = [1, 1]} : vector<16x32xf32> to vector<16x8xf32>
    %538 = vector.extract_strided_slice %479 {offsets = [0, 24], sizes = [16, 8], strides = [1, 1]} : vector<16x32xf32> to vector<16x8xf32>
    %cst_183 = arith.constant dense<0.000000e+00> : vector<16x16xf32>
    %539 = tpu.matmul %536, %537, %cst_183 {dimension_numbers = #tpu.dot_dimension_numbers<[1], [1], [0], [0], [0, 0, 1, 0], [], []>} : vector<16x8xf32>, vector<16x8xf32>, vector<16x16xf32> -> vector<16x16xf32>
    %540 = arith.addf %539, %467 : vector<16x16xf32>
    %cst_184 = arith.constant dense<0xFF800000> : vector<16xf32>
    %541 = vector.multi_reduction <maximumf>, %540, %cst_184 [1] : vector<16x16xf32> to vector<16xf32>
    %542 = vector.shape_cast %541 : vector<16xf32> to vector<16x1xf32>
    %543 = vector.broadcast %542 : vector<16x1xf32> to vector<16x16xf32>
    %544 = arith.subf %540, %543 : vector<16x16xf32>
    %545 = math.exp %544 : vector<16x16xf32>
    %cst_185 = arith.constant dense<0.000000e+00> : vector<16xf32>
    %546 = vector.multi_reduction <add>, %545, %cst_185 [1] : vector<16x16xf32> to vector<16xf32>
    %547 = vector.shape_cast %546 : vector<16xf32> to vector<16x1xf32>
    %548 = tpu.reciprocal %547 {approx = true} : vector<16x1xf32> -> vector<16x1xf32>
    %549 = vector.broadcast %548 : vector<16x1xf32> to vector<16x16xf32>
    %550 = arith.mulf %545, %549 : vector<16x16xf32>
    %cst_186 = arith.constant dense<0.000000e+00> : vector<16x8xf32>
    %551 = tpu.matmul %550, %538, %cst_186 {dimension_numbers = #tpu.dot_dimension_numbers<[1], [0], [0], [1], [0, 0, 1, 1], [], []>} : vector<16x16xf32>, vector<16x8xf32>, vector<16x8xf32> -> vector<16x8xf32>
    %c472 = arith.constant 472 : index
    %c0_187 = arith.constant 0 : index
    %552 = vector.load %arg5[%c472, %c0_187] : memref<832x128xf32, #tpu.memory_space<vmem>>, vector<8x32xf32>
    %cst_188 = arith.constant dense<0.000000e+00> : vector<16x32xf32>
    %553 = tpu.matmul %551, %552, %cst_188 {dimension_numbers = #tpu.dot_dimension_numbers<[1], [0], [0], [1], [0, 0, 1, 1], [], []>} : vector<16x8xf32>, vector<8x32xf32>, vector<16x32xf32> -> vector<16x32xf32>
    %554 = arith.addf %535, %553 : vector<16x32xf32>
    %c28 = arith.constant 28 : index
    %c0_189 = arith.constant 0 : index
    %555 = vector.load %arg6[%c28, %c0_189] : memref<46x128xf32, #tpu.memory_space<vmem>>, vector<1x32xf32>
    %556 = vector.broadcast %555 : vector<1x32xf32> to vector<16x32xf32>
    %557 = arith.addf %554, %556 : vector<16x32xf32>
    %558 = arith.addf %441, %557 : vector<16x32xf32>
    %cst_190 = arith.constant dense<0.000000e+00> : vector<16xf32>
    %559 = vector.multi_reduction <add>, %558, %cst_190 [1] : vector<16x32xf32> to vector<16xf32>
    %560 = vector.shape_cast %559 : vector<16xf32> to vector<16x1xf32>
    %cst_191 = arith.constant 3.200000e+01 : f32
    %561 = vector.broadcast %cst_191 : f32 to vector<16x1xf32>
    %562 = arith.divf %560, %561 : vector<16x1xf32>
    %563 = vector.broadcast %562 : vector<16x1xf32> to vector<16x32xf32>
    %564 = arith.subf %558, %563 : vector<16x32xf32>
    %565 = arith.mulf %564, %564 : vector<16x32xf32>
    %cst_192 = arith.constant dense<0.000000e+00> : vector<16xf32>
    %566 = vector.multi_reduction <add>, %565, %cst_192 [1] : vector<16x32xf32> to vector<16xf32>
    %567 = vector.shape_cast %566 : vector<16xf32> to vector<16x1xf32>
    %cst_193 = arith.constant 0.0322580636 : f32
    %568 = vector.broadcast %cst_193 : f32 to vector<16x1xf32>
    %569 = arith.mulf %567, %568 : vector<16x1xf32>
    %570 = math.sqrt %569 : vector<16x1xf32>
    %cst_194 = arith.constant 9.99999997E-7 : f32
    %571 = vector.broadcast %cst_194 : f32 to vector<16x1xf32>
    %572 = arith.addf %570, %571 : vector<16x1xf32>
    %573 = tpu.reciprocal %572 {approx = true} : vector<16x1xf32> -> vector<16x1xf32>
    %c22 = arith.constant 22 : index
    %c0_195 = arith.constant 0 : index
    %574 = vector.load %arg6[%c22, %c0_195] : memref<46x128xf32, #tpu.memory_space<vmem>>, vector<1x32xf32>
    %575 = vector.broadcast %562 : vector<16x1xf32> to vector<16x32xf32>
    %576 = arith.subf %558, %575 : vector<16x32xf32>
    %577 = vector.broadcast %574 : vector<1x32xf32> to vector<16x32xf32>
    %578 = arith.mulf %577, %576 : vector<16x32xf32>
    %579 = vector.broadcast %573 : vector<16x1xf32> to vector<16x32xf32>
    %580 = arith.mulf %578, %579 : vector<16x32xf32>
    %c23 = arith.constant 23 : index
    %c0_196 = arith.constant 0 : index
    %581 = vector.load %arg6[%c23, %c0_196] : memref<46x128xf32, #tpu.memory_space<vmem>>, vector<1x32xf32>
    %582 = vector.broadcast %581 : vector<1x32xf32> to vector<16x32xf32>
    %583 = arith.addf %580, %582 : vector<16x32xf32>
    %c480 = arith.constant 480 : index
    %c0_197 = arith.constant 0 : index
    %584 = vector.load %arg5[%c480, %c0_197] : memref<832x128xf32, #tpu.memory_space<vmem>>, vector<32x64xf32>
    %cst_198 = arith.constant dense<0.000000e+00> : vector<16x64xf32>
    %585 = tpu.matmul %583, %584, %cst_198 {dimension_numbers = #tpu.dot_dimension_numbers<[1], [0], [0], [1], [0, 0, 1, 1], [], []>} : vector<16x32xf32>, vector<32x64xf32>, vector<16x64xf32> -> vector<16x64xf32>
    %c29 = arith.constant 29 : index
    %c0_199 = arith.constant 0 : index
    %586 = vector.load %arg6[%c29, %c0_199] : memref<46x128xf32, #tpu.memory_space<vmem>>, vector<1x64xf32>
    %587 = vector.broadcast %586 : vector<1x64xf32> to vector<16x64xf32>
    %588 = arith.addf %585, %587 : vector<16x64xf32>
    %cst_200 = arith.constant 0.000000e+00 : f32
    %589 = vector.broadcast %cst_200 : f32 to vector<16x64xf32>
    %590 = arith.maximumf %588, %589 : vector<16x64xf32>
    %c512 = arith.constant 512 : index
    %c0_201 = arith.constant 0 : index
    %591 = vector.load %arg5[%c512, %c0_201] : memref<832x128xf32, #tpu.memory_space<vmem>>, vector<64x32xf32>
    %cst_202 = arith.constant dense<0.000000e+00> : vector<16x32xf32>
    %592 = tpu.matmul %590, %591, %cst_202 {dimension_numbers = #tpu.dot_dimension_numbers<[1], [0], [0], [1], [0, 0, 1, 1], [], []>} : vector<16x64xf32>, vector<64x32xf32>, vector<16x32xf32> -> vector<16x32xf32>
    %c30 = arith.constant 30 : index
    %c0_203 = arith.constant 0 : index
    %593 = vector.load %arg6[%c30, %c0_203] : memref<46x128xf32, #tpu.memory_space<vmem>>, vector<1x32xf32>
    %594 = vector.broadcast %593 : vector<1x32xf32> to vector<16x32xf32>
    %595 = arith.addf %592, %594 : vector<16x32xf32>
    %596 = arith.addf %558, %595 : vector<16x32xf32>
    %cst_204 = arith.constant dense<0.000000e+00> : vector<16xf32>
    %597 = vector.multi_reduction <add>, %596, %cst_204 [1] : vector<16x32xf32> to vector<16xf32>
    %598 = vector.shape_cast %597 : vector<16xf32> to vector<16x1xf32>
    %cst_205 = arith.constant 3.200000e+01 : f32
    %599 = vector.broadcast %cst_205 : f32 to vector<16x1xf32>
    %600 = arith.divf %598, %599 : vector<16x1xf32>
    %601 = vector.broadcast %600 : vector<16x1xf32> to vector<16x32xf32>
    %602 = arith.subf %596, %601 : vector<16x32xf32>
    %603 = arith.mulf %602, %602 : vector<16x32xf32>
    %cst_206 = arith.constant dense<0.000000e+00> : vector<16xf32>
    %604 = vector.multi_reduction <add>, %603, %cst_206 [1] : vector<16x32xf32> to vector<16xf32>
    %605 = vector.shape_cast %604 : vector<16xf32> to vector<16x1xf32>
    %cst_207 = arith.constant 0.0322580636 : f32
    %606 = vector.broadcast %cst_207 : f32 to vector<16x1xf32>
    %607 = arith.mulf %605, %606 : vector<16x1xf32>
    %608 = math.sqrt %607 : vector<16x1xf32>
    %cst_208 = arith.constant 9.99999997E-7 : f32
    %609 = vector.broadcast %cst_208 : f32 to vector<16x1xf32>
    %610 = arith.addf %608, %609 : vector<16x1xf32>
    %611 = tpu.reciprocal %610 {approx = true} : vector<16x1xf32> -> vector<16x1xf32>
    %c31 = arith.constant 31 : index
    %c0_209 = arith.constant 0 : index
    %612 = vector.load %arg6[%c31, %c0_209] : memref<46x128xf32, #tpu.memory_space<vmem>>, vector<1x32xf32>
    %613 = vector.broadcast %600 : vector<16x1xf32> to vector<16x32xf32>
    %614 = arith.subf %596, %613 : vector<16x32xf32>
    %615 = vector.broadcast %612 : vector<1x32xf32> to vector<16x32xf32>
    %616 = arith.mulf %615, %614 : vector<16x32xf32>
    %617 = vector.broadcast %611 : vector<16x1xf32> to vector<16x32xf32>
    %618 = arith.mulf %616, %617 : vector<16x32xf32>
    %c32_210 = arith.constant 32 : index
    %c0_211 = arith.constant 0 : index
    %619 = vector.load %arg6[%c32_210, %c0_211] : memref<46x128xf32, #tpu.memory_space<vmem>>, vector<1x32xf32>
    %620 = vector.broadcast %619 : vector<1x32xf32> to vector<16x32xf32>
    %621 = arith.addf %618, %620 : vector<16x32xf32>
    %c0_212 = arith.constant 0 : index
    %c0_213 = arith.constant 0 : index
    %622 = vector.load %arg3[%c0_212, %c0_213] : memref<16x16xf32, #tpu.memory_space<vmem>>, vector<16x16xf32>
    %c576 = arith.constant 576 : index
    %c0_214 = arith.constant 0 : index
    %623 = vector.load %arg5[%c576, %c0_214] : memref<832x128xf32, #tpu.memory_space<vmem>>, vector<32x96xf32>
    %cst_215 = arith.constant dense<0.000000e+00> : vector<16x96xf32>
    %624 = tpu.matmul %621, %623, %cst_215 {dimension_numbers = #tpu.dot_dimension_numbers<[1], [0], [0], [1], [0, 0, 1, 1], [], []>} : vector<16x32xf32>, vector<32x96xf32>, vector<16x96xf32> -> vector<16x96xf32>
    %c37 = arith.constant 37 : index
    %c0_216 = arith.constant 0 : index
    %625 = vector.load %arg6[%c37, %c0_216] : memref<46x128xf32, #tpu.memory_space<vmem>>, vector<1x96xf32>
    %626 = vector.broadcast %625 : vector<1x96xf32> to vector<16x96xf32>
    %627 = arith.addf %624, %626 : vector<16x96xf32>
    %628 = vector.extract_strided_slice %627 {offsets = [0, 0], sizes = [16, 32], strides = [1, 1]} : vector<16x96xf32> to vector<16x32xf32>
    %629 = vector.extract_strided_slice %627 {offsets = [0, 32], sizes = [16, 32], strides = [1, 1]} : vector<16x96xf32> to vector<16x32xf32>
    %630 = vector.extract_strided_slice %627 {offsets = [0, 64], sizes = [16, 32], strides = [1, 1]} : vector<16x96xf32> to vector<16x32xf32>
    %631 = vector.extract_strided_slice %628 {offsets = [0, 0], sizes = [16, 8], strides = [1, 1]} : vector<16x32xf32> to vector<16x8xf32>
    %632 = vector.extract_strided_slice %629 {offsets = [0, 0], sizes = [16, 8], strides = [1, 1]} : vector<16x32xf32> to vector<16x8xf32>
    %633 = vector.extract_strided_slice %630 {offsets = [0, 0], sizes = [16, 8], strides = [1, 1]} : vector<16x32xf32> to vector<16x8xf32>
    %cst_217 = arith.constant dense<0.000000e+00> : vector<16x16xf32>
    %634 = tpu.matmul %631, %632, %cst_217 {dimension_numbers = #tpu.dot_dimension_numbers<[1], [1], [0], [0], [0, 0, 1, 0], [], []>} : vector<16x8xf32>, vector<16x8xf32>, vector<16x16xf32> -> vector<16x16xf32>
    %635 = arith.addf %634, %622 : vector<16x16xf32>
    %cst_218 = arith.constant dense<0xFF800000> : vector<16xf32>
    %636 = vector.multi_reduction <maximumf>, %635, %cst_218 [1] : vector<16x16xf32> to vector<16xf32>
    %637 = vector.shape_cast %636 : vector<16xf32> to vector<16x1xf32>
    %638 = vector.broadcast %637 : vector<16x1xf32> to vector<16x16xf32>
    %639 = arith.subf %635, %638 : vector<16x16xf32>
    %640 = math.exp %639 : vector<16x16xf32>
    %cst_219 = arith.constant dense<0.000000e+00> : vector<16xf32>
    %641 = vector.multi_reduction <add>, %640, %cst_219 [1] : vector<16x16xf32> to vector<16xf32>
    %642 = vector.shape_cast %641 : vector<16xf32> to vector<16x1xf32>
    %643 = tpu.reciprocal %642 {approx = true} : vector<16x1xf32> -> vector<16x1xf32>
    %644 = vector.broadcast %643 : vector<16x1xf32> to vector<16x16xf32>
    %645 = arith.mulf %640, %644 : vector<16x16xf32>
    %cst_220 = arith.constant dense<0.000000e+00> : vector<16x8xf32>
    %646 = tpu.matmul %645, %633, %cst_220 {dimension_numbers = #tpu.dot_dimension_numbers<[1], [0], [0], [1], [0, 0, 1, 1], [], []>} : vector<16x16xf32>, vector<16x8xf32>, vector<16x8xf32> -> vector<16x8xf32>
    %c608 = arith.constant 608 : index
    %c0_221 = arith.constant 0 : index
    %647 = vector.load %arg5[%c608, %c0_221] : memref<832x128xf32, #tpu.memory_space<vmem>>, vector<8x32xf32>
    %cst_222 = arith.constant dense<0.000000e+00> : vector<16x32xf32>
    %648 = tpu.matmul %646, %647, %cst_222 {dimension_numbers = #tpu.dot_dimension_numbers<[1], [0], [0], [1], [0, 0, 1, 1], [], []>} : vector<16x8xf32>, vector<8x32xf32>, vector<16x32xf32> -> vector<16x32xf32>
    %649 = vector.extract_strided_slice %628 {offsets = [0, 8], sizes = [16, 8], strides = [1, 1]} : vector<16x32xf32> to vector<16x8xf32>
    %650 = vector.extract_strided_slice %629 {offsets = [0, 8], sizes = [16, 8], strides = [1, 1]} : vector<16x32xf32> to vector<16x8xf32>
    %651 = vector.extract_strided_slice %630 {offsets = [0, 8], sizes = [16, 8], strides = [1, 1]} : vector<16x32xf32> to vector<16x8xf32>
    %cst_223 = arith.constant dense<0.000000e+00> : vector<16x16xf32>
    %652 = tpu.matmul %649, %650, %cst_223 {dimension_numbers = #tpu.dot_dimension_numbers<[1], [1], [0], [0], [0, 0, 1, 0], [], []>} : vector<16x8xf32>, vector<16x8xf32>, vector<16x16xf32> -> vector<16x16xf32>
    %653 = arith.addf %652, %622 : vector<16x16xf32>
    %cst_224 = arith.constant dense<0xFF800000> : vector<16xf32>
    %654 = vector.multi_reduction <maximumf>, %653, %cst_224 [1] : vector<16x16xf32> to vector<16xf32>
    %655 = vector.shape_cast %654 : vector<16xf32> to vector<16x1xf32>
    %656 = vector.broadcast %655 : vector<16x1xf32> to vector<16x16xf32>
    %657 = arith.subf %653, %656 : vector<16x16xf32>
    %658 = math.exp %657 : vector<16x16xf32>
    %cst_225 = arith.constant dense<0.000000e+00> : vector<16xf32>
    %659 = vector.multi_reduction <add>, %658, %cst_225 [1] : vector<16x16xf32> to vector<16xf32>
    %660 = vector.shape_cast %659 : vector<16xf32> to vector<16x1xf32>
    %661 = tpu.reciprocal %660 {approx = true} : vector<16x1xf32> -> vector<16x1xf32>
    %662 = vector.broadcast %661 : vector<16x1xf32> to vector<16x16xf32>
    %663 = arith.mulf %658, %662 : vector<16x16xf32>
    %cst_226 = arith.constant dense<0.000000e+00> : vector<16x8xf32>
    %664 = tpu.matmul %663, %651, %cst_226 {dimension_numbers = #tpu.dot_dimension_numbers<[1], [0], [0], [1], [0, 0, 1, 1], [], []>} : vector<16x16xf32>, vector<16x8xf32>, vector<16x8xf32> -> vector<16x8xf32>
    %c616 = arith.constant 616 : index
    %c0_227 = arith.constant 0 : index
    %665 = vector.load %arg5[%c616, %c0_227] : memref<832x128xf32, #tpu.memory_space<vmem>>, vector<8x32xf32>
    %cst_228 = arith.constant dense<0.000000e+00> : vector<16x32xf32>
    %666 = tpu.matmul %664, %665, %cst_228 {dimension_numbers = #tpu.dot_dimension_numbers<[1], [0], [0], [1], [0, 0, 1, 1], [], []>} : vector<16x8xf32>, vector<8x32xf32>, vector<16x32xf32> -> vector<16x32xf32>
    %667 = arith.addf %648, %666 : vector<16x32xf32>
    %668 = vector.extract_strided_slice %628 {offsets = [0, 16], sizes = [16, 8], strides = [1, 1]} : vector<16x32xf32> to vector<16x8xf32>
    %669 = vector.extract_strided_slice %629 {offsets = [0, 16], sizes = [16, 8], strides = [1, 1]} : vector<16x32xf32> to vector<16x8xf32>
    %670 = vector.extract_strided_slice %630 {offsets = [0, 16], sizes = [16, 8], strides = [1, 1]} : vector<16x32xf32> to vector<16x8xf32>
    %cst_229 = arith.constant dense<0.000000e+00> : vector<16x16xf32>
    %671 = tpu.matmul %668, %669, %cst_229 {dimension_numbers = #tpu.dot_dimension_numbers<[1], [1], [0], [0], [0, 0, 1, 0], [], []>} : vector<16x8xf32>, vector<16x8xf32>, vector<16x16xf32> -> vector<16x16xf32>
    %672 = arith.addf %671, %622 : vector<16x16xf32>
    %cst_230 = arith.constant dense<0xFF800000> : vector<16xf32>
    %673 = vector.multi_reduction <maximumf>, %672, %cst_230 [1] : vector<16x16xf32> to vector<16xf32>
    %674 = vector.shape_cast %673 : vector<16xf32> to vector<16x1xf32>
    %675 = vector.broadcast %674 : vector<16x1xf32> to vector<16x16xf32>
    %676 = arith.subf %672, %675 : vector<16x16xf32>
    %677 = math.exp %676 : vector<16x16xf32>
    %cst_231 = arith.constant dense<0.000000e+00> : vector<16xf32>
    %678 = vector.multi_reduction <add>, %677, %cst_231 [1] : vector<16x16xf32> to vector<16xf32>
    %679 = vector.shape_cast %678 : vector<16xf32> to vector<16x1xf32>
    %680 = tpu.reciprocal %679 {approx = true} : vector<16x1xf32> -> vector<16x1xf32>
    %681 = vector.broadcast %680 : vector<16x1xf32> to vector<16x16xf32>
    %682 = arith.mulf %677, %681 : vector<16x16xf32>
    %cst_232 = arith.constant dense<0.000000e+00> : vector<16x8xf32>
    %683 = tpu.matmul %682, %670, %cst_232 {dimension_numbers = #tpu.dot_dimension_numbers<[1], [0], [0], [1], [0, 0, 1, 1], [], []>} : vector<16x16xf32>, vector<16x8xf32>, vector<16x8xf32> -> vector<16x8xf32>
    %c624 = arith.constant 624 : index
    %c0_233 = arith.constant 0 : index
    %684 = vector.load %arg5[%c624, %c0_233] : memref<832x128xf32, #tpu.memory_space<vmem>>, vector<8x32xf32>
    %cst_234 = arith.constant dense<0.000000e+00> : vector<16x32xf32>
    %685 = tpu.matmul %683, %684, %cst_234 {dimension_numbers = #tpu.dot_dimension_numbers<[1], [0], [0], [1], [0, 0, 1, 1], [], []>} : vector<16x8xf32>, vector<8x32xf32>, vector<16x32xf32> -> vector<16x32xf32>
    %686 = arith.addf %667, %685 : vector<16x32xf32>
    %687 = vector.extract_strided_slice %628 {offsets = [0, 24], sizes = [16, 8], strides = [1, 1]} : vector<16x32xf32> to vector<16x8xf32>
    %688 = vector.extract_strided_slice %629 {offsets = [0, 24], sizes = [16, 8], strides = [1, 1]} : vector<16x32xf32> to vector<16x8xf32>
    %689 = vector.extract_strided_slice %630 {offsets = [0, 24], sizes = [16, 8], strides = [1, 1]} : vector<16x32xf32> to vector<16x8xf32>
    %cst_235 = arith.constant dense<0.000000e+00> : vector<16x16xf32>
    %690 = tpu.matmul %687, %688, %cst_235 {dimension_numbers = #tpu.dot_dimension_numbers<[1], [1], [0], [0], [0, 0, 1, 0], [], []>} : vector<16x8xf32>, vector<16x8xf32>, vector<16x16xf32> -> vector<16x16xf32>
    %691 = arith.addf %690, %622 : vector<16x16xf32>
    %cst_236 = arith.constant dense<0xFF800000> : vector<16xf32>
    %692 = vector.multi_reduction <maximumf>, %691, %cst_236 [1] : vector<16x16xf32> to vector<16xf32>
    %693 = vector.shape_cast %692 : vector<16xf32> to vector<16x1xf32>
    %694 = vector.broadcast %693 : vector<16x1xf32> to vector<16x16xf32>
    %695 = arith.subf %691, %694 : vector<16x16xf32>
    %696 = math.exp %695 : vector<16x16xf32>
    %cst_237 = arith.constant dense<0.000000e+00> : vector<16xf32>
    %697 = vector.multi_reduction <add>, %696, %cst_237 [1] : vector<16x16xf32> to vector<16xf32>
    %698 = vector.shape_cast %697 : vector<16xf32> to vector<16x1xf32>
    %699 = tpu.reciprocal %698 {approx = true} : vector<16x1xf32> -> vector<16x1xf32>
    %700 = vector.broadcast %699 : vector<16x1xf32> to vector<16x16xf32>
    %701 = arith.mulf %696, %700 : vector<16x16xf32>
    %cst_238 = arith.constant dense<0.000000e+00> : vector<16x8xf32>
    %702 = tpu.matmul %701, %689, %cst_238 {dimension_numbers = #tpu.dot_dimension_numbers<[1], [0], [0], [1], [0, 0, 1, 1], [], []>} : vector<16x16xf32>, vector<16x8xf32>, vector<16x8xf32> -> vector<16x8xf32>
    %c632 = arith.constant 632 : index
    %c0_239 = arith.constant 0 : index
    %703 = vector.load %arg5[%c632, %c0_239] : memref<832x128xf32, #tpu.memory_space<vmem>>, vector<8x32xf32>
    %cst_240 = arith.constant dense<0.000000e+00> : vector<16x32xf32>
    %704 = tpu.matmul %702, %703, %cst_240 {dimension_numbers = #tpu.dot_dimension_numbers<[1], [0], [0], [1], [0, 0, 1, 1], [], []>} : vector<16x8xf32>, vector<8x32xf32>, vector<16x32xf32> -> vector<16x32xf32>
    %705 = arith.addf %686, %704 : vector<16x32xf32>
    %c38 = arith.constant 38 : index
    %c0_241 = arith.constant 0 : index
    %706 = vector.load %arg6[%c38, %c0_241] : memref<46x128xf32, #tpu.memory_space<vmem>>, vector<1x32xf32>
    %707 = vector.broadcast %706 : vector<1x32xf32> to vector<16x32xf32>
    %708 = arith.addf %705, %707 : vector<16x32xf32>
    %709 = arith.addf %596, %708 : vector<16x32xf32>
    %cst_242 = arith.constant dense<0.000000e+00> : vector<16xf32>
    %710 = vector.multi_reduction <add>, %709, %cst_242 [1] : vector<16x32xf32> to vector<16xf32>
    %711 = vector.shape_cast %710 : vector<16xf32> to vector<16x1xf32>
    %cst_243 = arith.constant 3.200000e+01 : f32
    %712 = vector.broadcast %cst_243 : f32 to vector<16x1xf32>
    %713 = arith.divf %711, %712 : vector<16x1xf32>
    %714 = vector.broadcast %713 : vector<16x1xf32> to vector<16x32xf32>
    %715 = arith.subf %709, %714 : vector<16x32xf32>
    %716 = arith.mulf %715, %715 : vector<16x32xf32>
    %cst_244 = arith.constant dense<0.000000e+00> : vector<16xf32>
    %717 = vector.multi_reduction <add>, %716, %cst_244 [1] : vector<16x32xf32> to vector<16xf32>
    %718 = vector.shape_cast %717 : vector<16xf32> to vector<16x1xf32>
    %cst_245 = arith.constant 0.0322580636 : f32
    %719 = vector.broadcast %cst_245 : f32 to vector<16x1xf32>
    %720 = arith.mulf %718, %719 : vector<16x1xf32>
    %721 = math.sqrt %720 : vector<16x1xf32>
    %cst_246 = arith.constant 9.99999997E-7 : f32
    %722 = vector.broadcast %cst_246 : f32 to vector<16x1xf32>
    %723 = arith.addf %721, %722 : vector<16x1xf32>
    %724 = tpu.reciprocal %723 {approx = true} : vector<16x1xf32> -> vector<16x1xf32>
    %c33 = arith.constant 33 : index
    %c0_247 = arith.constant 0 : index
    %725 = vector.load %arg6[%c33, %c0_247] : memref<46x128xf32, #tpu.memory_space<vmem>>, vector<1x32xf32>
    %726 = vector.broadcast %713 : vector<16x1xf32> to vector<16x32xf32>
    %727 = arith.subf %709, %726 : vector<16x32xf32>
    %728 = vector.broadcast %725 : vector<1x32xf32> to vector<16x32xf32>
    %729 = arith.mulf %728, %727 : vector<16x32xf32>
    %730 = vector.broadcast %724 : vector<16x1xf32> to vector<16x32xf32>
    %731 = arith.mulf %729, %730 : vector<16x32xf32>
    %c34 = arith.constant 34 : index
    %c0_248 = arith.constant 0 : index
    %732 = vector.load %arg6[%c34, %c0_248] : memref<46x128xf32, #tpu.memory_space<vmem>>, vector<1x32xf32>
    %733 = vector.broadcast %732 : vector<1x32xf32> to vector<16x32xf32>
    %734 = arith.addf %731, %733 : vector<16x32xf32>
    %c0_249 = arith.constant 0 : index
    %c0_250 = arith.constant 0 : index
    %735 = vector.load %arg4[%c0_249, %c0_250] : memref<16x16xf32, #tpu.memory_space<vmem>>, vector<16x16xf32>
    %c640 = arith.constant 640 : index
    %c0_251 = arith.constant 0 : index
    %736 = vector.load %arg5[%c640, %c0_251] : memref<832x128xf32, #tpu.memory_space<vmem>>, vector<32x32xf32>
    %cst_252 = arith.constant dense<0.000000e+00> : vector<16x32xf32>
    %737 = tpu.matmul %734, %736, %cst_252 {dimension_numbers = #tpu.dot_dimension_numbers<[1], [0], [0], [1], [0, 0, 1, 1], [], []>} : vector<16x32xf32>, vector<32x32xf32>, vector<16x32xf32> -> vector<16x32xf32>
    %c39 = arith.constant 39 : index
    %c0_253 = arith.constant 0 : index
    %738 = vector.load %arg6[%c39, %c0_253] : memref<46x128xf32, #tpu.memory_space<vmem>>, vector<1x32xf32>
    %739 = vector.broadcast %738 : vector<1x32xf32> to vector<16x32xf32>
    %740 = arith.addf %737, %739 : vector<16x32xf32>
    %c672 = arith.constant 672 : index
    %c0_254 = arith.constant 0 : index
    %741 = vector.load %arg5[%c672, %c0_254] : memref<832x128xf32, #tpu.memory_space<vmem>>, vector<32x64xf32>
    %cst_255 = arith.constant dense<0.000000e+00> : vector<16x64xf32>
    %742 = tpu.matmul %327, %741, %cst_255 {dimension_numbers = #tpu.dot_dimension_numbers<[1], [0], [0], [1], [0, 0, 1, 1], [], []>} : vector<16x32xf32>, vector<32x64xf32>, vector<16x64xf32> -> vector<16x64xf32>
    %c40_256 = arith.constant 40 : index
    %c0_257 = arith.constant 0 : index
    %743 = vector.load %arg6[%c40_256, %c0_257] : memref<46x128xf32, #tpu.memory_space<vmem>>, vector<1x64xf32>
    %744 = vector.broadcast %743 : vector<1x64xf32> to vector<16x64xf32>
    %745 = arith.addf %742, %744 : vector<16x64xf32>
    %746 = vector.extract_strided_slice %745 {offsets = [0, 0], sizes = [16, 32], strides = [1, 1]} : vector<16x64xf32> to vector<16x32xf32>
    %747 = vector.extract_strided_slice %745 {offsets = [0, 32], sizes = [16, 32], strides = [1, 1]} : vector<16x64xf32> to vector<16x32xf32>
    %748 = vector.extract_strided_slice %740 {offsets = [0, 0], sizes = [16, 8], strides = [1, 1]} : vector<16x32xf32> to vector<16x8xf32>
    %749 = vector.extract_strided_slice %746 {offsets = [0, 0], sizes = [16, 8], strides = [1, 1]} : vector<16x32xf32> to vector<16x8xf32>
    %750 = vector.extract_strided_slice %747 {offsets = [0, 0], sizes = [16, 8], strides = [1, 1]} : vector<16x32xf32> to vector<16x8xf32>
    %cst_258 = arith.constant dense<0.000000e+00> : vector<16x16xf32>
    %751 = tpu.matmul %748, %749, %cst_258 {dimension_numbers = #tpu.dot_dimension_numbers<[1], [1], [0], [0], [0, 0, 1, 0], [], []>} : vector<16x8xf32>, vector<16x8xf32>, vector<16x16xf32> -> vector<16x16xf32>
    %752 = arith.addf %751, %735 : vector<16x16xf32>
    %cst_259 = arith.constant dense<0xFF800000> : vector<16xf32>
    %753 = vector.multi_reduction <maximumf>, %752, %cst_259 [1] : vector<16x16xf32> to vector<16xf32>
    %754 = vector.shape_cast %753 : vector<16xf32> to vector<16x1xf32>
    %755 = vector.broadcast %754 : vector<16x1xf32> to vector<16x16xf32>
    %756 = arith.subf %752, %755 : vector<16x16xf32>
    %757 = math.exp %756 : vector<16x16xf32>
    %cst_260 = arith.constant dense<0.000000e+00> : vector<16xf32>
    %758 = vector.multi_reduction <add>, %757, %cst_260 [1] : vector<16x16xf32> to vector<16xf32>
    %759 = vector.shape_cast %758 : vector<16xf32> to vector<16x1xf32>
    %760 = tpu.reciprocal %759 {approx = true} : vector<16x1xf32> -> vector<16x1xf32>
    %761 = vector.broadcast %760 : vector<16x1xf32> to vector<16x16xf32>
    %762 = arith.mulf %757, %761 : vector<16x16xf32>
    %cst_261 = arith.constant dense<0.000000e+00> : vector<16x8xf32>
    %763 = tpu.matmul %762, %750, %cst_261 {dimension_numbers = #tpu.dot_dimension_numbers<[1], [0], [0], [1], [0, 0, 1, 1], [], []>} : vector<16x16xf32>, vector<16x8xf32>, vector<16x8xf32> -> vector<16x8xf32>
    %c704 = arith.constant 704 : index
    %c0_262 = arith.constant 0 : index
    %764 = vector.load %arg5[%c704, %c0_262] : memref<832x128xf32, #tpu.memory_space<vmem>>, vector<8x32xf32>
    %cst_263 = arith.constant dense<0.000000e+00> : vector<16x32xf32>
    %765 = tpu.matmul %763, %764, %cst_263 {dimension_numbers = #tpu.dot_dimension_numbers<[1], [0], [0], [1], [0, 0, 1, 1], [], []>} : vector<16x8xf32>, vector<8x32xf32>, vector<16x32xf32> -> vector<16x32xf32>
    %766 = vector.extract_strided_slice %740 {offsets = [0, 8], sizes = [16, 8], strides = [1, 1]} : vector<16x32xf32> to vector<16x8xf32>
    %767 = vector.extract_strided_slice %746 {offsets = [0, 8], sizes = [16, 8], strides = [1, 1]} : vector<16x32xf32> to vector<16x8xf32>
    %768 = vector.extract_strided_slice %747 {offsets = [0, 8], sizes = [16, 8], strides = [1, 1]} : vector<16x32xf32> to vector<16x8xf32>
    %cst_264 = arith.constant dense<0.000000e+00> : vector<16x16xf32>
    %769 = tpu.matmul %766, %767, %cst_264 {dimension_numbers = #tpu.dot_dimension_numbers<[1], [1], [0], [0], [0, 0, 1, 0], [], []>} : vector<16x8xf32>, vector<16x8xf32>, vector<16x16xf32> -> vector<16x16xf32>
    %770 = arith.addf %769, %735 : vector<16x16xf32>
    %cst_265 = arith.constant dense<0xFF800000> : vector<16xf32>
    %771 = vector.multi_reduction <maximumf>, %770, %cst_265 [1] : vector<16x16xf32> to vector<16xf32>
    %772 = vector.shape_cast %771 : vector<16xf32> to vector<16x1xf32>
    %773 = vector.broadcast %772 : vector<16x1xf32> to vector<16x16xf32>
    %774 = arith.subf %770, %773 : vector<16x16xf32>
    %775 = math.exp %774 : vector<16x16xf32>
    %cst_266 = arith.constant dense<0.000000e+00> : vector<16xf32>
    %776 = vector.multi_reduction <add>, %775, %cst_266 [1] : vector<16x16xf32> to vector<16xf32>
    %777 = vector.shape_cast %776 : vector<16xf32> to vector<16x1xf32>
    %778 = tpu.reciprocal %777 {approx = true} : vector<16x1xf32> -> vector<16x1xf32>
    %779 = vector.broadcast %778 : vector<16x1xf32> to vector<16x16xf32>
    %780 = arith.mulf %775, %779 : vector<16x16xf32>
    %cst_267 = arith.constant dense<0.000000e+00> : vector<16x8xf32>
    %781 = tpu.matmul %780, %768, %cst_267 {dimension_numbers = #tpu.dot_dimension_numbers<[1], [0], [0], [1], [0, 0, 1, 1], [], []>} : vector<16x16xf32>, vector<16x8xf32>, vector<16x8xf32> -> vector<16x8xf32>
    %c712 = arith.constant 712 : index
    %c0_268 = arith.constant 0 : index
    %782 = vector.load %arg5[%c712, %c0_268] : memref<832x128xf32, #tpu.memory_space<vmem>>, vector<8x32xf32>
    %cst_269 = arith.constant dense<0.000000e+00> : vector<16x32xf32>
    %783 = tpu.matmul %781, %782, %cst_269 {dimension_numbers = #tpu.dot_dimension_numbers<[1], [0], [0], [1], [0, 0, 1, 1], [], []>} : vector<16x8xf32>, vector<8x32xf32>, vector<16x32xf32> -> vector<16x32xf32>
    %784 = arith.addf %765, %783 : vector<16x32xf32>
    %785 = vector.extract_strided_slice %740 {offsets = [0, 16], sizes = [16, 8], strides = [1, 1]} : vector<16x32xf32> to vector<16x8xf32>
    %786 = vector.extract_strided_slice %746 {offsets = [0, 16], sizes = [16, 8], strides = [1, 1]} : vector<16x32xf32> to vector<16x8xf32>
    %787 = vector.extract_strided_slice %747 {offsets = [0, 16], sizes = [16, 8], strides = [1, 1]} : vector<16x32xf32> to vector<16x8xf32>
    %cst_270 = arith.constant dense<0.000000e+00> : vector<16x16xf32>
    %788 = tpu.matmul %785, %786, %cst_270 {dimension_numbers = #tpu.dot_dimension_numbers<[1], [1], [0], [0], [0, 0, 1, 0], [], []>} : vector<16x8xf32>, vector<16x8xf32>, vector<16x16xf32> -> vector<16x16xf32>
    %789 = arith.addf %788, %735 : vector<16x16xf32>
    %cst_271 = arith.constant dense<0xFF800000> : vector<16xf32>
    %790 = vector.multi_reduction <maximumf>, %789, %cst_271 [1] : vector<16x16xf32> to vector<16xf32>
    %791 = vector.shape_cast %790 : vector<16xf32> to vector<16x1xf32>
    %792 = vector.broadcast %791 : vector<16x1xf32> to vector<16x16xf32>
    %793 = arith.subf %789, %792 : vector<16x16xf32>
    %794 = math.exp %793 : vector<16x16xf32>
    %cst_272 = arith.constant dense<0.000000e+00> : vector<16xf32>
    %795 = vector.multi_reduction <add>, %794, %cst_272 [1] : vector<16x16xf32> to vector<16xf32>
    %796 = vector.shape_cast %795 : vector<16xf32> to vector<16x1xf32>
    %797 = tpu.reciprocal %796 {approx = true} : vector<16x1xf32> -> vector<16x1xf32>
    %798 = vector.broadcast %797 : vector<16x1xf32> to vector<16x16xf32>
    %799 = arith.mulf %794, %798 : vector<16x16xf32>
    %cst_273 = arith.constant dense<0.000000e+00> : vector<16x8xf32>
    %800 = tpu.matmul %799, %787, %cst_273 {dimension_numbers = #tpu.dot_dimension_numbers<[1], [0], [0], [1], [0, 0, 1, 1], [], []>} : vector<16x16xf32>, vector<16x8xf32>, vector<16x8xf32> -> vector<16x8xf32>
    %c720 = arith.constant 720 : index
    %c0_274 = arith.constant 0 : index
    %801 = vector.load %arg5[%c720, %c0_274] : memref<832x128xf32, #tpu.memory_space<vmem>>, vector<8x32xf32>
    %cst_275 = arith.constant dense<0.000000e+00> : vector<16x32xf32>
    %802 = tpu.matmul %800, %801, %cst_275 {dimension_numbers = #tpu.dot_dimension_numbers<[1], [0], [0], [1], [0, 0, 1, 1], [], []>} : vector<16x8xf32>, vector<8x32xf32>, vector<16x32xf32> -> vector<16x32xf32>
    %803 = arith.addf %784, %802 : vector<16x32xf32>
    %804 = vector.extract_strided_slice %740 {offsets = [0, 24], sizes = [16, 8], strides = [1, 1]} : vector<16x32xf32> to vector<16x8xf32>
    %805 = vector.extract_strided_slice %746 {offsets = [0, 24], sizes = [16, 8], strides = [1, 1]} : vector<16x32xf32> to vector<16x8xf32>
    %806 = vector.extract_strided_slice %747 {offsets = [0, 24], sizes = [16, 8], strides = [1, 1]} : vector<16x32xf32> to vector<16x8xf32>
    %cst_276 = arith.constant dense<0.000000e+00> : vector<16x16xf32>
    %807 = tpu.matmul %804, %805, %cst_276 {dimension_numbers = #tpu.dot_dimension_numbers<[1], [1], [0], [0], [0, 0, 1, 0], [], []>} : vector<16x8xf32>, vector<16x8xf32>, vector<16x16xf32> -> vector<16x16xf32>
    %808 = arith.addf %807, %735 : vector<16x16xf32>
    %cst_277 = arith.constant dense<0xFF800000> : vector<16xf32>
    %809 = vector.multi_reduction <maximumf>, %808, %cst_277 [1] : vector<16x16xf32> to vector<16xf32>
    %810 = vector.shape_cast %809 : vector<16xf32> to vector<16x1xf32>
    %811 = vector.broadcast %810 : vector<16x1xf32> to vector<16x16xf32>
    %812 = arith.subf %808, %811 : vector<16x16xf32>
    %813 = math.exp %812 : vector<16x16xf32>
    %cst_278 = arith.constant dense<0.000000e+00> : vector<16xf32>
    %814 = vector.multi_reduction <add>, %813, %cst_278 [1] : vector<16x16xf32> to vector<16xf32>
    %815 = vector.shape_cast %814 : vector<16xf32> to vector<16x1xf32>
    %816 = tpu.reciprocal %815 {approx = true} : vector<16x1xf32> -> vector<16x1xf32>
    %817 = vector.broadcast %816 : vector<16x1xf32> to vector<16x16xf32>
    %818 = arith.mulf %813, %817 : vector<16x16xf32>
    %cst_279 = arith.constant dense<0.000000e+00> : vector<16x8xf32>
    %819 = tpu.matmul %818, %806, %cst_279 {dimension_numbers = #tpu.dot_dimension_numbers<[1], [0], [0], [1], [0, 0, 1, 1], [], []>} : vector<16x16xf32>, vector<16x8xf32>, vector<16x8xf32> -> vector<16x8xf32>
    %c728 = arith.constant 728 : index
    %c0_280 = arith.constant 0 : index
    %820 = vector.load %arg5[%c728, %c0_280] : memref<832x128xf32, #tpu.memory_space<vmem>>, vector<8x32xf32>
    %cst_281 = arith.constant dense<0.000000e+00> : vector<16x32xf32>
    %821 = tpu.matmul %819, %820, %cst_281 {dimension_numbers = #tpu.dot_dimension_numbers<[1], [0], [0], [1], [0, 0, 1, 1], [], []>} : vector<16x8xf32>, vector<8x32xf32>, vector<16x32xf32> -> vector<16x32xf32>
    %822 = arith.addf %803, %821 : vector<16x32xf32>
    %c41 = arith.constant 41 : index
    %c0_282 = arith.constant 0 : index
    %823 = vector.load %arg6[%c41, %c0_282] : memref<46x128xf32, #tpu.memory_space<vmem>>, vector<1x32xf32>
    %824 = vector.broadcast %823 : vector<1x32xf32> to vector<16x32xf32>
    %825 = arith.addf %822, %824 : vector<16x32xf32>
    %826 = arith.addf %709, %825 : vector<16x32xf32>
    %cst_283 = arith.constant dense<0.000000e+00> : vector<16xf32>
    %827 = vector.multi_reduction <add>, %826, %cst_283 [1] : vector<16x32xf32> to vector<16xf32>
    %828 = vector.shape_cast %827 : vector<16xf32> to vector<16x1xf32>
    %cst_284 = arith.constant 3.200000e+01 : f32
    %829 = vector.broadcast %cst_284 : f32 to vector<16x1xf32>
    %830 = arith.divf %828, %829 : vector<16x1xf32>
    %831 = vector.broadcast %830 : vector<16x1xf32> to vector<16x32xf32>
    %832 = arith.subf %826, %831 : vector<16x32xf32>
    %833 = arith.mulf %832, %832 : vector<16x32xf32>
    %cst_285 = arith.constant dense<0.000000e+00> : vector<16xf32>
    %834 = vector.multi_reduction <add>, %833, %cst_285 [1] : vector<16x32xf32> to vector<16xf32>
    %835 = vector.shape_cast %834 : vector<16xf32> to vector<16x1xf32>
    %cst_286 = arith.constant 0.0322580636 : f32
    %836 = vector.broadcast %cst_286 : f32 to vector<16x1xf32>
    %837 = arith.mulf %835, %836 : vector<16x1xf32>
    %838 = math.sqrt %837 : vector<16x1xf32>
    %cst_287 = arith.constant 9.99999997E-7 : f32
    %839 = vector.broadcast %cst_287 : f32 to vector<16x1xf32>
    %840 = arith.addf %838, %839 : vector<16x1xf32>
    %841 = tpu.reciprocal %840 {approx = true} : vector<16x1xf32> -> vector<16x1xf32>
    %c35 = arith.constant 35 : index
    %c0_288 = arith.constant 0 : index
    %842 = vector.load %arg6[%c35, %c0_288] : memref<46x128xf32, #tpu.memory_space<vmem>>, vector<1x32xf32>
    %843 = vector.broadcast %830 : vector<16x1xf32> to vector<16x32xf32>
    %844 = arith.subf %826, %843 : vector<16x32xf32>
    %845 = vector.broadcast %842 : vector<1x32xf32> to vector<16x32xf32>
    %846 = arith.mulf %845, %844 : vector<16x32xf32>
    %847 = vector.broadcast %841 : vector<16x1xf32> to vector<16x32xf32>
    %848 = arith.mulf %846, %847 : vector<16x32xf32>
    %c36 = arith.constant 36 : index
    %c0_289 = arith.constant 0 : index
    %849 = vector.load %arg6[%c36, %c0_289] : memref<46x128xf32, #tpu.memory_space<vmem>>, vector<1x32xf32>
    %850 = vector.broadcast %849 : vector<1x32xf32> to vector<16x32xf32>
    %851 = arith.addf %848, %850 : vector<16x32xf32>
    %c736 = arith.constant 736 : index
    %c0_290 = arith.constant 0 : index
    %852 = vector.load %arg5[%c736, %c0_290] : memref<832x128xf32, #tpu.memory_space<vmem>>, vector<32x64xf32>
    %cst_291 = arith.constant dense<0.000000e+00> : vector<16x64xf32>
    %853 = tpu.matmul %851, %852, %cst_291 {dimension_numbers = #tpu.dot_dimension_numbers<[1], [0], [0], [1], [0, 0, 1, 1], [], []>} : vector<16x32xf32>, vector<32x64xf32>, vector<16x64xf32> -> vector<16x64xf32>
    %c42 = arith.constant 42 : index
    %c0_292 = arith.constant 0 : index
    %854 = vector.load %arg6[%c42, %c0_292] : memref<46x128xf32, #tpu.memory_space<vmem>>, vector<1x64xf32>
    %855 = vector.broadcast %854 : vector<1x64xf32> to vector<16x64xf32>
    %856 = arith.addf %853, %855 : vector<16x64xf32>
    %cst_293 = arith.constant 0.000000e+00 : f32
    %857 = vector.broadcast %cst_293 : f32 to vector<16x64xf32>
    %858 = arith.maximumf %856, %857 : vector<16x64xf32>
    %c768 = arith.constant 768 : index
    %c0_294 = arith.constant 0 : index
    %859 = vector.load %arg5[%c768, %c0_294] : memref<832x128xf32, #tpu.memory_space<vmem>>, vector<64x32xf32>
    %cst_295 = arith.constant dense<0.000000e+00> : vector<16x32xf32>
    %860 = tpu.matmul %858, %859, %cst_295 {dimension_numbers = #tpu.dot_dimension_numbers<[1], [0], [0], [1], [0, 0, 1, 1], [], []>} : vector<16x64xf32>, vector<64x32xf32>, vector<16x32xf32> -> vector<16x32xf32>
    %c43 = arith.constant 43 : index
    %c0_296 = arith.constant 0 : index
    %861 = vector.load %arg6[%c43, %c0_296] : memref<46x128xf32, #tpu.memory_space<vmem>>, vector<1x32xf32>
    %862 = vector.broadcast %861 : vector<1x32xf32> to vector<16x32xf32>
    %863 = arith.addf %860, %862 : vector<16x32xf32>
    %864 = arith.addf %826, %863 : vector<16x32xf32>
    %cst_297 = arith.constant dense<0.000000e+00> : vector<16xf32>
    %865 = vector.multi_reduction <add>, %864, %cst_297 [1] : vector<16x32xf32> to vector<16xf32>
    %866 = vector.shape_cast %865 : vector<16xf32> to vector<16x1xf32>
    %cst_298 = arith.constant 3.200000e+01 : f32
    %867 = vector.broadcast %cst_298 : f32 to vector<16x1xf32>
    %868 = arith.divf %866, %867 : vector<16x1xf32>
    %869 = vector.broadcast %868 : vector<16x1xf32> to vector<16x32xf32>
    %870 = arith.subf %864, %869 : vector<16x32xf32>
    %871 = arith.mulf %870, %870 : vector<16x32xf32>
    %cst_299 = arith.constant dense<0.000000e+00> : vector<16xf32>
    %872 = vector.multi_reduction <add>, %871, %cst_299 [1] : vector<16x32xf32> to vector<16xf32>
    %873 = vector.shape_cast %872 : vector<16xf32> to vector<16x1xf32>
    %cst_300 = arith.constant 0.0322580636 : f32
    %874 = vector.broadcast %cst_300 : f32 to vector<16x1xf32>
    %875 = arith.mulf %873, %874 : vector<16x1xf32>
    %876 = math.sqrt %875 : vector<16x1xf32>
    %cst_301 = arith.constant 9.99999997E-7 : f32
    %877 = vector.broadcast %cst_301 : f32 to vector<16x1xf32>
    %878 = arith.addf %876, %877 : vector<16x1xf32>
    %879 = tpu.reciprocal %878 {approx = true} : vector<16x1xf32> -> vector<16x1xf32>
    %c44 = arith.constant 44 : index
    %c0_302 = arith.constant 0 : index
    %880 = vector.load %arg6[%c44, %c0_302] : memref<46x128xf32, #tpu.memory_space<vmem>>, vector<1x32xf32>
    %881 = vector.broadcast %868 : vector<16x1xf32> to vector<16x32xf32>
    %882 = arith.subf %864, %881 : vector<16x32xf32>
    %883 = vector.broadcast %880 : vector<1x32xf32> to vector<16x32xf32>
    %884 = arith.mulf %883, %882 : vector<16x32xf32>
    %885 = vector.broadcast %879 : vector<16x1xf32> to vector<16x32xf32>
    %886 = arith.mulf %884, %885 : vector<16x32xf32>
    %c45 = arith.constant 45 : index
    %c0_303 = arith.constant 0 : index
    %887 = vector.load %arg6[%c45, %c0_303] : memref<46x128xf32, #tpu.memory_space<vmem>>, vector<1x32xf32>
    %888 = vector.broadcast %887 : vector<1x32xf32> to vector<16x32xf32>
    %889 = arith.addf %886, %888 : vector<16x32xf32>
    %c0_304 = arith.constant 0 : index
    %c0_305 = arith.constant 0 : index
    %890 = vector.load %arg7[%c0_304, %c0_305] : memref<16x32xf32, #tpu.memory_space<vmem>>, vector<16x32xf32>
    tpu.vector_store %arg7[%c0_304, %c0_305], %889 {strides = array<i32>} : memref<16x32xf32, #tpu.memory_space<vmem>>, vector<16x32xf32>,
    return
  }
}

</mosaic_0001>

<bundles_post_ra>
// kernel: encoder_decoder_forward.1
= control target key start
LH: loop header
LB: loop body
LE: loop exit
PB: predicated region body
PF: predicated region fallthrough
CT: control target
= control target key end

     0   :  { %12 = vsyncpa [#allocation3], 0  ;;  %s12489_s0 = inlined_call_operand.vmem [shape: f32[16,32], index: 0, kind: input, shape index: {}]   ;;  %s12490_s1 = inlined_call_operand.vmem [shape: f32[16,32], index: 1, kind: input, shape index: {}]   ;;  %s12491_s2 = inlined_call_operand.vmem [shape: f32[16,16], index: 2, kind: input, shape index: {}, may-alias: {2,4}]   ;;  %s12492_s3 = inlined_call_operand.vmem [shape: f32[16,16], index: 3, kind: input, shape index: {}]   ;;  %s12493_s4 = inlined_call_operand.vmem [shape: f32[16,16], index: 4, kind: input, shape index: {}, may-alias: {2,4}]   ;;  %s12494_s5 = inlined_call_operand.hbm [shape: f32[832,128], index: 5, kind: input, shape index: {}]   ;;  %s12495_s6 = inlined_call_operand.vmem [shape: f32[46,128], index: 6, kind: input, shape index: {}]   ;;  %s12496_s7 = inlined_call_operand.hbm [shape: f32[16,32], index: 7, kind: output, shape index: {}]  }
   0x1   :  { %13 = vsyncpa [#allocation4], 0  ;;  %s11352_s24 = smov [#allocation2]   ;;  %s11304_s28 = scalar_lea.hbm %s12494_s5, 13312 }
   0x2   :  { %s29_s25 = sshll.u32 %s11352_s24, 4  ;;  %p11305_p0 = scmp.ne.s32.totalorder %s12494_s5, %s11304_s28  ;;  %s30_s25 = int_to_ptr.vmem [resolvable:$true] %s29_s25 }
   0x3   :  { %p11308_p1 = scmp.lt.u32.totalorder %s11304_s28, %s12494_s5 }
   0x5   :  { %p11310_p2 = pnand %p11308_p1, %p11305_p0 }
   0x7   :  { %11313 = shalt.err (!%p11310_p2)
}
   0x8   :  { %s11314_s10 = scalar_lea.vmem %s30_s25, 13312  ;;  %p11319_p4 = scmp.lt.s32.totalorder %s30_s25, %s30_s25 }
   0x9   :  { %p11315_p3 = scmp.ne.s32.totalorder %s30_s25, %s11314_s10  ;;  %p11320_p5 = scmp.lt.s32.totalorder %s11314_s10, %s11314_s10 }
   0xb   :  { %p11321_p6 = por %p11320_p5, %p11319_p4 }
   0xd   :  { %p11322_p7 = pnand %p11321_p6, %p11315_p3 }
   0xf   :  { %11325 = shalt.err (!%p11322_p7)
}
  0x10   :  { %s11353_s11 = smov 128   ;;  %s11354_s12 = smov 8  }
  0x11   :  { %35 = dma.hbm_to_vmem [thread:$0]  %s12494_s5, 13312, %s30_s25, [#allocation3], %s11353_s11, %s11353_s11, %s11354_s12  }
  0x12   :  { %11348 = dma.done.wait [#allocation3], 13312  }
  0x13   :  { %11349 = vsyncadd [#allocation3], 4294953984  ;;  %vm43_vm0 = vcmask 261120   ;;  %v11425_v0 = vld [vmem:[%s12489_s0] sm:$0xff]  ;;  %v11430_v1 = vld [vmem:[%s12489_s0 + $0x8] sm:$0xff]  ;;  %vm197_vm5 = vcmask 64512  }
  0x14   :  { %v44_v2 = vsel %vm43_vm0, %v11425_v0, 0.0  ;;  %v47_v3 = vsel %vm43_vm0, %v11430_v1, 0.0  ;;  %v101_v14 = vld [vmem:[#allocation2] sm:$0xff]  ;;  %v102_v15 = vld [vmem:[#allocation2 + $0x8] sm:$0xff]  ;;  %v103_v16 = vld [vmem:[#allocation2 + $0x10] sm:$0xff]  ;;  %s11355_s23 = smov 88  }
  0x15   :  { %45 = vadd.xlane.f32.xlu0 %v44_v2  ;;  %v10329_v17 = vpack.c.bf16 %v102_v15, %v101_v14  ;;  %v104_v18 = vld [vmem:[#allocation2 + $0x18] sm:$0xff]  ;;  %v9019_v36 = vld [vmem:[%s12495_s6] ss:$0 sm:$0xff]  ;;  %v9020_v39 = vld [vmem:[%s12495_s6 + $0x1] ss:$0 sm:$0xff]  ;;  %s11356_s24 = smov 96  }
  0x16   :  { %v10333_v19 = vpack.c.bf16 %v104_v18, %v103_v16  ;;  %v9021_v46 = vld [vmem:[%s12495_s6 + $0x4] ss:$0 sm:$0xff]  ;;  %s11357_s25 = smov 120   ;;  %s11358_s26 = smov 80   ;;  %vm11477_vm6 = vmpackc.low %vm197_vm5, %vm197_vm5  ;;  %vm281_vm7 = vcmask 130048   ;;  %vm1491_vm12 = vcmask 523264  }
  0x17   :  { %10330 = vmatprep.subr.bf16.mxu1 %v10329_v17  ;;  %s11359_s27 = smov 112   ;;  %s11360_s9 = smov 64  }
  0x18   :  { %10332 = vmatpush3.bf16.msra.mxu1 %v10329_v17  ;;  %s11361_s10 = smov 72   ;;  %s11362_s13 = smov 104  }
  0x19   :  { %48 = vadd.xlane.f32.xlu0 %v47_v3  ;;  %10334 = vmatprep.subr.bf16.mxu1 %v10333_v19  ;;  %s11363_s14 = smov 56   ;;  %s11364_s15 = smov 48  }
  0x1a   :  { %s11365_s16 = smov 40  }
  0x1c   :  { %10336 = vmatpush3.bf16.msra.mxu1 %v10333_v19 }
  0xa2   :  { %v46_v4 = vpop.xlane.xlu0 %45 }
  0xa3   :  { %v51_v5 = vmul.f32 0.03125, %v46_v4 }
  0xa5   :  { %v53_v6 = vsub.f32 %v11425_v0, %v51_v5 }
  0xa6   :  { %v49_v7 = vpop.xlane.xlu0 %48 }
  0xa7   :  { %v52_v8 = vmul.f32 0.03125, %v49_v7  ;;  %v55_v9 = vmul.f32 %v53_v6, %v53_v6  ;;  %v88_v37 = vmul.f32 %v9019_v36, %v53_v6  ;;  %v11502_v7 = vld [vmem:[%s12491_s2 + $0x8] sm:$0xff] }
  0xa9   :  { %v54_v10 = vsub.f32 %v11430_v1, %v52_v8  ;;  %v57_v11 = vsel %vm43_vm0, %v55_v9, 0.0  ;;  %v11507_v8 = vld [vmem:[%s12491_s2] sm:$0xff] }
  0xaa   :  { %58 = vadd.xlane.f32.xlu1 %v57_v11 }
  0xab   :  { %v56_v12 = vmul.f32 %v54_v10, %v54_v10  ;;  %v89_v41 = vmul.f32 %v9019_v36, %v54_v10 }
  0xad   :  { %v60_v13 = vsel %vm43_vm0, %v56_v12, 0.0 }
  0xae   :  { %61 = vadd.xlane.f32.xlu1 %v60_v13 }
 0x137   :  { %v59_v20 = vpop.xlane.xlu1 %58 }
 0x138   :  { %v63_v21 = vmul.f32 0.032258064, %v59_v20 }
 0x13a   :  { %11010 = vrsqrt.f32 %v63_v21  ;;  %vm67_vm1 = vcmp.eq.f32.partialorder %v63_v21, inf  ;;  %v70_v26 = vand.u32 2147483648, %v63_v21  ;;  %vm69_vm2 = vcmp.eq.f32.partialorder %v63_v21, 0.0 }
 0x13b   :  { %v62_v22 = vpop.xlane.xlu1 %61 }
 0x13c   :  { %v64_v23 = vmul.f32 0.032258064, %v62_v22 }
 0x13e   :  { %11012 = vrsqrt.f32 %v64_v23  ;;  %vm74_vm3 = vcmp.eq.f32.partialorder %v64_v23, inf  ;;  %v77_v32 = vand.u32 2147483648, %v64_v23  ;;  %vm76_vm4 = vcmp.eq.f32.partialorder %v64_v23, 0.0 }
 0x144   :  { %v11011_v24 = vpop.eup %11010 }
 0x145   :  { %v66_v25 = vmul.f32 %v11011_v24, %v63_v21 }
 0x147   :  { %v68_v27 = vsel %vm67_vm1, %v63_v21, %v66_v25 }
 0x148   :  { %v11013_v28 = vpop.eup %11012  ;;  %v71_v29 = vsel %vm69_vm2, %v70_v26, %v68_v27 }
 0x149   :  { %v73_v30 = vmul.f32 %v11013_v28, %v64_v23  ;;  %v79_v31 = vadd.f32 1e-06, %v71_v29 }
 0x14b   :  { %v75_v33 = vsel %vm74_vm3, %v64_v23, %v73_v30  ;;  %11014 = vrcp.f32 %v79_v31 }
 0x14c   :  { %v78_v34 = vsel %vm76_vm4, %v77_v32, %v75_v33 }
 0x14d   :  { %v80_v35 = vadd.f32 1e-06, %v78_v34 }
 0x14f   :  { %11016 = vrcp.f32 %v80_v35 }
 0x155   :  { %v11015_v38 = vpop.eup %11014 }
 0x156   :  { %v90_v40 = vmul.f32 %v11015_v38, %v88_v37 }
 0x158   :  { %v97_v42 = vadd.f32 %v9020_v39, %v90_v40 }
 0x159   :  { %v11017_v43 = vpop.eup %11016 }
 0x15a   :  { %v91_v44 = vmul.f32 %v11017_v43, %v89_v41  ;;  %9673 = vmatprep.mubr.msk.f32.mxu1 %vm43_vm0, %v97_v42 }
 0x15c   :  { %v98_v45 = vadd.f32 %v9020_v39, %v91_v44 }
 0x15e   :  { %9674 = vmatmul.mubr.msk.f32.vlgmr.msra.gmra.mrb[0].mxu1 %vm43_vm0, %v98_v45 }
 0x231   :  { %v9675_v47 = vpop.f32.mrb[0].mxu1 }
 0x232   :  { %v11451_v48 = vadd.f32 %v9675_v47, %v9021_v46  ;;  %v182_v49 = vpop.f32.mrb[1].mxu1 }
 0x233   :  { %v11453_v50 = vadd.f32 %v9021_v46, %v182_v49 }
 0x235   :  { %9680 = vmatprep.mubr.msk.f32.mxu1 %vm197_vm5, %v11453_v50  ;;  %v11459_v51 = vpack.i.bf16 %v11451_v48, %v11453_v50 }
 0x237   :  { %10786 = vrot.lane.b32.xlu1 %v11459_v51, %s11355_s23  ;;  %10781 = vrot.lane.b32.xlu0 %v11459_v51, %s11356_s24 }
 0x23b   :  { %392 = vrot.lane.b32.xlu1 %v11453_v50, %s11357_s25  ;;  %10791 = vrot.lane.b32.xlu0 %v11459_v51, %s11358_s26 }
 0x23f   :  { %394 = vrot.lane.b32.xlu1 %v11451_v48, %s11357_s25  ;;  %757 = vrot.lane.b32.xlu0 %v11451_v48, %s11359_s27 }
 0x243   :  { %755 = vrot.lane.b32.xlu1 %v11453_v50, %s11359_s27 }
 0x2a9   :  { %v10787_v52 = vpop.permute.xlu1 %10786  ;;  %v10782_v53 = vpop.permute.xlu0 %10781 }
 0x2aa   :  { %v10789_v54 = vunpack.i.h.bf16 %v10787_v52  ;;  %v10788_v55 = vunpack.i.l.bf16 %v10787_v52  ;;  %v10784_v56 = vunpack.i.h.bf16 %v10782_v53  ;;  %v10783_v57 = vunpack.i.l.bf16 %v10782_v53 }
 0x2ac   :  { %v10337_v59 = vpack.c.bf16 %v10784_v56, %v10783_v57  ;;  %v10347_v60 = vpack.c.bf16 %v10789_v54, %v10788_v55 }
 0x2ad   :  { %v10792_v61 = vpop.permute.xlu0 %10791  ;;  %v393_v62 = vpop.permute.xlu1 %392 }
 0x2ae   :  { %10339 = vmatprep.subr.msk.bf16.mxu1 %vm11477_vm6, %v10337_v59  ;;  %v10794_v63 = vunpack.i.h.bf16 %v10792_v61  ;;  %v10793_v2 = vunpack.i.l.bf16 %v10792_v61 }
 0x2af   :  { %10342 = vmatpush3.bf16.xpose.msk.msra.mxu1 %vm11477_vm6, %v10337_v59 }
 0x2b0   :  { %10349 = vmatprep.subr.msk.bf16.mxu1 %vm11477_vm6, %v10347_v60  ;;  %v10357_v3 = vpack.c.bf16 %v10794_v63, %v10793_v2 }
 0x2b1   :  { %v395_v4 = vpop.permute.xlu1 %394  ;;  %v758_v6 = vpop.permute.xlu0 %757 }
 0x2b5   :  { %v756_v5 = vpop.permute.xlu1 %755 }
 0x2b6   :  { %9681 = vmatmul.mubr.msk.f32.vlgmr.msra.gmra.mrb[2].mxu1 %vm197_vm5, %v11451_v48 }
 0x2b7   :  { %10352 = vmatpush3.bf16.xpose.msk.msra.mxu1 %vm11477_vm6, %v10347_v60  ;;  %9694 = vmatprep.mubr.msk.f32.mxu1 %vm197_vm5, %v393_v62 }
 0x2b8   :  { %10359 = vmatprep.subr.msk.bf16.mxu1 %vm11477_vm6, %v10357_v3 }
 0x2be   :  { %9695 = vmatmul.mubr.msk.f32.vlgmr.msra.gmra.mrb[4].mxu1 %vm197_vm5, %v395_v4 }
 0x2bf   :  { %10362 = vmatpush3.bf16.xpose.msk.msra.mxu1 %vm11477_vm6, %v10357_v3  ;;  %9718 = vmatprep.mubr.msk.f32.mxu1 %vm197_vm5, %v756_v5 }
 0x2c6   :  { %9719 = vmatmul.mubr.msk.f32.vlgmr.msra.gmra.mrb[6].mxu1 %vm197_vm5, %v758_v6 }
 0x389   :  { %v9682_v9 = vpop.f32.mrb[2].mxu1 }
 0x38a   :  { %v278_v10 = vadd.f32 %v9682_v9, %v11502_v7  ;;  %v272_v11 = vpop.f32.mrb[3].mxu1 }
 0x38b   :  { %v273_v12 = vadd.f32 %v272_v11, %v11507_v8 }
 0x38c   :  { %v285_v13 = vsel %vm281_vm7, %v278_v10, -inf }
 0x38d   :  { %286 = vmax.xlane.f32.xlu0 %v285_v13  ;;  %v282_v14 = vsel %vm281_vm7, %v273_v12, -inf }
 0x38e   :  { %283 = vmax.xlane.f32.xlu1 %v282_v14 }
 0x391   :  { %v9696_v15 = vpop.f32.mrb[4].mxu1 }
 0x392   :  { %v474_v16 = vpop.f32.mrb[5].mxu1  ;;  %v480_v18 = vadd.f32 %v9696_v15, %v11502_v7 }
 0x393   :  { %v475_v17 = vadd.f32 %v474_v16, %v11507_v8 }
 0x394   :  { %v486_v21 = vsel %vm281_vm7, %v480_v18, -inf }
 0x395   :  { %v483_v19 = vsel %vm281_vm7, %v475_v17, -inf }
 0x396   :  { %484 = vmax.xlane.f32.xlu0 %v483_v19 }
 0x399   :  { %v9720_v20 = vpop.f32.mrb[6].mxu1 }
 0x39a   :  { %v837_v22 = vpop.f32.mrb[7].mxu1  ;;  %487 = vmax.xlane.f32.xlu0 %v486_v21  ;;  %v843_v45 = vadd.f32 %v9720_v20, %v11502_v7 }
 0x39b   :  { %v838_v43 = vadd.f32 %v837_v22, %v11507_v8 }
 0x39c   :  { %v849_v46 = vsel %vm281_vm7, %v843_v45, -inf }
 0x39d   :  { %v846_v44 = vsel %vm281_vm7, %v838_v43, -inf }
 0x41a   :  { %v287_v23 = vpop.xlane.xlu0 %286 }
 0x41b   :  { %v289_v24 = vsub.f32 %v278_v10, %v287_v23  ;;  %v284_v25 = vpop.xlane.xlu1 %283 }
 0x41c   :  { %v288_v26 = vsub.f32 %v273_v12, %v284_v25  ;;  %v592_v25 = vld [vmem:[#allocation2 + $0x28] sm:$0xff] }
 0x41d   :  { %v292_v27 = vmul.f32 1.442695, %v289_v24 }
 0x41e   :  { %v290_v28 = vmul.f32 1.442695, %v288_v26  ;;  %v391_v26 = vld [vmem:[#allocation2 + $0x20] sm:$0xff] }
 0x41f   :  { %11018 = vpow2.f32 %v292_v27 }
 0x420   :  { %11020 = vpow2.f32 %v290_v28 }
 0x423   :  { %v485_v29 = vpop.xlane.xlu0 %484 }
 0x424   :  { %v489_v30 = vsub.f32 %v475_v17, %v485_v29 }
 0x426   :  { %v491_v31 = vmul.f32 1.442695, %v489_v30 }
 0x427   :  { %v488_v32 = vpop.xlane.xlu0 %487 }
 0x428   :  { %11022 = vpow2.f32 %v491_v31  ;;  %v490_v33 = vsub.f32 %v480_v18, %v488_v32 }
 0x429   :  { %v11019_v34 = vpop.eup %11018 }
 0x42a   :  { %v11021_v35 = vpop.eup %11020  ;;  %v493_v36 = vmul.f32 1.442695, %v490_v33  ;;  %v297_v37 = vsel %vm281_vm7, %v11019_v34, 0.0 }
 0x42b   :  { %298 = vadd.xlane.f32.xlu0 %v297_v37  ;;  %v294_v38 = vsel %vm281_vm7, %v11021_v35, 0.0 }
 0x42c   :  { %11024 = vpow2.f32 %v493_v36  ;;  %295 = vadd.xlane.f32.xlu1 %v294_v38 }
 0x432   :  { %v11023_v39 = vpop.eup %11022 }
 0x433   :  { %v495_v40 = vsel %vm281_vm7, %v11023_v39, 0.0 }
 0x434   :  { %496 = vadd.xlane.f32.xlu1 %v495_v40 }
 0x436   :  { %v11025_v41 = vpop.eup %11024 }
 0x437   :  { %v498_v42 = vsel %vm281_vm7, %v11025_v41, 0.0 }
 0x438   :  { %499 = vadd.xlane.f32.xlu0 %v498_v42 }
 0x445   :  { %10796 = vrot.lane.b32.xlu1 %v11459_v51, %s11360_s9 }
 0x449   :  { %10806 = vrot.lane.b32.xlu1 %v11459_v51, %s11361_s10 }
 0x44d   :  { %1039 = vrot.lane.b32.xlu1 %v11453_v50, %s11362_s13 }
 0x44e   :  { %10801 = vrot.lane.b32.xlu0 %v11459_v51, %s11363_s14 }
 0x451   :  { %1041 = vrot.lane.b32.xlu1 %v11451_v48, %s11362_s13 }
 0x46d   :  { %847 = vmax.xlane.f32.xlu0 %v846_v44 }
 0x475   :  { %850 = vmax.xlane.f32.xlu1 %v849_v46 }
 0x4b8   :  { %v299_v49 = vpop.xlane.xlu0 %298 }
 0x4b9   :  { %v296_v47 = vpop.xlane.xlu1 %295 }
 0x4ba   :  { %11026 = vrcp.f32 %v296_v47  ;;  %v955_v47 = vld [vmem:[#allocation2 + $0x30] sm:$0xff] }
 0x4bb   :  { %11028 = vrcp.f32 %v299_v49 }
 0x4c1   :  { %v497_v50 = vpop.xlane.xlu1 %496 }
 0x4c2   :  { %11030 = vrcp.f32 %v497_v50 }
 0x4c4   :  { %v11027_v52 = vpop.eup %11026 }
 0x4c5   :  { %v500_v53 = vpop.xlane.xlu0 %499  ;;  %v10797_v54 = vpop.permute.xlu1 %10796  ;;  %v302_v48 = vmul.f32 %v11027_v52, %v11021_v35 }
 0x4c6   :  { %11032 = vrcp.f32 %v500_v53  ;;  %v10799_v55 = vunpack.i.h.bf16 %v10797_v54  ;;  %v10798_v56 = vunpack.i.l.bf16 %v10797_v54  ;;  %v11029_v59 = vpop.eup %11028 }
 0x4c7   :  { %9687 = vmatprep.mubr.msk.f32.mxu0 %vm281_vm7, %v302_v48  ;;  %v303_v6 = vmul.f32 %v11029_v59, %v11019_v34 }
 0x4c8   :  { %v10343_v57 = vpack.c.bf16 %v10799_v55, %v10798_v56 }
 0x4c9   :  { %v10802_v60 = vpop.permute.xlu0 %10801  ;;  %v10807_v61 = vpop.permute.xlu1 %10806 }
 0x4ca   :  { %v10804_v62 = vunpack.i.h.bf16 %v10802_v60  ;;  %v10803_v63 = vunpack.i.l.bf16 %v10802_v60  ;;  %v10809_v2 = vunpack.i.h.bf16 %v10807_v61  ;;  %v10808_v3 = vunpack.i.l.bf16 %v10807_v61  ;;  %10344 = vmatprep.subr.bf16.mxu0 %v10343_v57 }
 0x4cb   :  { %10346 = vmatpush3.bf16.msra.mxu0 %v10343_v57 }
 0x4cc   :  { %v11031_v4 = vpop.eup %11030  ;;  %v10367_v5 = vpack.c.bf16 %v10809_v2, %v10808_v3  ;;  %v10353_v9 = vpack.c.bf16 %v10804_v62, %v10803_v63 }
 0x4cd   :  { %v1040_v10 = vpop.permute.xlu1 %1039  ;;  %v503_v11 = vmul.f32 %v11031_v4, %v11023_v39 }
 0x4ce   :  { %9688 = vmatmul.mubr.msk.f32.vlgmr.msra.gmra.mrb[0].mxu0 %vm281_vm7, %v303_v6  ;;  %10354 = vmatprep.subr.bf16.mxu0 %v10353_v9  ;;  %v1239_v6 = vld [vmem:[#allocation2 + $0x38] sm:$0xff] }
 0x4cf   :  { %10369 = vmatprep.subr.msk.bf16.mxu1 %vm11477_vm6, %v10367_v5  ;;  %9737 = vmatprep.mubr.msk.f32.mxu1 %vm197_vm5, %v1040_v10 }
 0x4d0   :  { %v11033_v12 = vpop.eup %11032  ;;  %10356 = vmatpush3.bf16.msra.mxu0 %v10353_v9  ;;  %9701 = vmatprep.mubr.msk.f32.mxu0 %vm281_vm7, %v503_v11 }
 0x4d1   :  { %10372 = vmatpush3.bf16.xpose.msk.msra.mxu1 %vm11477_vm6, %v10367_v5  ;;  %v504_v13 = vmul.f32 %v11033_v12, %v11025_v41  ;;  %v1042_v14 = vpop.permute.xlu1 %1041  ;;  %9704 = vmatprep.subr.mxu0 %v592_v25 }
 0x4d3   :  { %9702 = vmatmul.mubr.msk.f32.vlgmr.msra.gmra.mrb[2].mxu0 %vm281_vm7, %v504_v13 }
 0x4d4   :  { %9705 = vmatpush3.msra.mxu0 %v592_v25 }
 0x4d5   :  { %9709 = vmatprep.subr.mxu0 %v391_v26 }
 0x4d8   :  { %9738 = vmatmul.mubr.msk.f32.vlgmr.msra.gmra.mrb[8].mxu1 %vm197_vm5, %v1042_v14  ;;  %v9056_v14 = vld [vmem:[%s12495_s6 + $0x5] ss:$0 sm:$0xff] }
 0x4fa   :  { %v848_v15 = vpop.xlane.xlu0 %847 }
 0x4fb   :  { %v852_v16 = vsub.f32 %v838_v43, %v848_v15 }
 0x4fd   :  { %v854_v19 = vmul.f32 1.442695, %v852_v16 }
 0x502   :  { %v851_v17 = vpop.xlane.xlu1 %850 }
 0x503   :  { %v853_v18 = vsub.f32 %v843_v45, %v851_v17 }
 0x505   :  { %v856_v20 = vmul.f32 1.442695, %v853_v18 }
 0x507   :  { %11034 = vpow2.f32 %v856_v20 }
 0x508   :  { %11036 = vpow2.f32 %v854_v19 }
 0x511   :  { %v11035_v21 = vpop.eup %11034 }
 0x512   :  { %v861_v22 = vsel %vm281_vm7, %v11035_v21, 0.0  ;;  %v11037_v23 = vpop.eup %11036 }
 0x513   :  { %862 = vadd.xlane.f32.xlu0 %v861_v22  ;;  %v858_v24 = vsel %vm281_vm7, %v11037_v23, 0.0 }
 0x517   :  { %859 = vadd.xlane.f32.xlu0 %v858_v24 }
 0x52d   :  { %10811 = vrot.lane.b32.xlu0 %v11459_v51, %s11364_s15 }
 0x5a0   :  { %v863_v27 = vpop.xlane.xlu0 %862 }
 0x5a1   :  { %v9689_v28 = vpop.f32.mrb[0].mxu0 }
 0x5a2   :  { %v382_v29 = vpop.f32.mrb[1].mxu0 }
 0x5a4   :  { %v860_v30 = vpop.xlane.xlu0 %859 }
 0x5a5   :  { %11038 = vrcp.f32 %v860_v30 }
 0x5a6   :  { %11040 = vrcp.f32 %v863_v27  ;;  %v9703_v31 = vpop.f32.mrb[2].mxu0 }
 0x5a7   :  { %v583_v32 = vpop.f32.mrb[3].mxu0 }
 0x5a8   :  { %v10812_v33 = vpop.permute.xlu0 %10811  ;;  %9706 = vmatprep.mubr.msk.f32.mxu0 %vm197_vm5, %v583_v32  ;;  %v1387_v32 = vld [vmem:[#allocation2 + $0x48] sm:$0xff] }
 0x5a9   :  { %v10814_v34 = vunpack.i.h.bf16 %v10812_v33  ;;  %v10813_v35 = vunpack.i.l.bf16 %v10812_v33  ;;  %9707 = vmatmul.mubr.msk.f32.vlgmr.msra.gmra.mrb[4].mxu0 %vm197_vm5, %v9703_v31  ;;  %v1386_v31 = vld [vmem:[#allocation2 + $0x40] sm:$0xff]  ;;  %v1388_v33 = vld [vmem:[#allocation2 + $0x50] sm:$0xff] }
 0x5aa   :  { %9711 = vmatprep.mubr.msk.f32.mxu0 %vm197_vm5, %v382_v29  ;;  %9710 = vmatpush3.msra.mxu0 %v391_v26 }
 0x5ab   :  { %v9739_v36 = vpop.f32.mrb[8].mxu1  ;;  %v10363_v37 = vpack.c.bf16 %v10814_v34, %v10813_v35  ;;  %v10377_v34 = vpack.c.bf16 %v1387_v32, %v1386_v31  ;;  %v1389_v35 = vld [vmem:[#allocation2 + $0x58] sm:$0xff] }
 0x5ac   :  { %v1121_v38 = vpop.f32.mrb[9].mxu1  ;;  %v1127_v41 = vadd.f32 %v9739_v36, %v11502_v7  ;;  %v10381_v36 = vpack.c.bf16 %v1389_v35, %v1388_v33 }
 0x5ad   :  { %v1122_v39 = vadd.f32 %v1121_v38, %v11507_v8  ;;  %10364 = vmatprep.subr.bf16.mxu0 %v10363_v37  ;;  %10378 = vmatprep.subr.bf16.mxu1 %v10377_v34  ;;  %v1479_v38 = vld [vmem:[#allocation2 + $0x68] sm:$0xff] }
 0x5ae   :  { %v1133_v45 = vsel %vm281_vm7, %v1127_v41, -inf  ;;  %10380 = vmatpush3.bf16.msra.mxu1 %v10377_v34 }
 0x5af   :  { %v11039_v40 = vpop.eup %11038  ;;  %v1130_v42 = vsel %vm281_vm7, %v1122_v39, -inf  ;;  %10382 = vmatprep.subr.bf16.mxu1 %v10381_v36 }
 0x5b0   :  { %v11041_v43 = vpop.eup %11040  ;;  %1131 = vmax.xlane.f32.xlu1 %v1130_v42  ;;  %v866_v44 = vmul.f32 %v11039_v40, %v11037_v23 }
 0x5b1   :  { %9712 = vmatmul.mubr.msk.f32.vlgmr.msra.gmra.mrb[4].mxu0 %vm197_vm5, %v9689_v28  ;;  %v867_v46 = vmul.f32 %v11041_v43, %v11035_v21  ;;  %v1482_v43 = vld [vmem:[#allocation2 + $0x80] sm:$0xff] }
 0x5b2   :  { %10366 = vmatpush3.bf16.msra.mxu0 %v10363_v37  ;;  %9725 = vmatprep.mubr.msk.f32.mxu0 %vm281_vm7, %v866_v44  ;;  %v1478_v37 = vld [vmem:[#allocation2 + $0x60] sm:$0xff]  ;;  %v1483_v44 = vld [vmem:[#allocation2 + $0x88] sm:$0xff] }
 0x5b3   :  { %9728 = vmatprep.subr.mxu0 %v955_v47  ;;  %10384 = vmatpush3.bf16.msra.mxu1 %v10381_v36  ;;  %v10385_v40 = vpack.c.bf16 %v1479_v38, %v1478_v37 }
 0x5b4   :  { %1134 = vmax.xlane.f32.xlu1 %v1133_v45  ;;  %v10393_v45 = vpack.c.bf16 %v1483_v44, %v1482_v43  ;;  %v1632_v44 = vld [vmem:[#allocation2 + $0xb8] sm:$0xff] }
 0x5b5   :  { %9726 = vmatmul.mubr.msk.f32.vlgmr.msra.gmra.mrb[6].mxu0 %vm281_vm7, %v867_v46 }
 0x5b6   :  { %9729 = vmatpush3.msra.mxu0 %v955_v47 }
 0x63d   :  { %v1132_v49 = vpop.xlane.xlu1 %1131 }
 0x63e   :  { %v1136_v50 = vsub.f32 %v1122_v39, %v1132_v49  ;;  %v1480_v39 = vld [vmem:[#allocation2 + $0x70] sm:$0xff] }
 0x640   :  { %v1138_v54 = vmul.f32 1.442695, %v1136_v50 }
 0x641   :  { %v1135_v52 = vpop.xlane.xlu1 %1134 }
 0x642   :  { %v1137_v53 = vsub.f32 %v1127_v41, %v1135_v52  ;;  %v1481_v41 = vld [vmem:[#allocation2 + $0x78] sm:$0xff] }
 0x643   :  { %v10389_v42 = vpack.c.bf16 %v1481_v41, %v1480_v39  ;;  %v1630_v41 = vld [vmem:[#allocation2 + $0xa8] sm:$0xff] }
 0x644   :  { %v1140_v48 = vmul.f32 1.442695, %v1137_v53 }
 0x646   :  { %11042 = vpow2.f32 %v1140_v48 }
 0x647   :  { %11044 = vpow2.f32 %v1138_v54 }
 0x650   :  { %v11043_v55 = vpop.eup %11042 }
 0x651   :  { %v1145_v56 = vsel %vm281_vm7, %v11043_v55, 0.0  ;;  %v11045_v57 = vpop.eup %11044 }
 0x652   :  { %1146 = vadd.xlane.f32.xlu1 %v1145_v56  ;;  %v1142_v59 = vsel %vm281_vm7, %v11045_v57, 0.0 }
 0x656   :  { %1143 = vadd.xlane.f32.xlu1 %v1142_v59 }
 0x667   :  { %10816 = vrot.lane.b32.xlu1 %v11459_v51, %s11365_s16 }
 0x688   :  { %v9727_v60 = vpop.f32.mrb[6].mxu0 }
 0x689   :  { %v946_v61 = vpop.f32.mrb[7].mxu0 }
 0x68a   :  { %9730 = vmatprep.mubr.msk.f32.mxu0 %vm197_vm5, %v946_v61 }
 0x68b   :  { %9731 = vmatmul.mubr.msk.f32.vlgmr.msra.gmra.mrb[4].mxu0 %vm197_vm5, %v9727_v60 }
 0x6df   :  { %v1147_v62 = vpop.xlane.xlu1 %1146 }
 0x6e0   :  { %11046 = vrcp.f32 %v1147_v62 }
 0x6e3   :  { %v1144_v63 = vpop.xlane.xlu1 %1143 }
 0x6e4   :  { %11048 = vrcp.f32 %v1144_v63 }
 0x6e7   :  { %v10817_v2 = vpop.permute.xlu1 %10816 }
 0x6e8   :  { %v10819_v3 = vunpack.i.h.bf16 %v10817_v2  ;;  %v10818_v4 = vunpack.i.l.bf16 %v10817_v2  ;;  %v9057_v2 = vld [vmem:[%s12495_s6 + $0x2] ss:$0 sm:$0xff] }
 0x6ea   :  { %v10373_v5 = vpack.c.bf16 %v10819_v3, %v10818_v4  ;;  %v11047_v9 = vpop.eup %11046 }
 0x6eb   :  { %v1151_v11 = vmul.f32 %v11047_v9, %v11043_v55 }
 0x6ec   :  { %10374 = vmatprep.subr.bf16.mxu0 %v10373_v5 }
 0x6ed   :  { %10376 = vmatpush3.bf16.msra.mxu0 %v10373_v5  ;;  %v9058_v5 = vld [vmem:[%s12495_s6 + $0x3] ss:$0 sm:$0xff] }
 0x6ee   :  { %v11049_v10 = vpop.eup %11048  ;;  %9747 = vmatprep.subr.mxu0 %v1239_v6 }
 0x6ef   :  { %v1150_v51 = vmul.f32 %v11049_v10, %v11045_v57 }
 0x6f1   :  { %9744 = vmatprep.mubr.msk.f32.mxu0 %vm281_vm7, %v1150_v51 }
 0x6f2   :  { %9745 = vmatmul.mubr.msk.f32.vlgmr.msra.gmra.mrb[8].mxu0 %vm281_vm7, %v1151_v11 }
 0x6f3   :  { %9748 = vmatpush3.msra.mxu0 %v1239_v6 }
 0x6f4   :  { %10386 = vmatprep.subr.bf16.mxu0 %v10385_v40 }
 0x7c5   :  { %v9746_v12 = vpop.f32.mrb[8].mxu0 }
 0x7c6   :  { %v1230_v13 = vpop.f32.mrb[9].mxu0 }
 0x7c7   :  { %9749 = vmatprep.mubr.msk.f32.mxu0 %vm197_vm5, %v1230_v13  ;;  %v1484_v13 = vld [vmem:[#allocation2 + $0x90] sm:$0xff] }
 0x7c8   :  { %9750 = vmatmul.mubr.msk.f32.vlgmr.msra.gmra.mrb[4].mxu0 %vm197_vm5, %v9746_v12 }
 0x7c9   :  { %10388 = vmatpush3.bf16.msra.mxu0 %v10385_v40  ;;  %v1629_v40 = vld [vmem:[#allocation2 + $0xa0] sm:$0xff] }
 0x7ca   :  { %10390 = vmatprep.subr.bf16.mxu0 %v10389_v42  ;;  %v10401_v43 = vpack.c.bf16 %v1630_v41, %v1629_v40 }
 0x7cc   :  { %10402 = vmatprep.subr.bf16.mxu1 %v10401_v43 }
 0x7cd   :  { %10392 = vmatpush3.bf16.msra.mxu0 %v10389_v42  ;;  %v1631_v42 = vld [vmem:[#allocation2 + $0xb0] sm:$0xff] }
 0x7ce   :  { %10394 = vmatprep.subr.bf16.mxu0 %v10393_v45 }
 0x7d1   :  { %10396 = vmatpush3.bf16.msra.mxu0 %v10393_v45  ;;  %v10405_v45 = vpack.c.bf16 %v1632_v44, %v1631_v42 }
 0x89b   :  { %v9751_v15 = vpop.f32.mrb[4].mxu0 }
 0x89c   :  { %v1329_v16 = vadd.f32 %v9751_v15, %v9056_v14  ;;  %v1312_v17 = vpop.f32.mrb[5].mxu0 }
 0x89d   :  { %v1328_v18 = vadd.f32 %v9056_v14, %v1312_v17  ;;  %v1485_v14 = vld [vmem:[#allocation2 + $0x98] sm:$0xff] }
 0x89e   :  { %v11573_v19 = vadd.f32 %v1329_v16, %v11430_v1  ;;  %v10397_v15 = vpack.c.bf16 %v1485_v14, %v1484_v13  ;;  %v9059_v16 = vld [vmem:[%s12495_s6 + $0x6] ss:$0 sm:$0xff]  ;;  %v9067_v13 = vld [vmem:[%s12495_s6 + $0xc] ss:$0 sm:$0xff] }
 0x89f   :  { %v11576_v20 = vadd.f32 %v1328_v18, %v11425_v0 }
 0x8a0   :  { %v1335_v21 = vsel %vm43_vm0, %v11573_v19, 0.0  ;;  %10398 = vmatprep.subr.bf16.mxu0 %v10397_v15 }
 0x8a1   :  { %1336 = vadd.xlane.f32.xlu1 %v1335_v21  ;;  %v1332_v22 = vsel %vm43_vm0, %v11576_v20, 0.0  ;;  %10400 = vmatpush3.bf16.msra.mxu0 %v10397_v15 }
 0x8a2   :  { %1333 = vadd.xlane.f32.xlu0 %v1332_v22 }
 0x92e   :  { %v1337_v23 = vpop.xlane.xlu1 %1336 }
 0x92f   :  { %v1339_v24 = vmul.f32 0.03125, %v1337_v23  ;;  %v1334_v25 = vpop.xlane.xlu0 %1333 }
 0x930   :  { %v1338_v26 = vmul.f32 0.03125, %v1334_v25  ;;  %v9062_v25 = vld [vmem:[%s12495_s6 + $0x7] ss:$0 sm:$0xff] }
 0x931   :  { %v1341_v27 = vsub.f32 %v11573_v19, %v1339_v24 }
 0x932   :  { %v1340_v1 = vsub.f32 %v11576_v20, %v1338_v26 }
 0x933   :  { %v1343_v29 = vmul.f32 %v1341_v27, %v1341_v27  ;;  %v1376_v9 = vmul.f32 %v9057_v2, %v1341_v27 }
 0x934   :  { %v1342_v28 = vmul.f32 %v1340_v1, %v1340_v1  ;;  %v1375_v3 = vmul.f32 %v9057_v2, %v1340_v1  ;;  %v9065_v2 = vld [vmem:[%s12495_s6 + $0x8] ss:$0 sm:$0xff] }
 0x935   :  { %v1347_v30 = vsel %vm43_vm0, %v1343_v29, 0.0 }
 0x936   :  { %v1344_v0 = vsel %vm43_vm0, %v1342_v28, 0.0 }
 0x937   :  { %1345 = vadd.xlane.f32.xlu0 %v1344_v0 }
 0x93b   :  { %1348 = vadd.xlane.f32.xlu0 %v1347_v30 }
 0x9c4   :  { %v1346_v46 = vpop.xlane.xlu0 %1345 }
 0x9c5   :  { %v1350_v47 = vmul.f32 0.032258064, %v1346_v46 }
 0x9c7   :  { %11050 = vrsqrt.f32 %v1350_v47  ;;  %vm1354_vm8 = vcmp.eq.f32.partialorder %v1350_v47, inf  ;;  %v1357_v54 = vand.u32 2147483648, %v1350_v47  ;;  %vm1356_vm9 = vcmp.eq.f32.partialorder %v1350_v47, 0.0 }
 0x9c8   :  { %v1349_v49 = vpop.xlane.xlu0 %1348 }
 0x9c9   :  { %v1351_v50 = vmul.f32 0.032258064, %v1349_v49 }
 0x9cb   :  { %11052 = vrsqrt.f32 %v1351_v50  ;;  %vm1361_vm10 = vcmp.eq.f32.partialorder %v1351_v50, inf  ;;  %v1364_v60 = vand.u32 2147483648, %v1351_v50  ;;  %vm1363_vm11 = vcmp.eq.f32.partialorder %v1351_v50, 0.0 }
 0x9d1   :  { %v11051_v52 = vpop.eup %11050 }
 0x9d2   :  { %v1353_v53 = vmul.f32 %v11051_v52, %v1350_v47 }
 0x9d4   :  { %v1355_v48 = vsel %vm1354_vm8, %v1350_v47, %v1353_v53 }
 0x9d5   :  { %v11053_v55 = vpop.eup %11052  ;;  %v1358_v56 = vsel %vm1356_vm9, %v1357_v54, %v1355_v48 }
 0x9d6   :  { %v1360_v57 = vmul.f32 %v11053_v55, %v1351_v50  ;;  %v1366_v59 = vadd.f32 1e-06, %v1358_v56 }
 0x9d8   :  { %v1362_v61 = vsel %vm1361_vm10, %v1351_v50, %v1360_v57  ;;  %11054 = vrcp.f32 %v1366_v59 }
 0x9d9   :  { %v1365_v62 = vsel %vm1363_vm11, %v1364_v60, %v1362_v61 }
 0x9da   :  { %v1367_v63 = vadd.f32 1e-06, %v1365_v62 }
 0x9dc   :  { %11056 = vrcp.f32 %v1367_v63 }
 0x9e2   :  { %v11055_v4 = vpop.eup %11054 }
 0x9e3   :  { %v1377_v6 = vmul.f32 %v11055_v4, %v1375_v3 }
 0x9e5   :  { %v1384_v10 = vadd.f32 %v9058_v5, %v1377_v6 }
 0x9e6   :  { %v11057_v51 = vpop.eup %11056 }
 0x9e7   :  { %v1378_v11 = vmul.f32 %v11057_v51, %v1376_v9  ;;  %9760 = vmatprep.mubr.msk.f32.mxu1 %vm43_vm0, %v1384_v10 }
 0x9e9   :  { %v1385_v12 = vadd.f32 %v9058_v5, %v1378_v11  ;;  %v9066_v5 = vld [vmem:[%s12495_s6 + $0x9] ss:$0 sm:$0xff] }
 0x9eb   :  { %9761 = vmatmul.mubr.msk.f32.vlgmr.msra.gmra.mrb[10].mxu1 %vm43_vm0, %v1385_v12 }
 0x9ec   :  { %10404 = vmatpush3.bf16.msra.mxu1 %v10401_v43 }
 0x9ed   :  { %10406 = vmatprep.subr.bf16.mxu1 %v10405_v45 }
 0x9f0   :  { %10408 = vmatpush3.bf16.msra.mxu1 %v10405_v45 }
 0xabe   :  { %v9762_v17 = vpop.f32.mrb[10].mxu1 }
 0xabf   :  { %v1473_v18 = vadd.f32 %v9762_v17, %v9059_v16  ;;  %v1467_v21 = vpop.f32.mrb[11].mxu1 }
 0xac0   :  { %v1468_v22 = vadd.f32 %v9059_v16, %v1467_v21 }
 0xac1   :  { %v1477_v24 = vmax.f32 %v1473_v18, 0.0 }
 0xac2   :  { %v1476_v23 = vmax.f32 %v1468_v22, 0.0 }
 0xac4   :  { %9779 = vmatprep.mubr.msk.f32.mxu0 %vm1491_vm12, %v1476_v23 }
 0xac5   :  { %9780 = vmatmul.mubr.msk.f32.vlgmr.msra.gmra.mrb[10].mxu0 %vm1491_vm12, %v1477_v24 }
 0xb98   :  { %v9781_v26 = vpop.f32.mrb[10].mxu0 }
 0xb99   :  { %v1564_v27 = vpop.f32.mrb[11].mxu0  ;;  %v1570_v1 = vadd.f32 %v9781_v26, %v9062_v25 }
 0xb9a   :  { %v1565_v28 = vadd.f32 %v9062_v25, %v1564_v27 }
 0xb9b   :  { %v11606_v29 = vadd.f32 %v1570_v1, %v11573_v19 }
 0xb9c   :  { %v11603_v0 = vadd.f32 %v1565_v28, %v11576_v20 }
 0xb9d   :  { %v1578_v31 = vsel %vm43_vm0, %v11606_v29, 0.0 }
 0xb9e   :  { %v1575_v30 = vsel %vm43_vm0, %v11603_v0, 0.0 }
 0xb9f   :  { %1576 = vadd.xlane.f32.xlu0 %v1575_v30 }
 0xba3   :  { %1579 = vadd.xlane.f32.xlu0 %v1578_v31 }
 0xc2c   :  { %v1577_v32 = vpop.xlane.xlu0 %1576 }
 0xc2d   :  { %v1581_v33 = vmul.f32 0.03125, %v1577_v32 }
 0xc2f   :  { %v1583_v34 = vsub.f32 %v11603_v0, %v1581_v33 }
 0xc30   :  { %v1580_v35 = vpop.xlane.xlu0 %1579 }
 0xc31   :  { %v1582_v36 = vmul.f32 0.03125, %v1580_v35  ;;  %v1585_v37 = vmul.f32 %v1583_v34, %v1583_v34  ;;  %v1618_v3 = vmul.f32 %v9065_v2, %v1583_v34 }
 0xc33   :  { %v1584_v20 = vsub.f32 %v11606_v29, %v1582_v36  ;;  %v1587_v19 = vsel %vm43_vm0, %v1585_v37, 0.0 }
 0xc34   :  { %1588 = vadd.xlane.f32.xlu0 %v1587_v19 }
 0xc35   :  { %v1586_v38 = vmul.f32 %v1584_v20, %v1584_v20  ;;  %v1619_v9 = vmul.f32 %v9065_v2, %v1584_v20 }
 0xc37   :  { %v1590_v39 = vsel %vm43_vm0, %v1586_v38, 0.0 }
 0xc38   :  { %1591 = vadd.xlane.f32.xlu1 %v1590_v39 }
 0xcc1   :  { %v1589_v46 = vpop.xlane.xlu0 %1588 }
 0xcc2   :  { %v1593_v47 = vmul.f32 0.032258064, %v1589_v46 }
 0xcc4   :  { %11058 = vrsqrt.f32 %v1593_v47  ;;  %vm1597_vm13 = vcmp.eq.f32.partialorder %v1593_v47, inf  ;;  %v1600_v54 = vand.u32 2147483648, %v1593_v47  ;;  %vm1599_vm14 = vcmp.eq.f32.partialorder %v1593_v47, 0.0 }
 0xcc5   :  { %v1592_v49 = vpop.xlane.xlu1 %1591 }
 0xcc6   :  { %v1594_v50 = vmul.f32 0.032258064, %v1592_v49 }
 0xcc8   :  { %11060 = vrsqrt.f32 %v1594_v50  ;;  %vm1604_vm15 = vcmp.eq.f32.partialorder %v1594_v50, inf  ;;  %v1607_v60 = vand.u32 2147483648, %v1594_v50  ;;  %vm1606_vm1 = vcmp.eq.f32.partialorder %v1594_v50, 0.0 }
 0xcce   :  { %v11059_v52 = vpop.eup %11058 }
 0xccf   :  { %v1596_v53 = vmul.f32 %v11059_v52, %v1593_v47 }
 0xcd1   :  { %v1598_v48 = vsel %vm1597_vm13, %v1593_v47, %v1596_v53 }
 0xcd2   :  { %v11061_v55 = vpop.eup %11060  ;;  %v1601_v56 = vsel %vm1599_vm14, %v1600_v54, %v1598_v48 }
 0xcd3   :  { %v1603_v57 = vmul.f32 %v11061_v55, %v1594_v50  ;;  %v1609_v59 = vadd.f32 1e-06, %v1601_v56 }
 0xcd5   :  { %v1605_v61 = vsel %vm1604_vm15, %v1594_v50, %v1603_v57  ;;  %11062 = vrcp.f32 %v1609_v59 }
 0xcd6   :  { %v1608_v62 = vsel %vm1606_vm1, %v1607_v60, %v1605_v61 }
 0xcd7   :  { %v1610_v63 = vadd.f32 1e-06, %v1608_v62 }
 0xcd9   :  { %11064 = vrcp.f32 %v1610_v63 }
 0xcdf   :  { %v11063_v4 = vpop.eup %11062 }
 0xce0   :  { %v1620_v6 = vmul.f32 %v11063_v4, %v1618_v3 }
 0xce2   :  { %v1627_v10 = vadd.f32 %v9066_v5, %v1620_v6 }
 0xce3   :  { %v11065_v51 = vpop.eup %11064 }
 0xce4   :  { %v1621_v11 = vmul.f32 %v11065_v51, %v1619_v9  ;;  %9790 = vmatprep.mubr.msk.f32.mxu1 %vm43_vm0, %v1627_v10 }
 0xce6   :  { %v1628_v12 = vadd.f32 %v9066_v5, %v1621_v11 }
 0xce8   :  { %9791 = vmatmul.mubr.msk.f32.vlgmr.msra.gmra.mrb[12].mxu1 %vm43_vm0, %v1628_v12 }
 0xdbb   :  { %v9792_v14 = vpop.f32.mrb[12].mxu1 }
 0xdbc   :  { %v11627_v15 = vadd.f32 %v9792_v14, %v9067_v13  ;;  %v1710_v16 = vpop.f32.mrb[13].mxu1 }
 0xdbd   :  { %v11629_v17 = vadd.f32 %v9067_v13, %v1710_v16 }
 0xdbf   :  { %9797 = vmatprep.mubr.msk.f32.mxu1 %vm197_vm5, %v11629_v17  ;;  %v11635_v18 = vpack.i.bf16 %v11627_v15, %v11629_v17 }
 0xdc1   :  { %10826 = vrot.lane.b32.xlu1 %v11635_v18, %s11355_s23  ;;  %10821 = vrot.lane.b32.xlu0 %v11635_v18, %s11356_s24 }
 0xdc5   :  { %1918 = vrot.lane.b32.xlu1 %v11629_v17, %s11357_s25  ;;  %10831 = vrot.lane.b32.xlu0 %v11635_v18, %s11358_s26 }
 0xdc9   :  { %1920 = vrot.lane.b32.xlu1 %v11627_v15, %s11357_s25  ;;  %2283 = vrot.lane.b32.xlu0 %v11627_v15, %s11359_s27 }
 0xdcd   :  { %2281 = vrot.lane.b32.xlu1 %v11629_v17, %s11359_s27 }
 0xe33   :  { %v10827_v21 = vpop.permute.xlu1 %10826  ;;  %v10822_v22 = vpop.permute.xlu0 %10821 }
 0xe34   :  { %v10829_v23 = vunpack.i.h.bf16 %v10827_v21  ;;  %v10828_v24 = vunpack.i.l.bf16 %v10827_v21  ;;  %v10824_v25 = vunpack.i.h.bf16 %v10822_v22  ;;  %v10823_v26 = vunpack.i.l.bf16 %v10822_v22 }
 0xe36   :  { %v10409_v27 = vpack.c.bf16 %v10824_v25, %v10823_v26  ;;  %v10419_v1 = vpack.c.bf16 %v10829_v23, %v10828_v24 }
 0xe37   :  { %v10832_v28 = vpop.permute.xlu0 %10831  ;;  %v1919_v30 = vpop.permute.xlu1 %1918 }
 0xe38   :  { %10411 = vmatprep.subr.msk.bf16.mxu1 %vm11477_vm6, %v10409_v27  ;;  %v10834_v31 = vunpack.i.h.bf16 %v10832_v28  ;;  %v10833_v32 = vunpack.i.l.bf16 %v10832_v28 }
 0xe39   :  { %10414 = vmatpush3.bf16.xpose.msk.msra.mxu1 %vm11477_vm6, %v10409_v27 }
 0xe3a   :  { %10421 = vmatprep.subr.msk.bf16.mxu1 %vm11477_vm6, %v10419_v1  ;;  %v10429_v33 = vpack.c.bf16 %v10834_v31, %v10833_v32 }
 0xe3b   :  { %v1921_v34 = vpop.permute.xlu1 %1920  ;;  %v2284_v36 = vpop.permute.xlu0 %2283 }
 0xe3f   :  { %v2282_v35 = vpop.permute.xlu1 %2281 }
 0xe40   :  { %9798 = vmatmul.mubr.msk.f32.vlgmr.msra.gmra.mrb[14].mxu1 %vm197_vm5, %v11627_v15 }
 0xe41   :  { %10424 = vmatpush3.bf16.xpose.msk.msra.mxu1 %vm11477_vm6, %v10419_v1  ;;  %9811 = vmatprep.mubr.msk.f32.mxu1 %vm197_vm5, %v1919_v30 }
 0xe42   :  { %10431 = vmatprep.subr.msk.bf16.mxu1 %vm11477_vm6, %v10429_v33 }
 0xe48   :  { %9812 = vmatmul.mubr.msk.f32.vlgmr.msra.gmra.mrb[16].mxu1 %vm197_vm5, %v1921_v34 }
 0xe49   :  { %10434 = vmatpush3.bf16.xpose.msk.msra.mxu1 %vm11477_vm6, %v10429_v33  ;;  %9835 = vmatprep.mubr.msk.f32.mxu1 %vm197_vm5, %v2282_v35 }
 0xe50   :  { %9836 = vmatmul.mubr.msk.f32.vlgmr.msra.gmra.mrb[18].mxu1 %vm197_vm5, %v2284_v36 }
 0xf13   :  { %v9799_v37 = vpop.f32.mrb[14].mxu1 }
 0xf14   :  { %v1805_v20 = vadd.f32 %v9799_v37, %v11502_v7  ;;  %v1799_v19 = vpop.f32.mrb[15].mxu1 }
 0xf15   :  { %v1800_v38 = vadd.f32 %v1799_v19, %v11507_v8 }
 0xf16   :  { %v1811_v39 = vsel %vm281_vm7, %v1805_v20, -inf }
 0xf17   :  { %1812 = vmax.xlane.f32.xlu0 %v1811_v39  ;;  %v1808_v40 = vsel %vm281_vm7, %v1800_v38, -inf }
 0xf18   :  { %1809 = vmax.xlane.f32.xlu1 %v1808_v40 }
 0xf1b   :  { %v9813_v41 = vpop.f32.mrb[16].mxu1 }
 0xf1c   :  { %v2000_v42 = vpop.f32.mrb[17].mxu1  ;;  %v2006_v44 = vadd.f32 %v9813_v41, %v11502_v7 }
 0xf1d   :  { %v2001_v43 = vadd.f32 %v2000_v42, %v11507_v8 }
 0xf1e   :  { %v2012_v47 = vsel %vm281_vm7, %v2006_v44, -inf }
 0xf1f   :  { %v2009_v45 = vsel %vm281_vm7, %v2001_v43, -inf }
 0xf20   :  { %2010 = vmax.xlane.f32.xlu0 %v2009_v45 }
 0xf23   :  { %v9837_v46 = vpop.f32.mrb[18].mxu1 }
 0xf24   :  { %v2363_v49 = vpop.f32.mrb[19].mxu1  ;;  %2013 = vmax.xlane.f32.xlu0 %v2012_v47  ;;  %v2369_v12 = vadd.f32 %v9837_v46, %v11502_v7 }
 0xf25   :  { %v2364_v51 = vadd.f32 %v2363_v49, %v11507_v8 }
 0xf26   :  { %v2375_v13 = vsel %vm281_vm7, %v2369_v12, -inf }
 0xf27   :  { %v2372_v11 = vsel %vm281_vm7, %v2364_v51, -inf }
 0xfa4   :  { %v1813_v50 = vpop.xlane.xlu0 %1812 }
 0xfa5   :  { %v1815_v52 = vsub.f32 %v1805_v20, %v1813_v50  ;;  %v1810_v53 = vpop.xlane.xlu1 %1809  ;;  %v2118_v50 = vld [vmem:[#allocation2 + $0xc8] sm:$0xff] }
 0xfa6   :  { %v1814_v54 = vsub.f32 %v1800_v38, %v1810_v53 }
 0xfa7   :  { %v1818_v48 = vmul.f32 1.442695, %v1815_v52  ;;  %v1917_v52 = vld [vmem:[#allocation2 + $0xc0] sm:$0xff] }
 0xfa8   :  { %v1816_v55 = vmul.f32 1.442695, %v1814_v54 }
 0xfa9   :  { %11066 = vpow2.f32 %v1818_v48 }
 0xfaa   :  { %11068 = vpow2.f32 %v1816_v55 }
 0xfad   :  { %v2011_v56 = vpop.xlane.xlu0 %2010 }
 0xfae   :  { %v2015_v57 = vsub.f32 %v2001_v43, %v2011_v56 }
 0xfb0   :  { %v2017_v59 = vmul.f32 1.442695, %v2015_v57 }
 0xfb1   :  { %v2014_v60 = vpop.xlane.xlu0 %2013 }
 0xfb2   :  { %11070 = vpow2.f32 %v2017_v59  ;;  %v2016_v61 = vsub.f32 %v2006_v44, %v2014_v60 }
 0xfb3   :  { %v11067_v62 = vpop.eup %11066 }
 0xfb4   :  { %v11069_v63 = vpop.eup %11068  ;;  %v2019_v2 = vmul.f32 1.442695, %v2016_v61  ;;  %v1823_v3 = vsel %vm281_vm7, %v11067_v62, 0.0 }
 0xfb5   :  { %1824 = vadd.xlane.f32.xlu0 %v1823_v3  ;;  %v1820_v4 = vsel %vm281_vm7, %v11069_v63, 0.0  ;;  %v11298_v3 = vld [vmem:[%s12491_s2] sm:$0xff] }
 0xfb6   :  { %11072 = vpow2.f32 %v2019_v2  ;;  %1821 = vadd.xlane.f32.xlu1 %v1820_v4 }
 0xfbc   :  { %v11071_v5 = vpop.eup %11070 }
 0xfbd   :  { %v2021_v6 = vsel %vm281_vm7, %v11071_v5, 0.0 }
 0xfbe   :  { %2022 = vadd.xlane.f32.xlu1 %v2021_v6  ;;  %v11299_v6 = vld [vmem:[%s12491_s2 + $0x8] sm:$0xff] }
 0xfc0   :  { %v11073_v9 = vpop.eup %11072 }
 0xfc1   :  { %v2024_v10 = vsel %vm281_vm7, %v11073_v9, 0.0 }
 0xfc2   :  { %2025 = vadd.xlane.f32.xlu0 %v2024_v10 }
 0xfcf   :  { %10836 = vrot.lane.b32.xlu1 %v11635_v18, %s11360_s9 }
 0xfd3   :  { %10846 = vrot.lane.b32.xlu1 %v11635_v18, %s11361_s10 }
 0xfd7   :  { %2565 = vrot.lane.b32.xlu1 %v11629_v17, %s11362_s13 }
 0xfd8   :  { %10841 = vrot.lane.b32.xlu0 %v11635_v18, %s11363_s14 }
 0xfdb   :  { %2567 = vrot.lane.b32.xlu1 %v11627_v15, %s11362_s13 }
 0xff7   :  { %2373 = vmax.xlane.f32.xlu0 %v2372_v11 }
 0xfff   :  { %2376 = vmax.xlane.f32.xlu1 %v2375_v13 }
0x1042   :  { %v1825_v16 = vpop.xlane.xlu0 %1824 }
0x1043   :  { %v1822_v14 = vpop.xlane.xlu1 %1821 }
0x1044   :  { %11074 = vrcp.f32 %v1822_v14  ;;  %v2481_v14 = vld [vmem:[#allocation2 + $0xd0] sm:$0xff] }
0x1045   :  { %11076 = vrcp.f32 %v1825_v16 }
0x104b   :  { %v2023_v17 = vpop.xlane.xlu1 %2022 }
0x104c   :  { %11078 = vrcp.f32 %v2023_v17 }
0x104e   :  { %v11075_v21 = vpop.eup %11074 }
0x104f   :  { %v2026_v22 = vpop.xlane.xlu0 %2025  ;;  %v10837_v23 = vpop.permute.xlu1 %10836  ;;  %v1828_v15 = vmul.f32 %v11075_v21, %v11069_v63 }
0x1050   :  { %11080 = vrcp.f32 %v2026_v22  ;;  %v10839_v8 = vunpack.i.h.bf16 %v10837_v23  ;;  %v10838_v24 = vunpack.i.l.bf16 %v10837_v23  ;;  %v11077_v7 = vpop.eup %11076 }
0x1051   :  { %9804 = vmatprep.mubr.msk.f32.mxu0 %vm281_vm7, %v1828_v15  ;;  %v1829_v34 = vmul.f32 %v11077_v7, %v11067_v62 }
0x1052   :  { %v10415_v25 = vpack.c.bf16 %v10839_v8, %v10838_v24 }
0x1053   :  { %v10842_v26 = vpop.permute.xlu0 %10841  ;;  %v10847_v27 = vpop.permute.xlu1 %10846 }
0x1054   :  { %v10844_v1 = vunpack.i.h.bf16 %v10842_v26  ;;  %v10843_v28 = vunpack.i.l.bf16 %v10842_v26  ;;  %v10849_v30 = vunpack.i.h.bf16 %v10847_v27  ;;  %v10848_v31 = vunpack.i.l.bf16 %v10847_v27  ;;  %10416 = vmatprep.subr.bf16.mxu0 %v10415_v25 }
0x1055   :  { %10418 = vmatpush3.bf16.msra.mxu0 %v10415_v25 }
0x1056   :  { %v11079_v32 = vpop.eup %11078  ;;  %v10439_v33 = vpack.c.bf16 %v10849_v30, %v10848_v31  ;;  %v10425_v35 = vpack.c.bf16 %v10844_v1, %v10843_v28 }
0x1057   :  { %v2566_v36 = vpop.permute.xlu1 %2565  ;;  %v2029_v37 = vmul.f32 %v11079_v32, %v11071_v5 }
0x1058   :  { %9805 = vmatmul.mubr.msk.f32.vlgmr.msra.gmra.mrb[12].mxu0 %vm281_vm7, %v1829_v34  ;;  %10426 = vmatprep.subr.bf16.mxu0 %v10425_v35  ;;  %v2765_v34 = vld [vmem:[#allocation2 + $0xd8] sm:$0xff] }
0x1059   :  { %10441 = vmatprep.subr.msk.bf16.mxu1 %vm11477_vm6, %v10439_v33  ;;  %9854 = vmatprep.mubr.msk.f32.mxu1 %vm197_vm5, %v2566_v36 }
0x105a   :  { %v11081_v20 = vpop.eup %11080  ;;  %10428 = vmatpush3.bf16.msra.mxu0 %v10425_v35  ;;  %9818 = vmatprep.mubr.msk.f32.mxu0 %vm281_vm7, %v2029_v37 }
0x105b   :  { %10444 = vmatpush3.bf16.xpose.msk.msra.mxu1 %vm11477_vm6, %v10439_v33  ;;  %v2030_v19 = vmul.f32 %v11081_v20, %v11073_v9  ;;  %v2568_v38 = vpop.permute.xlu1 %2567  ;;  %9821 = vmatprep.subr.mxu0 %v2118_v50 }
0x105d   :  { %9819 = vmatmul.mubr.msk.f32.vlgmr.msra.gmra.mrb[14].mxu0 %vm281_vm7, %v2030_v19 }
0x105e   :  { %9822 = vmatpush3.msra.mxu0 %v2118_v50 }
0x105f   :  { %9826 = vmatprep.subr.mxu0 %v1917_v52 }
0x1062   :  { %9855 = vmatmul.mubr.msk.f32.vlgmr.msra.gmra.mrb[20].mxu1 %vm197_vm5, %v2568_v38  ;;  %v9102_v38 = vld [vmem:[%s12495_s6 + $0xd] ss:$0 sm:$0xff] }
0x1084   :  { %v2374_v39 = vpop.xlane.xlu0 %2373 }
0x1085   :  { %v2378_v40 = vsub.f32 %v2364_v51, %v2374_v39 }
0x1087   :  { %v2380_v43 = vmul.f32 1.442695, %v2378_v40 }
0x108c   :  { %v2377_v41 = vpop.xlane.xlu1 %2376 }
0x108d   :  { %v2379_v42 = vsub.f32 %v2369_v12, %v2377_v41 }
0x108f   :  { %v2382_v44 = vmul.f32 1.442695, %v2379_v42 }
0x1091   :  { %11082 = vpow2.f32 %v2382_v44 }
0x1092   :  { %11084 = vpow2.f32 %v2380_v43 }
0x109b   :  { %v11083_v45 = vpop.eup %11082 }
0x109c   :  { %v2387_v46 = vsel %vm281_vm7, %v11083_v45, 0.0  ;;  %v11085_v47 = vpop.eup %11084 }
0x109d   :  { %2388 = vadd.xlane.f32.xlu0 %v2387_v46  ;;  %v2384_v49 = vsel %vm281_vm7, %v11085_v47, 0.0  ;;  %v11747_v46 = vld [vmem:[%s12490_s1] sm:$0xff] }
0x10a1   :  { %2385 = vadd.xlane.f32.xlu0 %v2384_v49 }
0x10b7   :  { %10851 = vrot.lane.b32.xlu0 %v11635_v18, %s11364_s15 }
0x112a   :  { %v2389_v53 = vpop.xlane.xlu0 %2388 }
0x112b   :  { %v9806_v54 = vpop.f32.mrb[12].mxu0 }
0x112c   :  { %v1908_v48 = vpop.f32.mrb[13].mxu0 }
0x112e   :  { %v2386_v55 = vpop.xlane.xlu0 %2385 }
0x112f   :  { %11086 = vrcp.f32 %v2386_v55 }
0x1130   :  { %11088 = vrcp.f32 %v2389_v53  ;;  %v9820_v56 = vpop.f32.mrb[14].mxu0 }
0x1131   :  { %v2109_v57 = vpop.f32.mrb[15].mxu0 }
0x1132   :  { %v10852_v59 = vpop.permute.xlu0 %10851  ;;  %9823 = vmatprep.mubr.msk.f32.mxu0 %vm197_vm5, %v2109_v57 }
0x1133   :  { %v10854_v60 = vunpack.i.h.bf16 %v10852_v59  ;;  %v10853_v61 = vunpack.i.l.bf16 %v10852_v59  ;;  %9824 = vmatmul.mubr.msk.f32.vlgmr.msra.gmra.mrb[16].mxu0 %vm197_vm5, %v9820_v56 }
0x1134   :  { %9828 = vmatprep.mubr.msk.f32.mxu0 %vm197_vm5, %v1908_v48  ;;  %9827 = vmatpush3.msra.mxu0 %v1917_v52 }
0x1135   :  { %v9856_v62 = vpop.f32.mrb[20].mxu1  ;;  %v10435_v63 = vpack.c.bf16 %v10854_v60, %v10853_v61 }
0x1136   :  { %v2647_v2 = vpop.f32.mrb[21].mxu1  ;;  %v2653_v9 = vadd.f32 %v11299_v6, %v9856_v62 }
0x1137   :  { %v2648_v4 = vadd.f32 %v11298_v3, %v2647_v2  ;;  %10436 = vmatprep.subr.bf16.mxu0 %v10435_v63 }
0x1138   :  { %v2659_v12 = vsel %vm281_vm7, %v2653_v9, -inf }
0x1139   :  { %v11087_v5 = vpop.eup %11086  ;;  %v2656_v10 = vsel %vm281_vm7, %v2648_v4, -inf }
0x113a   :  { %v11089_v51 = vpop.eup %11088  ;;  %2657 = vmax.xlane.f32.xlu1 %v2656_v10  ;;  %v2392_v11 = vmul.f32 %v11087_v5, %v11085_v47 }
0x113b   :  { %9829 = vmatmul.mubr.msk.f32.vlgmr.msra.gmra.mrb[16].mxu0 %vm197_vm5, %v9806_v54  ;;  %v2393_v13 = vmul.f32 %v11089_v51, %v11083_v45  ;;  %v2912_v51 = vld [vmem:[#allocation2 + $0xe0] sm:$0xff] }
0x113c   :  { %10438 = vmatpush3.bf16.msra.mxu0 %v10435_v63  ;;  %9842 = vmatprep.mubr.msk.f32.mxu0 %vm281_vm7, %v2392_v11  ;;  %v2913_v11 = vld [vmem:[#allocation2 + $0xe8] sm:$0xff] }
0x113d   :  { %9845 = vmatprep.subr.mxu0 %v2481_v14 }
0x113e   :  { %2660 = vmax.xlane.f32.xlu1 %v2659_v12  ;;  %v2914_v12 = vld [vmem:[#allocation2 + $0xf0] sm:$0xff] }
0x113f   :  { %9843 = vmatmul.mubr.msk.f32.vlgmr.msra.gmra.mrb[18].mxu0 %vm281_vm7, %v2393_v13  ;;  %v10449_v13 = vpack.c.bf16 %v2913_v11, %v2912_v51 }
0x1140   :  { %9846 = vmatpush3.msra.mxu0 %v2481_v14  ;;  %v2915_v14 = vld [vmem:[#allocation2 + $0xf8] sm:$0xff] }
0x1141   :  { %10450 = vmatprep.subr.bf16.mxu1 %v10449_v13 }
0x1142   :  { %10452 = vmatpush3.bf16.msra.mxu1 %v10449_v13  ;;  %v3214_v13 = vld [vmem:[#allocation2 + $0x150] sm:$0xff] }
0x11c7   :  { %v2658_v16 = vpop.xlane.xlu1 %2657 }
0x11c8   :  { %v2662_v17 = vsub.f32 %v2648_v4, %v2658_v16  ;;  %v10453_v16 = vpack.c.bf16 %v2915_v14, %v2914_v12  ;;  %v3215_v14 = vld [vmem:[#allocation2 + $0x158] sm:$0xff] }
0x11ca   :  { %v2664_v23 = vmul.f32 1.442695, %v2662_v17  ;;  %10454 = vmatprep.subr.bf16.mxu1 %v10453_v16  ;;  %v3212_v17 = vld [vmem:[#allocation2 + $0x140] sm:$0xff] }
0x11cb   :  { %v2661_v21 = vpop.xlane.xlu1 %2660  ;;  %10456 = vmatpush3.bf16.msra.mxu1 %v10453_v16  ;;  %v9113_v16 = vld [vmem:[%s12495_s6 + $0x12] ss:$0 sm:$0xff] }
0x11cc   :  { %v2663_v22 = vsub.f32 %v2653_v9, %v2661_v21  ;;  %v3213_v21 = vld [vmem:[#allocation2 + $0x148] sm:$0xff] }
0x11ce   :  { %v2666_v15 = vmul.f32 1.442695, %v2663_v22  ;;  %v11784_v22 = vpack.c.bf16 %v3213_v21, %v3212_v17  ;;  %v10477_v21 = vpack.c.bf16 %v3215_v14, %v3214_v13 }
0x11d0   :  { %11090 = vpow2.f32 %v2666_v15  ;;  %10474 = vmatprep.subr.bf16.mxu1 %v11784_v22  ;;  %v3005_v15 = vld [vmem:[#allocation2 + $0x108] sm:$0xff] }
0x11d1   :  { %11092 = vpow2.f32 %v2664_v23  ;;  %v3004_v23 = vld [vmem:[#allocation2 + $0x100] sm:$0xff] }
0x11da   :  { %v11091_v8 = vpop.eup %11090 }
0x11db   :  { %v2671_v24 = vsel %vm281_vm7, %v11091_v8, 0.0  ;;  %v11093_v25 = vpop.eup %11092 }
0x11dc   :  { %2672 = vadd.xlane.f32.xlu1 %v2671_v24  ;;  %v2668_v7 = vsel %vm281_vm7, %v11093_v25, 0.0  ;;  %v10457_v24 = vpack.c.bf16 %v3005_v15, %v3004_v23 }
0x11e0   :  { %2669 = vadd.xlane.f32.xlu1 %v2668_v7 }
0x11f1   :  { %10856 = vrot.lane.b32.xlu1 %v11635_v18, %s11365_s16 }
0x1212   :  { %v9844_v26 = vpop.f32.mrb[18].mxu0 }
0x1213   :  { %v2472_v27 = vpop.f32.mrb[19].mxu0 }
0x1214   :  { %9847 = vmatprep.mubr.msk.f32.mxu0 %vm197_vm5, %v2472_v27  ;;  %v3009_v27 = vld [vmem:[#allocation2 + $0x128] sm:$0xff] }
0x1215   :  { %9848 = vmatmul.mubr.msk.f32.vlgmr.msra.gmra.mrb[16].mxu0 %vm197_vm5, %v9844_v26  ;;  %v3008_v26 = vld [vmem:[#allocation2 + $0x120] sm:$0xff] }
0x1269   :  { %v2673_v1 = vpop.xlane.xlu1 %2672 }
0x126a   :  { %11094 = vrcp.f32 %v2673_v1  ;;  %v10465_v1 = vpack.c.bf16 %v3009_v27, %v3008_v26 }
0x126d   :  { %v2670_v28 = vpop.xlane.xlu1 %2669 }
0x126e   :  { %11096 = vrcp.f32 %v2670_v28 }
0x1271   :  { %v10857_v30 = vpop.permute.xlu1 %10856 }
0x1272   :  { %v10859_v31 = vunpack.i.h.bf16 %v10857_v30  ;;  %v10858_v32 = vunpack.i.l.bf16 %v10857_v30 }
0x1274   :  { %v10445_v33 = vpack.c.bf16 %v10859_v31, %v10858_v32  ;;  %v11095_v35 = vpop.eup %11094 }
0x1275   :  { %v2677_v37 = vmul.f32 %v11095_v35, %v11091_v8  ;;  %v3006_v8 = vld [vmem:[#allocation2 + $0x110] sm:$0xff] }
0x1276   :  { %10446 = vmatprep.subr.bf16.mxu0 %v10445_v33 }
0x1277   :  { %10448 = vmatpush3.bf16.msra.mxu0 %v10445_v33 }
0x1278   :  { %v11097_v36 = vpop.eup %11096  ;;  %9864 = vmatprep.subr.mxu0 %v2765_v34 }
0x1279   :  { %v2676_v18 = vmul.f32 %v11097_v36, %v11093_v25  ;;  %v3007_v25 = vld [vmem:[#allocation2 + $0x118] sm:$0xff] }
0x127a   :  { %v10461_v7 = vpack.c.bf16 %v3007_v25, %v3006_v8 }
0x127b   :  { %9861 = vmatprep.mubr.msk.f32.mxu0 %vm281_vm7, %v2676_v18 }
0x127c   :  { %9862 = vmatmul.mubr.msk.f32.vlgmr.msra.gmra.mrb[20].mxu0 %vm281_vm7, %v2677_v37 }
0x127d   :  { %9865 = vmatpush3.msra.mxu0 %v2765_v34 }
0x127e   :  { %10458 = vmatprep.subr.bf16.mxu0 %v10457_v24 }
0x134f   :  { %v9863_v20 = vpop.f32.mrb[20].mxu0 }
0x1350   :  { %v2756_v19 = vpop.f32.mrb[21].mxu0 }
0x1351   :  { %9866 = vmatprep.mubr.msk.f32.mxu0 %vm197_vm5, %v2756_v19 }
0x1352   :  { %9867 = vmatmul.mubr.msk.f32.vlgmr.msra.gmra.mrb[16].mxu0 %vm197_vm5, %v9863_v20 }
0x1353   :  { %10460 = vmatpush3.bf16.msra.mxu0 %v10457_v24 }
0x1354   :  { %10462 = vmatprep.subr.bf16.mxu0 %v10461_v7 }
0x1357   :  { %10464 = vmatpush3.bf16.msra.mxu0 %v10461_v7 }
0x1358   :  { %10466 = vmatprep.subr.bf16.mxu0 %v10465_v1 }
0x135b   :  { %10468 = vmatpush3.bf16.msra.mxu0 %v10465_v1 }
0x1425   :  { %v9868_v39 = vpop.f32.mrb[16].mxu0 }
0x1426   :  { %v2855_v40 = vadd.f32 %v9868_v39, %v9102_v38  ;;  %v2838_v41 = vpop.f32.mrb[17].mxu0 }
0x1427   :  { %v2854_v42 = vadd.f32 %v9102_v38, %v2838_v41 }
0x1428   :  { %v11737_v43 = vadd.f32 %v2855_v40, %v11606_v29  ;;  %v3156_v29 = vsel %vm43_vm0, %v11747_v46, 0.0 }
0x1429   :  { %v11740_v44 = vadd.f32 %v2854_v42, %v11603_v0  ;;  %v11756_v0 = vld [vmem:[%s12490_s1 + $0x8] sm:$0xff] }
0x142a   :  { %v2861_v45 = vsel %vm43_vm0, %v11737_v43, 0.0  ;;  %v3159_v49 = vsel %vm43_vm0, %v11756_v0, 0.0 }
0x142b   :  { %2862 = vadd.xlane.f32.xlu1 %v2861_v45  ;;  %v2858_v47 = vsel %vm43_vm0, %v11740_v44, 0.0 }
0x142c   :  { %2859 = vadd.xlane.f32.xlu0 %v2858_v47 }
0x1430   :  { %3157 = vadd.xlane.f32.xlu0 %v3156_v29 }
0x1434   :  { %3160 = vadd.xlane.f32.xlu0 %v3159_v49 }
0x14b8   :  { %v2863_v50 = vpop.xlane.xlu1 %2862 }
0x14b9   :  { %v2865_v52 = vmul.f32 0.03125, %v2863_v50  ;;  %v2860_v53 = vpop.xlane.xlu0 %2859 }
0x14ba   :  { %v2864_v54 = vmul.f32 0.03125, %v2860_v53 }
0x14bb   :  { %v11761_v48 = vsub.f32 %v11737_v43, %v2865_v52 }
0x14bc   :  { %v11764_v55 = vsub.f32 %v11740_v44, %v2864_v54 }
0x14bd   :  { %v3158_v56 = vpop.xlane.xlu0 %3157  ;;  %v2869_v62 = vmul.f32 %v11761_v48, %v11761_v48 }
0x14be   :  { %v3162_v57 = vmul.f32 0.03125, %v3158_v56  ;;  %v2868_v59 = vmul.f32 %v11764_v55, %v11764_v55 }
0x14bf   :  { %v2873_v5 = vsel %vm43_vm0, %v2869_v62, 0.0  ;;  %v9103_v62 = vld [vmem:[%s12495_s6 + $0xa] ss:$0 sm:$0xff] }
0x14c0   :  { %v11769_v60 = vsub.f32 %v11747_v46, %v3162_v57  ;;  %v2870_v61 = vsel %vm43_vm0, %v2868_v59, 0.0  ;;  %v2902_v51 = vmul.f32 %v9103_v62, %v11761_v48  ;;  %v9114_v48 = vld [vmem:[%s12495_s6 + $0x13] ss:$0 sm:$0xff] }
0x14c1   :  { %2871 = vadd.xlane.f32.xlu0 %v2870_v61  ;;  %v3161_v63 = vpop.xlane.xlu0 %3160 }
0x14c2   :  { %v3163_v2 = vmul.f32 0.03125, %v3161_v63  ;;  %v3166_v3 = vmul.f32 %v11769_v60, %v11769_v60  ;;  %v3199_v15 = vmul.f32 %v9113_v16, %v11769_v60  ;;  %v3010_v60 = vld [vmem:[#allocation2 + $0x130] sm:$0xff] }
0x14c4   :  { %v11777_v4 = vsub.f32 %v11756_v0, %v3163_v2  ;;  %v3168_v6 = vsel %vm43_vm0, %v3166_v3, 0.0 }
0x14c5   :  { %2874 = vadd.xlane.f32.xlu0 %v2873_v5  ;;  %v2901_v5 = vmul.f32 %v9103_v62, %v11764_v55 }
0x14c6   :  { %v3167_v9 = vmul.f32 %v11777_v4, %v11777_v4  ;;  %v3200_v24 = vmul.f32 %v9113_v16, %v11777_v4  ;;  %v3011_v4 = vld [vmem:[#allocation2 + $0x138] sm:$0xff] }
0x14c7   :  { %v10469_v1 = vpack.c.bf16 %v3011_v4, %v3010_v60 }
0x14c8   :  { %v3171_v10 = vsel %vm43_vm0, %v3167_v9, 0.0  ;;  %v9104_v9 = vld [vmem:[%s12495_s6 + $0xb] ss:$0 sm:$0xff] }
0x14c9   :  { %3169 = vadd.xlane.f32.xlu0 %v3168_v6  ;;  %3172 = vadd.xlane.f32.xlu1 %v3171_v10 }
0x14ca   :  { %10470 = vmatprep.subr.bf16.mxu0 %v10469_v1 }
0x14cb   :  { %10472 = vmatpush3.bf16.msra.mxu0 %v10469_v1 }
0x154e   :  { %v2872_v28 = vpop.xlane.xlu0 %2871 }
0x154f   :  { %v2876_v30 = vmul.f32 0.032258064, %v2872_v28  ;;  %v9105_v28 = vld [vmem:[%s12495_s6 + $0xe] ss:$0 sm:$0xff] }
0x1551   :  { %11098 = vrsqrt.f32 %v2876_v30  ;;  %vm2880_vm2 = vcmp.eq.f32.partialorder %v2876_v30, inf  ;;  %v2883_v20 = vand.u32 2147483648, %v2876_v30  ;;  %vm2882_vm3 = vcmp.eq.f32.partialorder %v2876_v30, 0.0 }
0x1552   :  { %v2875_v31 = vpop.xlane.xlu0 %2874 }
0x1553   :  { %v2877_v32 = vmul.f32 0.032258064, %v2875_v31 }
0x1555   :  { %11100 = vrsqrt.f32 %v2877_v32  ;;  %vm2887_vm4 = vcmp.eq.f32.partialorder %v2877_v32, inf  ;;  %v2890_v42 = vand.u32 2147483648, %v2877_v32  ;;  %vm2889_vm8 = vcmp.eq.f32.partialorder %v2877_v32, 0.0 }
0x1556   :  { %v3173_v33 = vpop.xlane.xlu1 %3172  ;;  %v3170_v34 = vpop.xlane.xlu0 %3169 }
0x1557   :  { %v3175_v35 = vmul.f32 0.032258064, %v3173_v33  ;;  %v3174_v36 = vmul.f32 0.032258064, %v3170_v34 }
0x1559   :  { %11102 = vrsqrt.f32 %v3175_v35  ;;  %vm3185_vm9 = vcmp.eq.f32.partialorder %v3175_v35, inf  ;;  %vm3187_vm10 = vcmp.eq.f32.partialorder %v3175_v35, 0.0  ;;  %v3188_v53 = vand.u32 2147483648, %v3175_v35 }
0x155a   :  { %11104 = vrsqrt.f32 %v3174_v36  ;;  %vm3178_vm11 = vcmp.eq.f32.partialorder %v3174_v36, inf  ;;  %v3181_v57 = vand.u32 2147483648, %v3174_v36  ;;  %vm3180_vm13 = vcmp.eq.f32.partialorder %v3174_v36, 0.0 }
0x155b   :  { %v11099_v18 = vpop.eup %11098 }
0x155c   :  { %v2879_v37 = vmul.f32 %v11099_v18, %v2876_v30 }
0x155e   :  { %v2881_v19 = vsel %vm2880_vm2, %v2876_v30, %v2879_v37 }
0x155f   :  { %v11101_v38 = vpop.eup %11100  ;;  %v2884_v39 = vsel %vm2882_vm3, %v2883_v20, %v2881_v19 }
0x1560   :  { %v2886_v40 = vmul.f32 %v11101_v38, %v2877_v32  ;;  %v2892_v41 = vadd.f32 1e-06, %v2884_v39 }
0x1562   :  { %v2888_v45 = vsel %vm2887_vm4, %v2877_v32, %v2886_v40  ;;  %11106 = vrcp.f32 %v2892_v41 }
0x1563   :  { %v11103_v47 = vpop.eup %11102  ;;  %v2891_v29 = vsel %vm2889_vm8, %v2890_v42, %v2888_v45 }
0x1564   :  { %v11105_v49 = vpop.eup %11104  ;;  %v2893_v50 = vadd.f32 1e-06, %v2891_v29  ;;  %v3184_v52 = vmul.f32 %v11103_v47, %v3175_v35 }
0x1565   :  { %v3177_v54 = vmul.f32 %v11105_v49, %v3174_v36 }
0x1566   :  { %v3186_v56 = vsel %vm3185_vm9, %v3175_v35, %v3184_v52  ;;  %11108 = vrcp.f32 %v2893_v50  ;;  %v9115_v35 = vld [vmem:[%s12495_s6 + $0x18] ss:$0 sm:$0xff] }
0x1567   :  { %v3189_v59 = vsel %vm3187_vm10, %v3188_v53, %v3186_v56  ;;  %v3179_v61 = vsel %vm3178_vm11, %v3174_v36, %v3177_v54 }
0x1568   :  { %v3191_v63 = vadd.f32 1e-06, %v3189_v59  ;;  %v3182_v2 = vsel %vm3180_vm13, %v3181_v57, %v3179_v61  ;;  %v11861_v61 = vld [vmem:[%s12495_s6 + $0xf] ss:$0 sm:$0xff] }
0x1569   :  { %v3190_v3 = vadd.f32 1e-06, %v3182_v2 }
0x156a   :  { %11110 = vrcp.f32 %v3191_v63 }
0x156b   :  { %11112 = vrcp.f32 %v3190_v3  ;;  %v11871_v3 = vld [vmem:[%s12492_s3 + $0x8] sm:$0xff] }
0x156c   :  { %v11107_v6 = vpop.eup %11106 }
0x156d   :  { %v2903_v10 = vmul.f32 %v11107_v6, %v2901_v5  ;;  %v11876_v5 = vld [vmem:[%s12492_s3] sm:$0xff] }
0x156f   :  { %v2910_v11 = vadd.f32 %v9104_v9, %v2903_v10 }
0x1570   :  { %v11109_v12 = vpop.eup %11108 }
0x1571   :  { %v2904_v17 = vmul.f32 %v11109_v12, %v2902_v51  ;;  %9877 = vmatprep.mubr.msk.f32.mxu1 %vm43_vm0, %v2910_v11 }
0x1573   :  { %v2911_v55 = vadd.f32 %v9104_v9, %v2904_v17 }
0x1574   :  { %v11111_v23 = vpop.eup %11110 }
0x1575   :  { %v11113_v8 = vpop.eup %11112  ;;  %9878 = vmatmul.mubr.msk.f32.vlgmr.msra.gmra.mrb[22].mxu1 %vm43_vm0, %v2911_v55  ;;  %v3202_v7 = vmul.f32 %v11111_v23, %v3200_v24 }
0x1576   :  { %10476 = vmatpush3.bf16.msra.mxu1 %v11784_v22  ;;  %v3201_v25 = vmul.f32 %v11113_v8, %v3199_v15 }
0x1577   :  { %10478 = vmatprep.subr.bf16.mxu1 %v10477_v21  ;;  %v3209_v27 = vadd.f32 %v9114_v48, %v3202_v7 }
0x1578   :  { %v3208_v26 = vadd.f32 %v9114_v48, %v3201_v25 }
0x157a   :  { %10480 = vmatpush3.bf16.msra.mxu1 %v10477_v21  ;;  %9907 = vmatprep.mubr.msk.f32.mxu1 %vm43_vm0, %v3208_v26 }
0x157d   :  { %9908 = vmatmul.mubr.msk.f32.vlgmr.msra.gmra.mrb[24].mxu1 %vm43_vm0, %v3209_v27 }
0x1648   :  { %v9879_v22 = vpop.f32.mrb[22].mxu1 }
0x1649   :  { %v2999_v30 = vadd.f32 %v9879_v22, %v9105_v28  ;;  %v2993_v31 = vpop.f32.mrb[23].mxu1 }
0x164a   :  { %v2994_v32 = vadd.f32 %v9105_v28, %v2993_v31 }
0x164b   :  { %v3003_v34 = vmax.f32 %v2999_v30, 0.0 }
0x164c   :  { %v3002_v33 = vmax.f32 %v2994_v32, 0.0 }
0x164e   :  { %9896 = vmatprep.mubr.msk.f32.mxu0 %vm1491_vm12, %v3002_v33 }
0x164f   :  { %9897 = vmatmul.mubr.msk.f32.vlgmr.msra.gmra.mrb[22].mxu0 %vm1491_vm12, %v3003_v34 }
0x1650   :  { %v9909_v36 = vpop.f32.mrb[24].mxu1 }
0x1651   :  { %v11816_v18 = vadd.f32 %v9909_v36, %v9115_v35  ;;  %v3293_v37 = vpop.f32.mrb[25].mxu1 }
0x1652   :  { %v11818_v20 = vadd.f32 %v9115_v35, %v3293_v37 }
0x1654   :  { %9914 = vmatprep.mubr.msk.f32.mxu1 %vm197_vm5, %v11818_v20  ;;  %v11824_v19 = vpack.i.bf16 %v11816_v18, %v11818_v20 }
0x1656   :  { %10866 = vrot.lane.b32.xlu1 %v11824_v19, %s11355_s23  ;;  %10861 = vrot.lane.b32.xlu0 %v11824_v19, %s11356_s24 }
0x165a   :  { %3501 = vrot.lane.b32.xlu1 %v11818_v20, %s11357_s25  ;;  %10871 = vrot.lane.b32.xlu0 %v11824_v19, %s11358_s26 }
0x165e   :  { %3503 = vrot.lane.b32.xlu1 %v11816_v18, %s11357_s25  ;;  %3866 = vrot.lane.b32.xlu0 %v11816_v18, %s11359_s27 }
0x1662   :  { %3864 = vrot.lane.b32.xlu1 %v11818_v20, %s11359_s27 }
0x16c8   :  { %v10867_v38 = vpop.permute.xlu1 %10866  ;;  %v10862_v39 = vpop.permute.xlu0 %10861 }
0x16c9   :  { %v10869_v40 = vunpack.i.h.bf16 %v10867_v38  ;;  %v10868_v41 = vunpack.i.l.bf16 %v10867_v38  ;;  %v10864_v42 = vunpack.i.h.bf16 %v10862_v39  ;;  %v10863_v45 = vunpack.i.l.bf16 %v10862_v39 }
0x16cb   :  { %v10481_v47 = vpack.c.bf16 %v10864_v42, %v10863_v45  ;;  %v10491_v29 = vpack.c.bf16 %v10869_v40, %v10868_v41 }
0x16cc   :  { %v10872_v49 = vpop.permute.xlu0 %10871  ;;  %v3502_v50 = vpop.permute.xlu1 %3501 }
0x16cd   :  { %10483 = vmatprep.subr.msk.bf16.mxu1 %vm11477_vm6, %v10481_v47  ;;  %v10874_v52 = vunpack.i.h.bf16 %v10872_v49  ;;  %v10873_v53 = vunpack.i.l.bf16 %v10872_v49 }
0x16ce   :  { %10486 = vmatpush3.bf16.xpose.msk.msra.mxu1 %vm11477_vm6, %v10481_v47 }
0x16cf   :  { %10493 = vmatprep.subr.msk.bf16.mxu1 %vm11477_vm6, %v10491_v29  ;;  %v10501_v54 = vpack.c.bf16 %v10874_v52, %v10873_v53 }
0x16d0   :  { %v3504_v56 = vpop.permute.xlu1 %3503  ;;  %v3867_v59 = vpop.permute.xlu0 %3866 }
0x16d4   :  { %v3865_v57 = vpop.permute.xlu1 %3864 }
0x16d5   :  { %9915 = vmatmul.mubr.msk.f32.vlgmr.msra.gmra.mrb[26].mxu1 %vm197_vm5, %v11816_v18 }
0x16d6   :  { %10496 = vmatpush3.bf16.xpose.msk.msra.mxu1 %vm11477_vm6, %v10491_v29  ;;  %9928 = vmatprep.mubr.msk.f32.mxu1 %vm197_vm5, %v3502_v50 }
0x16d7   :  { %10503 = vmatprep.subr.msk.bf16.mxu1 %vm11477_vm6, %v10501_v54 }
0x16dd   :  { %9929 = vmatmul.mubr.msk.f32.vlgmr.msra.gmra.mrb[28].mxu1 %vm197_vm5, %v3504_v56 }
0x16de   :  { %10506 = vmatpush3.bf16.xpose.msk.msra.mxu1 %vm11477_vm6, %v10501_v54  ;;  %9952 = vmatprep.mubr.msk.f32.mxu1 %vm197_vm5, %v3865_v57 }
0x16e5   :  { %9953 = vmatmul.mubr.msk.f32.vlgmr.msra.gmra.mrb[30].mxu1 %vm197_vm5, %v3867_v59 }
0x1722   :  { %v9898_v62 = vpop.f32.mrb[22].mxu0 }
0x1723   :  { %v11864_v63 = vadd.f32 %v9898_v62, %v11861_v61  ;;  %v11866_v2 = vpop.f32.mrb[23].mxu0 }
0x17a8   :  { %v9916_v6 = vpop.f32.mrb[26].mxu1 }
0x17a9   :  { %v3388_v9 = vadd.f32 %v9916_v6, %v11871_v3  ;;  %v3382_v10 = vpop.f32.mrb[27].mxu1 }
0x17aa   :  { %v3383_v51 = vadd.f32 %v3382_v10, %v11876_v5 }
0x17ab   :  { %v3394_v11 = vsel %vm281_vm7, %v3388_v9, -inf }
0x17ac   :  { %3395 = vmax.xlane.f32.xlu0 %v3394_v11  ;;  %v3391_v12 = vsel %vm281_vm7, %v3383_v51, -inf }
0x17ad   :  { %3392 = vmax.xlane.f32.xlu1 %v3391_v12 }
0x17b0   :  { %v9930_v13 = vpop.f32.mrb[28].mxu1 }
0x17b1   :  { %v3583_v14 = vpop.f32.mrb[29].mxu1  ;;  %v3589_v17 = vadd.f32 %v9930_v13, %v11871_v3 }
0x17b2   :  { %v3584_v16 = vadd.f32 %v3583_v14, %v11876_v5 }
0x17b3   :  { %v3595_v23 = vsel %vm281_vm7, %v3589_v17, -inf }
0x17b4   :  { %v3592_v55 = vsel %vm281_vm7, %v3584_v16, -inf }
0x17b5   :  { %3593 = vmax.xlane.f32.xlu0 %v3592_v55 }
0x17b8   :  { %v9954_v21 = vpop.f32.mrb[30].mxu1 }
0x17b9   :  { %v3946_v15 = vpop.f32.mrb[31].mxu1  ;;  %3596 = vmax.xlane.f32.xlu0 %v3595_v23  ;;  %v3952_v40 = vadd.f32 %v9954_v21, %v11871_v3 }
0x17ba   :  { %v3947_v38 = vadd.f32 %v3946_v15, %v11876_v5 }
0x17bb   :  { %v3958_v41 = vsel %vm281_vm7, %v3952_v40, -inf }
0x17bc   :  { %v3955_v39 = vsel %vm281_vm7, %v3947_v38, -inf }
0x1839   :  { %v3396_v8 = vpop.xlane.xlu0 %3395 }
0x183a   :  { %v3398_v24 = vsub.f32 %v3388_v9, %v3396_v8  ;;  %v3393_v48 = vpop.xlane.xlu1 %3392 }
0x183b   :  { %v3397_v25 = vsub.f32 %v3383_v51, %v3393_v48 }
0x183c   :  { %v3401_v7 = vmul.f32 1.442695, %v3398_v24 }
0x183d   :  { %v3399_v26 = vmul.f32 1.442695, %v3397_v25 }
0x183e   :  { %11114 = vpow2.f32 %v3401_v7 }
0x183f   :  { %11116 = vpow2.f32 %v3399_v26 }
0x1842   :  { %v3594_v27 = vpop.xlane.xlu0 %3593 }
0x1843   :  { %v3598_v60 = vsub.f32 %v3584_v16, %v3594_v27 }
0x1845   :  { %v3600_v4 = vmul.f32 1.442695, %v3598_v60  ;;  %v3701_v60 = vld [vmem:[#allocation2 + $0x168] sm:$0xff] }
0x1846   :  { %v3597_v1 = vpop.xlane.xlu0 %3596 }
0x1847   :  { %11118 = vpow2.f32 %v3600_v4  ;;  %v3599_v28 = vsub.f32 %v3589_v17, %v3597_v1  ;;  %v3500_v4 = vld [vmem:[#allocation2 + $0x160] sm:$0xff]  ;;  %v3090_v1 = vadd.f32 %v11861_v61, %v11866_v2 }
0x1848   :  { %v11115_v22 = vpop.eup %11114 }
0x1849   :  { %v11117_v30 = vpop.eup %11116  ;;  %v3602_v31 = vmul.f32 1.442695, %v3599_v28  ;;  %v3406_v32 = vsel %vm281_vm7, %v11115_v22, 0.0  ;;  %v11921_v28 = vadd.f32 %v3090_v1, %v11740_v44 }
0x184a   :  { %3407 = vadd.xlane.f32.xlu0 %v3406_v32  ;;  %v3403_v33 = vsel %vm281_vm7, %v11117_v30, 0.0 }
0x184b   :  { %11120 = vpow2.f32 %v3602_v31  ;;  %3404 = vadd.xlane.f32.xlu1 %v3403_v33 }
0x1851   :  { %v11119_v34 = vpop.eup %11118 }
0x1852   :  { %v3604_v35 = vsel %vm281_vm7, %v11119_v34, 0.0 }
0x1853   :  { %3605 = vadd.xlane.f32.xlu1 %v3604_v35 }
0x1855   :  { %v11121_v36 = vpop.eup %11120 }
0x1856   :  { %v3607_v37 = vsel %vm281_vm7, %v11121_v36, 0.0 }
0x1857   :  { %3608 = vadd.xlane.f32.xlu0 %v3607_v37 }
0x1864   :  { %10876 = vrot.lane.b32.xlu1 %v11824_v19, %s11360_s9 }
0x1868   :  { %10886 = vrot.lane.b32.xlu1 %v11824_v19, %s11361_s10 }
0x186c   :  { %4148 = vrot.lane.b32.xlu1 %v11818_v20, %s11362_s13 }
0x186d   :  { %10881 = vrot.lane.b32.xlu0 %v11824_v19, %s11363_s14 }
0x1870   :  { %4150 = vrot.lane.b32.xlu1 %v11816_v18, %s11362_s13 }
0x188c   :  { %3956 = vmax.xlane.f32.xlu0 %v3955_v39 }
0x1894   :  { %3959 = vmax.xlane.f32.xlu1 %v3958_v41 }
0x18d7   :  { %v3408_v45 = vpop.xlane.xlu0 %3407 }
0x18d8   :  { %v3405_v42 = vpop.xlane.xlu1 %3404 }
0x18d9   :  { %11122 = vrcp.f32 %v3405_v42 }
0x18da   :  { %11124 = vrcp.f32 %v3408_v45 }
0x18e0   :  { %v3606_v20 = vpop.xlane.xlu1 %3605 }
0x18e1   :  { %11126 = vrcp.f32 %v3606_v20 }
0x18e3   :  { %v11123_v47 = vpop.eup %11122 }
0x18e4   :  { %v3609_v29 = vpop.xlane.xlu0 %3608  ;;  %v10877_v49 = vpop.permute.xlu1 %10876  ;;  %v3411_v18 = vmul.f32 %v11123_v47, %v11117_v30 }
0x18e5   :  { %11128 = vrcp.f32 %v3609_v29  ;;  %v10879_v50 = vunpack.i.h.bf16 %v10877_v49  ;;  %v10878_v52 = vunpack.i.l.bf16 %v10877_v49  ;;  %v11125_v54 = vpop.eup %11124 }
0x18e6   :  { %9921 = vmatprep.mubr.msk.f32.mxu0 %vm281_vm7, %v3411_v18  ;;  %v3412_v11 = vmul.f32 %v11125_v54, %v11115_v22  ;;  %v3100_v22 = vsel %vm43_vm0, %v11921_v28, 0.0 }
0x18e7   :  { %v10487_v53 = vpack.c.bf16 %v10879_v50, %v10878_v52 }
0x18e8   :  { %v10882_v56 = vpop.permute.xlu0 %10881  ;;  %v10887_v57 = vpop.permute.xlu1 %10886 }
0x18e9   :  { %v10884_v59 = vunpack.i.h.bf16 %v10882_v56  ;;  %v10883_v62 = vunpack.i.l.bf16 %v10882_v56  ;;  %v10889_v6 = vunpack.i.h.bf16 %v10887_v57  ;;  %v10888_v9 = vunpack.i.l.bf16 %v10887_v57  ;;  %10488 = vmatprep.subr.bf16.mxu0 %v10487_v53 }
0x18ea   :  { %10490 = vmatpush3.bf16.msra.mxu0 %v10487_v53 }
0x18eb   :  { %v11127_v10 = vpop.eup %11126  ;;  %v10511_v51 = vpack.c.bf16 %v10889_v6, %v10888_v9  ;;  %v10497_v12 = vpack.c.bf16 %v10884_v59, %v10883_v62  ;;  %v3099_v62 = vadd.f32 %v11864_v63, %v11737_v43 }
0x18ec   :  { %v4149_v13 = vpop.permute.xlu1 %4148  ;;  %v3612_v14 = vmul.f32 %v11127_v10, %v11119_v34 }
0x18ed   :  { %9922 = vmatmul.mubr.msk.f32.vlgmr.msra.gmra.mrb[24].mxu0 %vm281_vm7, %v3412_v11  ;;  %10498 = vmatprep.subr.bf16.mxu0 %v10497_v12  ;;  %v3103_v10 = vsel %vm43_vm0, %v3099_v62, 0.0 }
0x18ee   :  { %10513 = vmatprep.subr.msk.bf16.mxu1 %vm11477_vm6, %v10511_v51  ;;  %9971 = vmatprep.mubr.msk.f32.mxu1 %vm197_vm5, %v4149_v13 }
0x18ef   :  { %v11129_v16 = vpop.eup %11128  ;;  %10500 = vmatpush3.bf16.msra.mxu0 %v10497_v12  ;;  %9935 = vmatprep.mubr.msk.f32.mxu0 %vm281_vm7, %v3612_v14 }
0x18f0   :  { %10516 = vmatpush3.bf16.xpose.msk.msra.mxu1 %vm11477_vm6, %v10511_v51  ;;  %v3613_v17 = vmul.f32 %v11129_v16, %v11121_v36  ;;  %v4151_v55 = vpop.permute.xlu1 %4150  ;;  %9938 = vmatprep.subr.mxu0 %v3701_v60  ;;  %v4348_v16 = vld [vmem:[#allocation2 + $0x178] sm:$0xff] }
0x18f2   :  { %9936 = vmatmul.mubr.msk.f32.vlgmr.msra.gmra.mrb[26].mxu0 %vm281_vm7, %v3613_v17 }
0x18f3   :  { %9939 = vmatpush3.msra.mxu0 %v3701_v60 }
0x18f4   :  { %9943 = vmatprep.subr.mxu0 %v3500_v4 }
0x18f7   :  { %9972 = vmatmul.mubr.msk.f32.vlgmr.msra.gmra.mrb[32].mxu1 %vm197_vm5, %v4151_v55 }
0x1919   :  { %v3957_v21 = vpop.xlane.xlu0 %3956 }
0x191a   :  { %v3961_v23 = vsub.f32 %v3947_v38, %v3957_v21 }
0x191c   :  { %v3963_v24 = vmul.f32 1.442695, %v3961_v23 }
0x1921   :  { %v3960_v15 = vpop.xlane.xlu1 %3959 }
0x1922   :  { %v3962_v8 = vsub.f32 %v3952_v40, %v3960_v15 }
0x1924   :  { %v3965_v48 = vmul.f32 1.442695, %v3962_v8  ;;  %v9150_v8 = vld [vmem:[%s12495_s6 + $0x19] ss:$0 sm:$0xff] }
0x1926   :  { %11130 = vpow2.f32 %v3965_v48 }
0x1927   :  { %11132 = vpow2.f32 %v3963_v24 }
0x1930   :  { %v11131_v25 = vpop.eup %11130 }
0x1931   :  { %v3970_v7 = vsel %vm281_vm7, %v11131_v25, 0.0  ;;  %v11133_v26 = vpop.eup %11132 }
0x1932   :  { %3971 = vadd.xlane.f32.xlu0 %v3970_v7  ;;  %v3967_v27 = vsel %vm281_vm7, %v11133_v26, 0.0 }
0x1936   :  { %3968 = vadd.xlane.f32.xlu0 %v3967_v27 }
0x194c   :  { %10891 = vrot.lane.b32.xlu0 %v11824_v19, %s11364_s15 }
0x196b   :  { %3101 = vadd.xlane.f32.xlu0 %v3100_v22 }
0x19bf   :  { %v3972_v30 = vpop.xlane.xlu0 %3971 }
0x19c0   :  { %v9923_v31 = vpop.f32.mrb[24].mxu0 }
0x19c1   :  { %v3491_v32 = vpop.f32.mrb[25].mxu0 }
0x19c3   :  { %v3969_v33 = vpop.xlane.xlu0 %3968 }
0x19c4   :  { %11134 = vrcp.f32 %v3969_v33 }
0x19c5   :  { %11136 = vrcp.f32 %v3972_v30  ;;  %v9937_v34 = vpop.f32.mrb[26].mxu0 }
0x19c6   :  { %v3692_v35 = vpop.f32.mrb[27].mxu0 }
0x19c7   :  { %v10892_v36 = vpop.permute.xlu0 %10891  ;;  %9940 = vmatprep.mubr.msk.f32.mxu0 %vm197_vm5, %v3692_v35  ;;  %v4587_v35 = vld [vmem:[#allocation2 + $0x1a0] sm:$0xff] }
0x19c8   :  { %v10894_v37 = vunpack.i.h.bf16 %v10892_v36  ;;  %v10893_v61 = vunpack.i.l.bf16 %v10892_v36  ;;  %9941 = vmatmul.mubr.msk.f32.vlgmr.msra.gmra.mrb[28].mxu0 %vm197_vm5, %v9937_v34  ;;  %v4589_v36 = vld [vmem:[#allocation2 + $0x1b0] sm:$0xff] }
0x19c9   :  { %9945 = vmatprep.mubr.msk.f32.mxu0 %vm197_vm5, %v3491_v32  ;;  %9944 = vmatpush3.msra.mxu0 %v3500_v4 }
0x19ca   :  { %v9973_v44 = vpop.f32.mrb[32].mxu1  ;;  %v10507_v2 = vpack.c.bf16 %v10894_v37, %v10893_v61  ;;  %v4590_v61 = vld [vmem:[#allocation2 + $0x1b8] sm:$0xff] }
0x19cb   :  { %v4230_v38 = vpop.f32.mrb[33].mxu1  ;;  %v4236_v41 = vadd.f32 %v9973_v44, %v11871_v3  ;;  %v10533_v44 = vpack.c.bf16 %v4590_v61, %v4589_v36 }
0x19cc   :  { %v4231_v39 = vadd.f32 %v4230_v38, %v11876_v5  ;;  %10508 = vmatprep.subr.bf16.mxu0 %v10507_v2  ;;  %v4064_v5 = vld [vmem:[#allocation2 + $0x170] sm:$0xff] }
0x19cd   :  { %v4242_v47 = vsel %vm281_vm7, %v4236_v41, -inf }
0x19ce   :  { %v11135_v40 = vpop.eup %11134  ;;  %v4239_v42 = vsel %vm281_vm7, %v4231_v39, -inf }
0x19cf   :  { %v11137_v45 = vpop.eup %11136  ;;  %4240 = vmax.xlane.f32.xlu1 %v4239_v42  ;;  %v3975_v20 = vmul.f32 %v11135_v40, %v11133_v26 }
0x19d0   :  { %9946 = vmatmul.mubr.msk.f32.vlgmr.msra.gmra.mrb[28].mxu0 %vm197_vm5, %v9923_v31  ;;  %v3976_v29 = vmul.f32 %v11137_v45, %v11131_v25 }
0x19d1   :  { %10510 = vmatpush3.bf16.msra.mxu0 %v10507_v2  ;;  %9959 = vmatprep.mubr.msk.f32.mxu0 %vm281_vm7, %v3975_v20 }
0x19d2   :  { %9962 = vmatprep.subr.mxu0 %v4064_v5 }
0x19d3   :  { %4243 = vmax.xlane.f32.xlu1 %v4242_v47 }
0x19d4   :  { %9960 = vmatmul.mubr.msk.f32.vlgmr.msra.gmra.mrb[30].mxu0 %vm281_vm7, %v3976_v29 }
0x19d5   :  { %9963 = vmatpush3.msra.mxu0 %v4064_v5 }
0x19f8   :  { %v3102_v15 = vpop.xlane.xlu0 %3101 }
0x19f9   :  { %v3106_v25 = vmul.f32 0.03125, %v3102_v15  ;;  %v4499_v15 = vld [vmem:[#allocation2 + $0x190] sm:$0xff] }
0x19fb   :  { %v3108_v4 = vsub.f32 %v11921_v28, %v3106_v25 }
0x19fd   :  { %v3110_v33 = vmul.f32 %v3108_v4, %v3108_v4 }
0x19ff   :  { %v3112_v34 = vsel %vm43_vm0, %v3110_v33, 0.0 }
0x1a5c   :  { %v4241_v3 = vpop.xlane.xlu1 %4240 }
0x1a5d   :  { %v4245_v49 = vsub.f32 %v4231_v39, %v4241_v3 }
0x1a5f   :  { %v4247_v52 = vmul.f32 1.442695, %v4245_v49 }
0x1a60   :  { %v4244_v18 = vpop.xlane.xlu1 %4243 }
0x1a61   :  { %v4246_v50 = vsub.f32 %v4236_v41, %v4244_v18 }
0x1a63   :  { %v4249_v53 = vmul.f32 1.442695, %v4246_v50 }
0x1a65   :  { %11138 = vpow2.f32 %v4249_v53 }
0x1a66   :  { %11140 = vpow2.f32 %v4247_v52 }
0x1a6f   :  { %v11139_v54 = vpop.eup %11138 }
0x1a70   :  { %v4254_v56 = vsel %vm281_vm7, %v11139_v54, 0.0  ;;  %v11141_v57 = vpop.eup %11140 }
0x1a71   :  { %4255 = vadd.xlane.f32.xlu1 %v4254_v56  ;;  %v4251_v59 = vsel %vm281_vm7, %v11141_v57, 0.0 }
0x1a75   :  { %4252 = vadd.xlane.f32.xlu1 %v4251_v59 }
0x1a86   :  { %10896 = vrot.lane.b32.xlu1 %v11824_v19, %s11365_s16 }
0x1aa7   :  { %v9961_v6 = vpop.f32.mrb[30].mxu0 }
0x1aa8   :  { %v4055_v9 = vpop.f32.mrb[31].mxu0 }
0x1aa9   :  { %9964 = vmatprep.mubr.msk.f32.mxu0 %vm197_vm5, %v4055_v9 }
0x1aaa   :  { %3104 = vadd.xlane.f32.xlu1 %v3103_v10  ;;  %9965 = vmatmul.mubr.msk.f32.vlgmr.msra.gmra.mrb[28].mxu0 %vm197_vm5, %v9961_v6 }
0x1afe   :  { %v4256_v51 = vpop.xlane.xlu1 %4255 }
0x1aff   :  { %11142 = vrcp.f32 %v4256_v51 }
0x1b02   :  { %v4253_v11 = vpop.xlane.xlu1 %4252 }
0x1b03   :  { %11144 = vrcp.f32 %v4253_v11  ;;  %v9111_v11 = vld [vmem:[%s12495_s6 + $0x10] ss:$0 sm:$0xff] }
0x1b06   :  { %v10897_v12 = vpop.permute.xlu1 %10896 }
0x1b07   :  { %v10899_v13 = vunpack.i.h.bf16 %v10897_v12  ;;  %v10898_v14 = vunpack.i.l.bf16 %v10897_v12  ;;  %v3143_v12 = vmul.f32 %v9111_v11, %v3108_v4 }
0x1b09   :  { %v10517_v19 = vpack.c.bf16 %v10899_v13, %v10898_v14  ;;  %v11143_v43 = vpop.eup %11142  ;;  %v9112_v14 = vld [vmem:[%s12495_s6 + $0x11] ss:$0 sm:$0xff] }
0x1b0a   :  { %v4260_v55 = vmul.f32 %v11143_v43, %v11139_v54 }
0x1b0b   :  { %10518 = vmatprep.subr.bf16.mxu0 %v10517_v19 }
0x1b0c   :  { %10520 = vmatpush3.bf16.msra.mxu0 %v10517_v19 }
0x1b0d   :  { %v11145_v63 = vpop.eup %11144  ;;  %9981 = vmatprep.subr.mxu0 %v4348_v16 }
0x1b0e   :  { %v4259_v17 = vmul.f32 %v11145_v63, %v11141_v57 }
0x1b10   :  { %9978 = vmatprep.mubr.msk.f32.mxu0 %vm281_vm7, %v4259_v17 }
0x1b11   :  { %9979 = vmatmul.mubr.msk.f32.vlgmr.msra.gmra.mrb[32].mxu0 %vm281_vm7, %v4260_v55 }
0x1b12   :  { %9982 = vmatpush3.msra.mxu0 %v4348_v16 }
0x1b37   :  { %v3105_v27 = vpop.xlane.xlu1 %3104 }
0x1b38   :  { %v3107_v1 = vmul.f32 0.03125, %v3105_v27 }
0x1b3a   :  { %v3109_v31 = vsub.f32 %v3099_v62, %v3107_v1 }
0x1b3c   :  { %v3144_v16 = vmul.f32 %v9111_v11, %v3109_v31 }
0x1be4   :  { %v9980_v21 = vpop.f32.mrb[32].mxu0 }
0x1be5   :  { %v4339_v23 = vpop.f32.mrb[33].mxu0 }
0x1be6   :  { %9983 = vmatprep.mubr.msk.f32.mxu0 %vm197_vm5, %v4339_v23  ;;  %v4498_v23 = vld [vmem:[#allocation2 + $0x188] sm:$0xff] }
0x1be7   :  { %9984 = vmatmul.mubr.msk.f32.vlgmr.msra.gmra.mrb[28].mxu0 %vm197_vm5, %v9980_v21  ;;  %v4497_v21 = vld [vmem:[#allocation2 + $0x180] sm:$0xff] }
0x1cba   :  { %v9985_v24 = vpop.f32.mrb[28].mxu0 }
0x1cbb   :  { %v4421_v48 = vpop.f32.mrb[29].mxu0  ;;  %v4438_v7 = vadd.f32 %v9985_v24, %v9150_v8  ;;  %v4500_v24 = vld [vmem:[#allocation2 + $0x198] sm:$0xff] }
0x1cbc   :  { %v4437_v26 = vadd.f32 %v9150_v8, %v4421_v48  ;;  %v10521_v8 = vpack.c.bf16 %v4498_v23, %v4497_v21  ;;  %v10525_v48 = vpack.c.bf16 %v4500_v24, %v4499_v15 }
0x1cbd   :  { %v11956_v22 = vadd.f32 %v4438_v7, %v11756_v0  ;;  %v4588_v0 = vld [vmem:[#allocation2 + $0x1a8] sm:$0xff] }
0x1cbe   :  { %v11952_v60 = vadd.f32 %v4437_v26, %v11747_v46  ;;  %v3111_v46 = vmul.f32 %v3109_v31, %v3109_v31  ;;  %v10529_v37 = vpack.c.bf16 %v4588_v0, %v4587_v35  ;;  %10522 = vmatprep.subr.bf16.mxu1 %v10521_v8 }
0x1cbf   :  { %v4444_v32 = vsel %vm43_vm0, %v11956_v22, 0.0  ;;  %10524 = vmatpush3.bf16.msra.mxu1 %v10521_v8 }
0x1cc0   :  { %v4441_v30 = vsel %vm43_vm0, %v11952_v60, 0.0  ;;  %v3115_v28 = vsel %vm43_vm0, %v3111_v46, 0.0  ;;  %10530 = vmatprep.subr.bf16.mxu0 %v10529_v37  ;;  %10526 = vmatprep.subr.bf16.mxu1 %v10525_v48 }
0x1cc1   :  { %4442 = vadd.xlane.f32.xlu0 %v4441_v30  ;;  %10532 = vmatpush3.bf16.msra.mxu0 %v10529_v37  ;;  %v9151_v37 = vld [vmem:[%s12495_s6 + $0x14] ss:$0 sm:$0xff] }
0x1cc2   :  { %10534 = vmatprep.subr.bf16.mxu0 %v10533_v44 }
0x1cc3   :  { %10528 = vmatpush3.bf16.msra.mxu1 %v10525_v48 }
0x1cc5   :  { %4445 = vadd.xlane.f32.xlu0 %v4444_v32  ;;  %10536 = vmatpush3.bf16.msra.mxu0 %v10533_v44 }
0x1cc9   :  { %3113 = vadd.xlane.f32.xlu0 %v3112_v34 }
0x1ccd   :  { %3116 = vadd.xlane.f32.xlu0 %v3115_v28 }
0x1d4e   :  { %v4443_v2 = vpop.xlane.xlu0 %4442 }
0x1d4f   :  { %v4447_v38 = vmul.f32 0.03125, %v4443_v2  ;;  %v9152_v2 = vld [vmem:[%s12495_s6 + $0x15] ss:$0 sm:$0xff] }
0x1d51   :  { %v11965_v39 = vsub.f32 %v11952_v60, %v4447_v38 }
0x1d52   :  { %v4446_v40 = vpop.xlane.xlu0 %4445 }
0x1d53   :  { %v4448_v41 = vmul.f32 0.03125, %v4446_v40  ;;  %v4451_v42 = vmul.f32 %v11965_v39, %v11965_v39  ;;  %v4484_v61 = vmul.f32 %v9151_v37, %v11965_v39  ;;  %v9156_v39 = vld [vmem:[%s12495_s6 + $0x1b] ss:$0 sm:$0xff] }
0x1d55   :  { %v11970_v45 = vsub.f32 %v11956_v22, %v4448_v41  ;;  %v4453_v20 = vsel %vm43_vm0, %v4451_v42, 0.0 }
0x1d56   :  { %4454 = vadd.xlane.f32.xlu0 %v4453_v20  ;;  %v3114_v47 = vpop.xlane.xlu0 %3113 }
0x1d57   :  { %v3118_v29 = vmul.f32 0.032258064, %v3114_v47  ;;  %v4452_v5 = vmul.f32 %v11970_v45, %v11970_v45  ;;  %v4485_v41 = vmul.f32 %v9151_v37, %v11970_v45 }
0x1d59   :  { %11146 = vrsqrt.f32 %v3118_v29  ;;  %v4456_v3 = vsel %vm43_vm0, %v4452_v5, 0.0  ;;  %vm3122_vm14 = vcmp.eq.f32.partialorder %v3118_v29, inf  ;;  %v3125_v53 = vand.u32 2147483648, %v3118_v29 }
0x1d5a   :  { %v3117_v49 = vpop.xlane.xlu0 %3116  ;;  %4457 = vadd.xlane.f32.xlu1 %v4456_v3  ;;  %vm3124_vm15 = vcmp.eq.f32.partialorder %v3118_v29, 0.0 }
0x1d5b   :  { %v3119_v18 = vmul.f32 0.032258064, %v3117_v49 }
0x1d5d   :  { %11148 = vrsqrt.f32 %v3119_v18  ;;  %vm3129_vm1 = vcmp.eq.f32.partialorder %v3119_v18, inf  ;;  %v3132_v6 = vand.u32 2147483648, %v3119_v18  ;;  %vm3131_vm2 = vcmp.eq.f32.partialorder %v3119_v18, 0.0 }
0x1d63   :  { %v11147_v50 = vpop.eup %11146 }
0x1d64   :  { %v3121_v52 = vmul.f32 %v11147_v50, %v3118_v29 }
0x1d66   :  { %v3123_v54 = vsel %vm3122_vm14, %v3118_v29, %v3121_v52 }
0x1d67   :  { %v11149_v56 = vpop.eup %11148  ;;  %v3126_v57 = vsel %vm3124_vm15, %v3125_v53, %v3123_v54 }
0x1d68   :  { %v3128_v59 = vmul.f32 %v11149_v56, %v3119_v18  ;;  %v3134_v62 = vadd.f32 1e-06, %v3126_v57  ;;  %v9153_v56 = vld [vmem:[%s12495_s6 + $0x1a] ss:$0 sm:$0xff] }
0x1d6a   :  { %v3130_v9 = vsel %vm3129_vm1, %v3119_v18, %v3128_v59  ;;  %11150 = vrcp.f32 %v3134_v62 }
0x1d6b   :  { %v3133_v10 = vsel %vm3131_vm2, %v3132_v6, %v3130_v9 }
0x1d6c   :  { %v3135_v51 = vadd.f32 1e-06, %v3133_v10 }
0x1d6e   :  { %11152 = vrcp.f32 %v3135_v51 }
0x1d74   :  { %v11151_v13 = vpop.eup %11150 }
0x1d75   :  { %v3145_v19 = vmul.f32 %v11151_v13, %v3143_v12 }
0x1d77   :  { %v11982_v43 = vadd.f32 %v9112_v14, %v3145_v19 }
0x1d78   :  { %v11153_v63 = vpop.eup %11152 }
0x1d79   :  { %v3146_v17 = vmul.f32 %v11153_v63, %v3144_v16  ;;  %10005 = vmatprep.mubr.msk.f32.mxu0 %vm43_vm0, %v11982_v43  ;;  %v12047_v16 = vld [vmem:[%s12493_s4 + $0x8] sm:$0xff]  ;;  %v12052_v63 = vld [vmem:[%s12493_s4] sm:$0xff] }
0x1d7b   :  { %v11986_v55 = vadd.f32 %v9112_v14, %v3146_v17 }
0x1d7d   :  { %10006 = vmatmul.mubr.msk.f32.vlgmr.msra.gmra.mrb[34].mxu0 %vm43_vm0, %v11986_v55 }
0x1de3   :  { %v4455_v25 = vpop.xlane.xlu0 %4454 }
0x1de4   :  { %v4459_v7 = vmul.f32 0.032258064, %v4455_v25 }
0x1de6   :  { %11154 = vrsqrt.f32 %v4459_v7  ;;  %vm4463_vm3 = vcmp.eq.f32.partialorder %v4459_v7, inf  ;;  %v4466_v30 = vand.u32 2147483648, %v4459_v7  ;;  %vm4465_vm4 = vcmp.eq.f32.partialorder %v4459_v7, 0.0 }
0x1de7   :  { %v4458_v26 = vpop.xlane.xlu1 %4457 }
0x1de8   :  { %v4460_v27 = vmul.f32 0.032258064, %v4458_v26 }
0x1dea   :  { %11156 = vrsqrt.f32 %v4460_v27  ;;  %vm4470_vm8 = vcmp.eq.f32.partialorder %v4460_v27, inf  ;;  %v4473_v28 = vand.u32 2147483648, %v4460_v27  ;;  %vm4472_vm9 = vcmp.eq.f32.partialorder %v4460_v27, 0.0 }
0x1df0   :  { %v11155_v4 = vpop.eup %11154 }
0x1df1   :  { %v4462_v1 = vmul.f32 %v11155_v4, %v4459_v7 }
0x1df3   :  { %v4464_v31 = vsel %vm4463_vm3, %v4459_v7, %v4462_v1 }
0x1df4   :  { %v4467_v32 = vsel %vm4465_vm4, %v4466_v30, %v4464_v31  ;;  %v11157_v33 = vpop.eup %11156 }
0x1df5   :  { %v4475_v34 = vadd.f32 1e-06, %v4467_v32  ;;  %v4469_v46 = vmul.f32 %v11157_v33, %v4460_v27 }
0x1df7   :  { %11158 = vrcp.f32 %v4475_v34  ;;  %v4471_v35 = vsel %vm4470_vm8, %v4460_v27, %v4469_v46 }
0x1df8   :  { %v4474_v0 = vsel %vm4472_vm9, %v4473_v28, %v4471_v35 }
0x1df9   :  { %v4476_v36 = vadd.f32 1e-06, %v4474_v0 }
0x1dfb   :  { %11160 = vrcp.f32 %v4476_v36 }
0x1e01   :  { %v11159_v44 = vpop.eup %11158 }
0x1e02   :  { %v4486_v38 = vmul.f32 %v11159_v44, %v4484_v61 }
0x1e04   :  { %v4493_v40 = vadd.f32 %v9152_v2, %v4486_v38 }
0x1e05   :  { %v11161_v42 = vpop.eup %11160 }
0x1e06   :  { %9994 = vmatprep.mubr.msk.f32.mxu1 %vm43_vm0, %v4493_v40  ;;  %v4487_v20 = vmul.f32 %v11161_v42, %v4485_v41 }
0x1e08   :  { %v4494_v47 = vadd.f32 %v9152_v2, %v4487_v20 }
0x1e0a   :  { %9995 = vmatmul.mubr.msk.f32.vlgmr.msra.gmra.mrb[34].mxu1 %vm43_vm0, %v4494_v47 }
0x1e50   :  { %v10007_v29 = vpop.f32.mrb[34].mxu0 }
0x1e51   :  { %v4674_v5 = vadd.f32 %v10007_v29, %v9156_v39  ;;  %v4668_v3 = vpop.f32.mrb[35].mxu0 }
0x1e52   :  { %v4669_v49 = vadd.f32 %v9156_v39, %v4668_v3 }
0x1e54   :  { %v12003_v18 = vpack.i.bf16 %v4674_v5, %v4669_v49  ;;  %v10537_v50 = vpack.c.bf16 %v4674_v5, %v4669_v49 }
0x1e56   :  { %10901 = vrot.lane.b32.xlu0 %v12003_v18, %s11357_s25  ;;  %10539 = vmatprep.subr.msk.bf16.mxu1 %vm11477_vm6, %v10537_v50 }
0x1e57   :  { %10542 = vmatpush3.bf16.xpose.msk.msra.mxu1 %vm11477_vm6, %v10537_v50 }
0x1ec8   :  { %v10902_v45 = vpop.permute.xlu0 %10901 }
0x1ec9   :  { %v10904_v52 = vunpack.i.h.bf16 %v10902_v45  ;;  %v10903_v53 = vunpack.i.l.bf16 %v10902_v45 }
0x1ecb   :  { %v10547_v54 = vpack.c.bf16 %v10904_v52, %v10903_v53 }
0x1ecd   :  { %10549 = vmatprep.subr.msk.bf16.mxu1 %vm11477_vm6, %v10547_v54 }
0x1edd   :  { %v9996_v57 = vpop.f32.mrb[34].mxu1 }
0x1ede   :  { %v4578_v59 = vpop.f32.mrb[35].mxu1  ;;  %v12018_v6 = vadd.f32 %v9996_v57, %v9153_v56 }
0x1edf   :  { %v12016_v62 = vadd.f32 %v9153_v56, %v4578_v59 }
0x1ee1   :  { %5237 = vrot.lane.b32.xlu0 %v12016_v62, %s11359_s27  ;;  %4874 = vrot.lane.b32.xlu1 %v12016_v62, %s11357_s25 }
0x1ee2   :  { %10012 = vmatprep.mubr.msk.f32.mxu1 %vm197_vm5, %v12016_v62 }
0x1ee3   :  { %10013 = vmatmul.mubr.msk.f32.vlgmr.msra.gmra.mrb[36].mxu1 %vm197_vm5, %v12018_v6 }
0x1ee4   :  { %10552 = vmatpush3.bf16.xpose.msk.msra.mxu1 %vm11477_vm6, %v10547_v54 }
0x1ee5   :  { %4876 = vrot.lane.b32.xlu1 %v12018_v6, %s11357_s25 }
0x1ee9   :  { %10906 = vrot.lane.b32.xlu1 %v12003_v18, %s11359_s27 }
0x1eed   :  { %5239 = vrot.lane.b32.xlu1 %v12018_v6, %s11359_s27 }
0x1f53   :  { %v4875_v9 = vpop.permute.xlu1 %4874  ;;  %v5238_v51 = vpop.permute.xlu0 %5237 }
0x1f54   :  { %10026 = vmatprep.mubr.msk.f32.mxu1 %vm197_vm5, %v4875_v9 }
0x1f57   :  { %v4877_v10 = vpop.permute.xlu1 %4876 }
0x1f58   :  { %10027 = vmatmul.mubr.msk.f32.vlgmr.msra.gmra.mrb[38].mxu1 %vm197_vm5, %v4877_v10 }
0x1f59   :  { %10050 = vmatprep.mubr.msk.f32.mxu1 %vm197_vm5, %v5238_v51 }
0x1f5b   :  { %v10907_v11 = vpop.permute.xlu1 %10906 }
0x1f5c   :  { %v10909_v12 = vunpack.i.h.bf16 %v10907_v11  ;;  %v10908_v13 = vunpack.i.l.bf16 %v10907_v11 }
0x1f5e   :  { %v10557_v14 = vpack.c.bf16 %v10909_v12, %v10908_v13 }
0x1f5f   :  { %v5240_v19 = vpop.permute.xlu1 %5239 }
0x1f60   :  { %10559 = vmatprep.subr.msk.bf16.mxu1 %vm11477_vm6, %v10557_v14 }
0x1f61   :  { %10562 = vmatpush3.bf16.xpose.msk.msra.mxu1 %vm11477_vm6, %v10557_v14 }
0x1f68   :  { %10051 = vmatmul.mubr.msk.f32.vlgmr.msra.gmra.mrb[40].mxu1 %vm197_vm5, %v5240_v19 }
0x1fb6   :  { %v10014_v17 = vpop.f32.mrb[36].mxu1 }
0x1fb7   :  { %v4761_v21 = vadd.f32 %v10014_v17, %v12047_v16  ;;  %v4755_v23 = vpop.f32.mrb[37].mxu1 }
0x1fb8   :  { %v4756_v15 = vadd.f32 %v4755_v23, %v12052_v63 }
0x1fb9   :  { %v4767_v8 = vsel %vm281_vm7, %v4761_v21, -inf }
0x1fba   :  { %4768 = vmax.xlane.f32.xlu1 %v4767_v8  ;;  %v4764_v24 = vsel %vm281_vm7, %v4756_v15, -inf }
0x1fbb   :  { %4765 = vmax.xlane.f32.xlu0 %v4764_v24 }
0x202b   :  { %v10028_v48 = vpop.f32.mrb[38].mxu1 }
0x202c   :  { %v4956_v25 = vpop.f32.mrb[39].mxu1  ;;  %v4962_v26 = vadd.f32 %v10028_v48, %v12047_v16 }
0x202d   :  { %v4957_v7 = vadd.f32 %v4956_v25, %v12052_v63 }
0x202e   :  { %v4968_v4 = vsel %vm281_vm7, %v4962_v26, -inf }
0x202f   :  { %v4965_v27 = vsel %vm281_vm7, %v4957_v7, -inf }
0x2030   :  { %4966 = vmax.xlane.f32.xlu0 %v4965_v27 }
0x2034   :  { %4969 = vmax.xlane.f32.xlu0 %v4968_v4 }
0x203b   :  { %v10052_v1 = vpop.f32.mrb[40].mxu1 }
0x203c   :  { %v5319_v30 = vpop.f32.mrb[41].mxu1  ;;  %v5325_v49 = vadd.f32 %v10052_v1, %v12047_v16 }
0x203d   :  { %v5320_v45 = vadd.f32 %v5319_v30, %v12052_v63 }
0x203e   :  { %v5331_v50 = vsel %vm281_vm7, %v5325_v49, -inf }
0x203f   :  { %v5328_v52 = vsel %vm281_vm7, %v5320_v45, -inf }
0x2047   :  { %v4769_v31 = vpop.xlane.xlu1 %4768 }
0x2048   :  { %v4771_v32 = vsub.f32 %v4761_v21, %v4769_v31  ;;  %v4766_v33 = vpop.xlane.xlu0 %4765 }
0x2049   :  { %v4770_v34 = vsub.f32 %v4756_v15, %v4766_v33 }
0x204a   :  { %v4774_v46 = vmul.f32 1.442695, %v4771_v32 }
0x204b   :  { %v4772_v28 = vmul.f32 1.442695, %v4770_v34  ;;  %v5074_v34 = vld [vmem:[#allocation2 + $0x1c8] sm:$0xff] }
0x204c   :  { %11162 = vpow2.f32 %v4774_v46  ;;  %v4873_v46 = vld [vmem:[#allocation2 + $0x1c0] sm:$0xff] }
0x204d   :  { %11164 = vpow2.f32 %v4772_v28 }
0x2056   :  { %v11163_v35 = vpop.eup %11162 }
0x2057   :  { %v11165_v0 = vpop.eup %11164  ;;  %v4779_v36 = vsel %vm281_vm7, %v11163_v35, 0.0 }
0x2058   :  { %4780 = vadd.xlane.f32.xlu1 %v4779_v36  ;;  %v4776_v37 = vsel %vm281_vm7, %v11165_v0, 0.0 }
0x2059   :  { %4777 = vadd.xlane.f32.xlu0 %v4776_v37 }
0x20bd   :  { %v4967_v61 = vpop.xlane.xlu0 %4966 }
0x20be   :  { %v4971_v44 = vsub.f32 %v4957_v7, %v4967_v61 }
0x20c0   :  { %v4973_v2 = vmul.f32 1.442695, %v4971_v44 }
0x20c1   :  { %v4970_v38 = vpop.xlane.xlu0 %4969 }
0x20c2   :  { %11166 = vpow2.f32 %v4973_v2  ;;  %v4972_v40 = vsub.f32 %v4962_v26, %v4970_v38 }
0x20c4   :  { %v4975_v41 = vmul.f32 1.442695, %v4972_v40 }
0x20c6   :  { %11168 = vpow2.f32 %v4975_v41 }
0x20cc   :  { %v11167_v42 = vpop.eup %11166 }
0x20cd   :  { %v4977_v20 = vsel %vm281_vm7, %v11167_v42, 0.0 }
0x20ce   :  { %4978 = vadd.xlane.f32.xlu0 %v4977_v20 }
0x20d0   :  { %v11169_v47 = vpop.eup %11168 }
0x20d1   :  { %v4980_v39 = vsel %vm281_vm7, %v11169_v47, 0.0 }
0x20d2   :  { %4981 = vadd.xlane.f32.xlu1 %v4980_v39 }
0x20e3   :  { %10916 = vrot.lane.b32.xlu1 %v12003_v18, %s11355_s23 }
0x20e4   :  { %10911 = vrot.lane.b32.xlu0 %v12003_v18, %s11356_s24 }
0x20e5   :  { %v4781_v53 = vpop.xlane.xlu1 %4780 }
0x20e6   :  { %v4778_v29 = vpop.xlane.xlu0 %4777 }
0x20e7   :  { %11170 = vrcp.f32 %v4778_v29  ;;  %10921 = vrot.lane.b32.xlu1 %v12003_v18, %s11362_s13 }
0x20e8   :  { %5523 = vrot.lane.b32.xlu0 %v12018_v6, %s11362_s13  ;;  %11172 = vrcp.f32 %v4781_v53 }
0x20eb   :  { %5521 = vrot.lane.b32.xlu1 %v12016_v62, %s11362_s13 }
0x20f1   :  { %v11171_v5 = vpop.eup %11170 }
0x20f2   :  { %v4784_v3 = vmul.f32 %v11171_v5, %v11165_v0  ;;  %v11173_v9 = vpop.eup %11172 }
0x20f3   :  { %v4785_v13 = vmul.f32 %v11173_v9, %v11163_v35 }
0x20f4   :  { %10019 = vmatprep.mubr.msk.f32.mxu0 %vm281_vm7, %v4784_v3  ;;  %v5437_v3 = vld [vmem:[#allocation2 + $0x1d0] sm:$0xff] }
0x2107   :  { %5332 = vmax.xlane.f32.xlu0 %v5331_v50 }
0x210f   :  { %5329 = vmax.xlane.f32.xlu1 %v5328_v52 }
0x2120   :  { %10926 = vrot.lane.b32.xlu1 %v12003_v18, %s11358_s26 }
0x2124   :  { %10931 = vrot.lane.b32.xlu1 %v12003_v18, %s11361_s10 }
0x215b   :  { %v4979_v54 = vpop.xlane.xlu0 %4978 }
0x215c   :  { %11174 = vrcp.f32 %v4979_v54 }
0x215f   :  { %v4982_v56 = vpop.xlane.xlu1 %4981  ;;  %v10912_v57 = vpop.permute.xlu0 %10911 }
0x2160   :  { %11176 = vrcp.f32 %v4982_v56  ;;  %v10914_v59 = vunpack.i.h.bf16 %v10912_v57  ;;  %v10913_v62 = vunpack.i.l.bf16 %v10912_v57 }
0x2162   :  { %v10543_v6 = vpack.c.bf16 %v10914_v59, %v10913_v62 }
0x2163   :  { %v10917_v10 = vpop.permute.xlu1 %10916  ;;  %v5524_v48 = vpop.permute.xlu0 %5523 }
0x2164   :  { %v10919_v51 = vunpack.i.h.bf16 %v10917_v10  ;;  %v10918_v11 = vunpack.i.l.bf16 %v10917_v10  ;;  %10544 = vmatprep.subr.bf16.mxu0 %v10543_v6 }
0x2165   :  { %10546 = vmatpush3.bf16.msra.mxu0 %v10543_v6 }
0x2166   :  { %v11175_v12 = vpop.eup %11174  ;;  %v10553_v14 = vpack.c.bf16 %v10919_v51, %v10918_v11 }
0x2167   :  { %v10922_v18 = vpop.permute.xlu1 %10921  ;;  %v4985_v19 = vmul.f32 %v11175_v12, %v11167_v42 }
0x2168   :  { %v10924_v17 = vunpack.i.h.bf16 %v10922_v18  ;;  %v10923_v21 = vunpack.i.l.bf16 %v10922_v18  ;;  %10020 = vmatmul.mubr.msk.f32.vlgmr.msra.gmra.mrb[36].mxu0 %vm281_vm7, %v4785_v13  ;;  %10554 = vmatprep.subr.bf16.mxu0 %v10553_v14 }
0x2169   :  { %10556 = vmatpush3.bf16.msra.mxu0 %v10553_v14  ;;  %10033 = vmatprep.mubr.msk.f32.mxu0 %vm281_vm7, %v4985_v19  ;;  %v5721_v14 = vld [vmem:[#allocation2 + $0x1d8] sm:$0xff] }
0x216a   :  { %v11177_v23 = vpop.eup %11176  ;;  %v10567_v15 = vpack.c.bf16 %v10924_v17, %v10923_v21  ;;  %10036 = vmatprep.subr.mxu0 %v5074_v34 }
0x216b   :  { %v4986_v8 = vmul.f32 %v11177_v23, %v11169_v47  ;;  %v5522_v24 = vpop.permute.xlu1 %5521 }
0x216c   :  { %10569 = vmatprep.subr.msk.bf16.mxu1 %vm11477_vm6, %v10567_v15  ;;  %10069 = vmatprep.mubr.msk.f32.mxu1 %vm197_vm5, %v5522_v24 }
0x216d   :  { %10034 = vmatmul.mubr.msk.f32.vlgmr.msra.gmra.mrb[38].mxu0 %vm281_vm7, %v4986_v8  ;;  %10572 = vmatpush3.bf16.xpose.msk.msra.mxu1 %vm11477_vm6, %v10567_v15 }
0x216e   :  { %10037 = vmatpush3.msra.mxu0 %v5074_v34 }
0x216f   :  { %10041 = vmatprep.subr.mxu0 %v4873_v46 }
0x2174   :  { %10070 = vmatmul.mubr.msk.f32.vlgmr.msra.gmra.mrb[42].mxu1 %vm197_vm5, %v5524_v48  ;;  %v9191_v48 = vld [vmem:[%s12495_s6 + $0x1c] ss:$0 sm:$0xff] }
0x2194   :  { %v5333_v25 = vpop.xlane.xlu0 %5332 }
0x2195   :  { %v5335_v7 = vsub.f32 %v5325_v49, %v5333_v25 }
0x2197   :  { %v5338_v4 = vmul.f32 1.442695, %v5335_v7 }
0x219c   :  { %v5330_v26 = vpop.xlane.xlu1 %5329 }
0x219d   :  { %v5334_v27 = vsub.f32 %v5320_v45, %v5330_v26 }
0x219f   :  { %v5336_v1 = vmul.f32 1.442695, %v5334_v27 }
0x21a0   :  { %v10927_v0 = vpop.permute.xlu1 %10926 }
0x21a1   :  { %11178 = vpow2.f32 %v5336_v1  ;;  %v10929_v61 = vunpack.i.h.bf16 %v10927_v0  ;;  %v10928_v44 = vunpack.i.l.bf16 %v10927_v0 }
0x21a2   :  { %11180 = vpow2.f32 %v5338_v4 }
0x21a3   :  { %v10563_v40 = vpack.c.bf16 %v10929_v61, %v10928_v44  ;;  %v5869_v61 = vld [vmem:[#allocation2 + $0x1e8] sm:$0xff]  ;;  %v5870_v44 = vld [vmem:[#allocation2 + $0x1f0] sm:$0xff] }
0x21a4   :  { %v10932_v41 = vpop.permute.xlu1 %10931 }
0x21a5   :  { %v10934_v5 = vunpack.i.h.bf16 %v10932_v41  ;;  %v10933_v49 = vunpack.i.l.bf16 %v10932_v41  ;;  %v5960_v41 = vld [vmem:[#allocation2 + $0x200] sm:$0xff] }
0x21a7   :  { %v10573_v54 = vpack.c.bf16 %v10934_v5, %v10933_v49  ;;  %v5964_v5 = vld [vmem:[#allocation2 + $0x220] sm:$0xff] }
0x21ab   :  { %v11179_v30 = vpop.eup %11178 }
0x21ac   :  { %v5340_v31 = vsel %vm281_vm7, %v11179_v30, 0.0  ;;  %v11181_v32 = vpop.eup %11180 }
0x21ad   :  { %5341 = vadd.xlane.f32.xlu0 %v5340_v31  ;;  %v5343_v33 = vsel %vm281_vm7, %v11181_v32, 0.0 }
0x21b1   :  { %5344 = vadd.xlane.f32.xlu0 %v5343_v33 }
0x223a   :  { %v5342_v28 = vpop.xlane.xlu0 %5341 }
0x223b   :  { %v10021_v35 = vpop.f32.mrb[36].mxu0  ;;  %11182 = vrcp.f32 %v5342_v28 }
0x223c   :  { %v4864_v36 = vpop.f32.mrb[37].mxu0 }
0x223e   :  { %v5345_v37 = vpop.xlane.xlu0 %5344 }
0x223f   :  { %11184 = vrcp.f32 %v5345_v37  ;;  %v5868_v37 = vld [vmem:[#allocation2 + $0x1e0] sm:$0xff] }
0x2240   :  { %v10035_v2 = vpop.f32.mrb[38].mxu0 }
0x2241   :  { %v5065_v38 = vpop.f32.mrb[39].mxu0 }
0x2242   :  { %10038 = vmatprep.mubr.msk.f32.mxu0 %vm197_vm5, %v5065_v38  ;;  %v5871_v38 = vld [vmem:[#allocation2 + $0x1f8] sm:$0xff] }
0x2243   :  { %10039 = vmatmul.mubr.msk.f32.vlgmr.msra.gmra.mrb[40].mxu0 %vm197_vm5, %v10035_v2  ;;  %v10577_v2 = vpack.c.bf16 %v5869_v61, %v5868_v37 }
0x2244   :  { %10042 = vmatpush3.msra.mxu0 %v4873_v46  ;;  %10043 = vmatprep.mubr.msk.f32.mxu0 %vm197_vm5, %v4864_v36 }
0x2245   :  { %10564 = vmatprep.subr.bf16.mxu0 %v10563_v40  ;;  %v11183_v20 = vpop.eup %11182  ;;  %10578 = vmatprep.subr.bf16.mxu1 %v10577_v2 }
0x2246   :  { %v5348_v52 = vmul.f32 %v11183_v20, %v11179_v30  ;;  %10580 = vmatpush3.bf16.msra.mxu1 %v10577_v2  ;;  %v5962_v20 = vld [vmem:[#allocation2 + $0x210] sm:$0xff] }
0x2247   :  { %v10071_v42 = vpop.f32.mrb[42].mxu1 }
0x2248   :  { %v5603_v47 = vpop.f32.mrb[43].mxu1  ;;  %v5609_v50 = vadd.f32 %v10071_v42, %v12047_v16  ;;  %v5961_v42 = vld [vmem:[#allocation2 + $0x208] sm:$0xff] }
0x2249   :  { %v5604_v39 = vadd.f32 %v5603_v47, %v12052_v63  ;;  %v11185_v29 = vpop.eup %11184  ;;  %v10585_v47 = vpack.c.bf16 %v5961_v42, %v5960_v41 }
0x224a   :  { %v5349_v53 = vmul.f32 %v11185_v29, %v11181_v32  ;;  %v5615_v63 = vsel %vm281_vm7, %v5609_v50, -inf }
0x224b   :  { %10044 = vmatmul.mubr.msk.f32.vlgmr.msra.gmra.mrb[40].mxu0 %vm197_vm5, %v10021_v35  ;;  %v5612_v45 = vsel %vm281_vm7, %v5604_v39, -inf }
0x224c   :  { %10566 = vmatpush3.bf16.msra.mxu0 %v10563_v40  ;;  %5613 = vmax.xlane.f32.xlu0 %v5612_v45  ;;  %v10581_v40 = vpack.c.bf16 %v5871_v38, %v5870_v44 }
0x224d   :  { %10057 = vmatprep.mubr.msk.f32.mxu0 %vm281_vm7, %v5348_v52  ;;  %10060 = vmatprep.subr.mxu0 %v5437_v3 }
0x224e   :  { %10582 = vmatprep.subr.bf16.mxu1 %v10581_v40 }
0x224f   :  { %10058 = vmatmul.mubr.msk.f32.vlgmr.msra.gmra.mrb[42].mxu0 %vm281_vm7, %v5349_v53  ;;  %10584 = vmatpush3.bf16.msra.mxu1 %v10581_v40 }
0x2250   :  { %10061 = vmatpush3.msra.mxu0 %v5437_v3  ;;  %5616 = vmax.xlane.f32.xlu0 %v5615_v63  ;;  %v5965_v3 = vld [vmem:[#allocation2 + $0x228] sm:$0xff] }
0x2251   :  { %10574 = vmatprep.subr.bf16.mxu0 %v10573_v54  ;;  %v10593_v49 = vpack.c.bf16 %v5965_v3, %v5964_v5  ;;  %v6113_v3 = vld [vmem:[#allocation2 + $0x258] sm:$0xff] }
0x22d9   :  { %v5614_v16 = vpop.xlane.xlu0 %5613 }
0x22da   :  { %v5618_v56 = vsub.f32 %v5604_v39, %v5614_v16  ;;  %v5963_v39 = vld [vmem:[#allocation2 + $0x218] sm:$0xff] }
0x22db   :  { %v10589_v29 = vpack.c.bf16 %v5963_v39, %v5962_v20  ;;  %v6111_v39 = vld [vmem:[#allocation2 + $0x248] sm:$0xff] }
0x22dc   :  { %v5620_v57 = vmul.f32 1.442695, %v5618_v56 }
0x22dd   :  { %v5617_v59 = vpop.xlane.xlu0 %5616 }
0x22de   :  { %11186 = vpow2.f32 %v5620_v57  ;;  %v5619_v62 = vsub.f32 %v5609_v50, %v5617_v59 }
0x22e0   :  { %v5622_v6 = vmul.f32 1.442695, %v5619_v62 }
0x22e2   :  { %11188 = vpow2.f32 %v5622_v6 }
0x22e8   :  { %v11187_v9 = vpop.eup %11186 }
0x22e9   :  { %v5624_v10 = vsel %vm281_vm7, %v11187_v9, 0.0 }
0x22ea   :  { %5625 = vadd.xlane.f32.xlu0 %v5624_v10 }
0x22ec   :  { %v11189_v51 = vpop.eup %11188 }
0x22ed   :  { %v5627_v11 = vsel %vm281_vm7, %v11189_v51, 0.0 }
0x22ee   :  { %5628 = vadd.xlane.f32.xlu0 %v5627_v11 }
0x2322   :  { %v10059_v12 = vpop.f32.mrb[42].mxu0 }
0x2323   :  { %v5428_v13 = vpop.f32.mrb[43].mxu0 }
0x2324   :  { %10062 = vmatprep.mubr.msk.f32.mxu0 %vm197_vm5, %v5428_v13 }
0x2325   :  { %10063 = vmatmul.mubr.msk.f32.vlgmr.msra.gmra.mrb[40].mxu0 %vm197_vm5, %v10059_v12  ;;  %v9192_v12 = vld [vmem:[%s12495_s6 + $0x16] ss:$0 sm:$0xff] }
0x2326   :  { %10576 = vmatpush3.bf16.msra.mxu0 %v10573_v54 }
0x2327   :  { %10079 = vmatprep.subr.mxu0 %v5721_v14 }
0x2377   :  { %v5626_v18 = vpop.xlane.xlu0 %5625 }
0x2378   :  { %11190 = vrcp.f32 %v5626_v18  ;;  %v9193_v18 = vld [vmem:[%s12495_s6 + $0x17] ss:$0 sm:$0xff] }
0x237b   :  { %v5629_v19 = vpop.xlane.xlu0 %5628 }
0x237c   :  { %11192 = vrcp.f32 %v5629_v19 }
0x2382   :  { %v11191_v17 = vpop.eup %11190 }
0x2383   :  { %v5632_v21 = vmul.f32 %v11191_v17, %v11187_v9 }
0x2385   :  { %10076 = vmatprep.mubr.msk.f32.mxu0 %vm281_vm7, %v5632_v21 }
0x2386   :  { %v11193_v23 = vpop.eup %11192 }
0x2387   :  { %v5633_v15 = vmul.f32 %v11193_v23, %v11189_v51 }
0x2389   :  { %10077 = vmatmul.mubr.msk.f32.vlgmr.msra.gmra.mrb[44].mxu0 %vm281_vm7, %v5633_v15 }
0x238a   :  { %10080 = vmatpush3.msra.mxu0 %v5721_v14 }
0x238b   :  { %10586 = vmatprep.subr.bf16.mxu0 %v10585_v47 }
0x245c   :  { %v10078_v8 = vpop.f32.mrb[44].mxu0 }
0x245d   :  { %v5712_v24 = vpop.f32.mrb[45].mxu0 }
0x245e   :  { %10081 = vmatprep.mubr.msk.f32.mxu0 %vm197_vm5, %v5712_v24  ;;  %v5966_v24 = vld [vmem:[#allocation2 + $0x230] sm:$0xff] }
0x245f   :  { %10082 = vmatmul.mubr.msk.f32.vlgmr.msra.gmra.mrb[40].mxu0 %vm197_vm5, %v10078_v8 }
0x2460   :  { %10588 = vmatpush3.bf16.msra.mxu0 %v10585_v47  ;;  %v6110_v47 = vld [vmem:[#allocation2 + $0x240] sm:$0xff] }
0x2461   :  { %10590 = vmatprep.subr.bf16.mxu0 %v10589_v29  ;;  %v10601_v5 = vpack.c.bf16 %v6111_v39, %v6110_v47 }
0x2463   :  { %10602 = vmatprep.subr.bf16.mxu1 %v10601_v5 }
0x2464   :  { %10592 = vmatpush3.bf16.msra.mxu0 %v10589_v29  ;;  %v6112_v29 = vld [vmem:[#allocation2 + $0x250] sm:$0xff] }
0x2465   :  { %10594 = vmatprep.subr.bf16.mxu0 %v10593_v49 }
0x2468   :  { %10596 = vmatpush3.bf16.msra.mxu0 %v10593_v49  ;;  %v10605_v49 = vpack.c.bf16 %v6113_v3, %v6112_v29 }
0x2532   :  { %v10083_v25 = vpop.f32.mrb[40].mxu0 }
0x2533   :  { %v5811_v7 = vadd.f32 %v10083_v25, %v9191_v48  ;;  %v5794_v26 = vpop.f32.mrb[41].mxu0 }
0x2534   :  { %v5810_v27 = vadd.f32 %v9191_v48, %v5794_v26  ;;  %v5967_v48 = vld [vmem:[#allocation2 + $0x238] sm:$0xff] }
0x2535   :  { %v12118_v4 = vadd.f32 %v5811_v7, %v11956_v22  ;;  %v10597_v25 = vpack.c.bf16 %v5967_v48, %v5966_v24  ;;  %v9194_v7 = vld [vmem:[%s12495_s6 + $0x1d] ss:$0 sm:$0xff]  ;;  %v9202_v24 = vld [vmem:[%s12495_s6 + $0x25] ss:$0 sm:$0xff] }
0x2536   :  { %v12121_v1 = vadd.f32 %v5810_v27, %v11952_v60 }
0x2537   :  { %v5817_v30 = vsel %vm43_vm0, %v12118_v4, 0.0  ;;  %10598 = vmatprep.subr.bf16.mxu0 %v10597_v25 }
0x2538   :  { %5818 = vadd.xlane.f32.xlu1 %v5817_v30  ;;  %v5814_v31 = vsel %vm43_vm0, %v12121_v1, 0.0  ;;  %10600 = vmatpush3.bf16.msra.mxu0 %v10597_v25 }
0x2539   :  { %5815 = vadd.xlane.f32.xlu0 %v5814_v31 }
0x25c5   :  { %v5819_v32 = vpop.xlane.xlu1 %5818 }
0x25c6   :  { %v5821_v33 = vmul.f32 0.03125, %v5819_v32  ;;  %v5816_v34 = vpop.xlane.xlu0 %5815 }
0x25c7   :  { %v5820_v46 = vmul.f32 0.03125, %v5816_v34  ;;  %v9197_v34 = vld [vmem:[%s12495_s6 + $0x1e] ss:$0 sm:$0xff] }
0x25c8   :  { %v5823_v28 = vsub.f32 %v12118_v4, %v5821_v33 }
0x25c9   :  { %v5822_v22 = vsub.f32 %v12121_v1, %v5820_v46 }
0x25ca   :  { %v5825_v0 = vmul.f32 %v5823_v28, %v5823_v28  ;;  %v5858_v17 = vmul.f32 %v9192_v12, %v5823_v28 }
0x25cb   :  { %v5824_v35 = vmul.f32 %v5822_v22, %v5822_v22  ;;  %v5857_v13 = vmul.f32 %v9192_v12, %v5822_v22  ;;  %v9200_v12 = vld [vmem:[%s12495_s6 + $0x1f] ss:$0 sm:$0xff] }
0x25cc   :  { %v5829_v36 = vsel %vm43_vm0, %v5825_v0, 0.0 }
0x25cd   :  { %v5826_v60 = vsel %vm43_vm0, %v5824_v35, 0.0 }
0x25ce   :  { %5827 = vadd.xlane.f32.xlu0 %v5826_v60 }
0x25d2   :  { %5830 = vadd.xlane.f32.xlu0 %v5829_v36 }
0x265b   :  { %v5828_v50 = vpop.xlane.xlu0 %5827 }
0x265c   :  { %v5832_v45 = vmul.f32 0.032258064, %v5828_v50 }
0x265e   :  { %11194 = vrsqrt.f32 %v5832_v45  ;;  %vm5836_vm10 = vcmp.eq.f32.partialorder %v5832_v45, inf  ;;  %v5839_v16 = vand.u32 2147483648, %v5832_v45  ;;  %vm5838_vm11 = vcmp.eq.f32.partialorder %v5832_v45, 0.0 }
0x265f   :  { %v5831_v52 = vpop.xlane.xlu0 %5830 }
0x2660   :  { %v5833_v53 = vmul.f32 0.032258064, %v5831_v52 }
0x2662   :  { %11196 = vrsqrt.f32 %v5833_v53  ;;  %vm5843_vm13 = vcmp.eq.f32.partialorder %v5833_v53, inf  ;;  %v5846_v9 = vand.u32 2147483648, %v5833_v53  ;;  %vm5845_vm14 = vcmp.eq.f32.partialorder %v5833_v53, 0.0 }
0x2668   :  { %v11195_v54 = vpop.eup %11194 }
0x2669   :  { %v5835_v63 = vmul.f32 %v11195_v54, %v5832_v45 }
0x266b   :  { %v5837_v56 = vsel %vm5836_vm10, %v5832_v45, %v5835_v63 }
0x266c   :  { %v11197_v57 = vpop.eup %11196  ;;  %v5840_v59 = vsel %vm5838_vm11, %v5839_v16, %v5837_v56 }
0x266d   :  { %v5842_v62 = vmul.f32 %v11197_v57, %v5833_v53  ;;  %v5848_v6 = vadd.f32 1e-06, %v5840_v59 }
0x266f   :  { %v5844_v10 = vsel %vm5843_vm13, %v5833_v53, %v5842_v62  ;;  %11198 = vrcp.f32 %v5848_v6 }
0x2670   :  { %v5847_v51 = vsel %vm5845_vm14, %v5846_v9, %v5844_v10 }
0x2671   :  { %v5849_v11 = vadd.f32 1e-06, %v5847_v51 }
0x2673   :  { %11200 = vrcp.f32 %v5849_v11 }
0x2679   :  { %v11199_v14 = vpop.eup %11198 }
0x267a   :  { %v5859_v19 = vmul.f32 %v11199_v14, %v5857_v13 }
0x267c   :  { %v5866_v21 = vadd.f32 %v9193_v18, %v5859_v19 }
0x267d   :  { %v11201_v23 = vpop.eup %11200 }
0x267e   :  { %v5860_v15 = vmul.f32 %v11201_v23, %v5858_v17  ;;  %10092 = vmatprep.mubr.msk.f32.mxu1 %vm43_vm0, %v5866_v21 }
0x2680   :  { %v5867_v8 = vadd.f32 %v9193_v18, %v5860_v15  ;;  %v9201_v18 = vld [vmem:[%s12495_s6 + $0x20] ss:$0 sm:$0xff] }
0x2682   :  { %10093 = vmatmul.mubr.msk.f32.vlgmr.msra.gmra.mrb[44].mxu1 %vm43_vm0, %v5867_v8 }
0x2683   :  { %10604 = vmatpush3.bf16.msra.mxu1 %v10601_v5 }
0x2684   :  { %10606 = vmatprep.subr.bf16.mxu1 %v10605_v49 }
0x2687   :  { %10608 = vmatpush3.bf16.msra.mxu1 %v10605_v49 }
0x2755   :  { %v10094_v26 = vpop.f32.mrb[44].mxu1 }
0x2756   :  { %v5955_v27 = vadd.f32 %v10094_v26, %v9194_v7  ;;  %v5949_v30 = vpop.f32.mrb[45].mxu1 }
0x2757   :  { %v5950_v31 = vadd.f32 %v9194_v7, %v5949_v30 }
0x2758   :  { %v5959_v33 = vmax.f32 %v5955_v27, 0.0 }
0x2759   :  { %v5958_v32 = vmax.f32 %v5950_v31, 0.0 }
0x275b   :  { %10111 = vmatprep.mubr.msk.f32.mxu0 %vm1491_vm12, %v5958_v32 }
0x275c   :  { %10112 = vmatmul.mubr.msk.f32.vlgmr.msra.gmra.mrb[46].mxu0 %vm1491_vm12, %v5959_v33 }
0x282f   :  { %v10113_v46 = vpop.f32.mrb[46].mxu0 }
0x2830   :  { %v6045_v28 = vpop.f32.mrb[47].mxu0  ;;  %v6051_v22 = vadd.f32 %v10113_v46, %v9197_v34 }
0x2831   :  { %v6046_v35 = vadd.f32 %v9197_v34, %v6045_v28 }
0x2832   :  { %v12151_v0 = vadd.f32 %v6051_v22, %v12118_v4 }
0x2833   :  { %v12148_v60 = vadd.f32 %v6046_v35, %v12121_v1 }
0x2834   :  { %v6059_v37 = vsel %vm43_vm0, %v12151_v0, 0.0 }
0x2835   :  { %v6056_v36 = vsel %vm43_vm0, %v12148_v60, 0.0 }
0x2836   :  { %6057 = vadd.xlane.f32.xlu0 %v6056_v36 }
0x283a   :  { %6060 = vadd.xlane.f32.xlu0 %v6059_v37 }
0x28c3   :  { %v6058_v61 = vpop.xlane.xlu0 %6057 }
0x28c4   :  { %v6062_v44 = vmul.f32 0.03125, %v6058_v61 }
0x28c6   :  { %v6064_v2 = vsub.f32 %v12148_v60, %v6062_v44 }
0x28c7   :  { %v6061_v38 = vpop.xlane.xlu0 %6060 }
0x28c8   :  { %v6063_v40 = vmul.f32 0.03125, %v6061_v38  ;;  %v6066_v41 = vmul.f32 %v6064_v2, %v6064_v2  ;;  %v6099_v13 = vmul.f32 %v9200_v12, %v6064_v2 }
0x28ca   :  { %v6065_v1 = vsub.f32 %v12151_v0, %v6063_v40  ;;  %v6068_v4 = vsel %vm43_vm0, %v6066_v41, 0.0 }
0x28cb   :  { %6069 = vadd.xlane.f32.xlu0 %v6068_v4 }
0x28cc   :  { %v6067_v42 = vmul.f32 %v6065_v1, %v6065_v1  ;;  %v6100_v17 = vmul.f32 %v9200_v12, %v6065_v1  ;;  %v12217_v1 = vld [vmem:[%s12492_s3 + $0x8] sm:$0xff] }
0x28ce   :  { %v6071_v20 = vsel %vm43_vm0, %v6067_v42, 0.0 }
0x28cf   :  { %6072 = vadd.xlane.f32.xlu0 %v6071_v20  ;;  %v12223_v20 = vld [vmem:[%s12492_s3] sm:$0xff] }
0x2958   :  { %v6070_v50 = vpop.xlane.xlu0 %6069 }
0x2959   :  { %v6074_v45 = vmul.f32 0.032258064, %v6070_v50 }
0x295b   :  { %11202 = vrsqrt.f32 %v6074_v45  ;;  %vm6078_vm15 = vcmp.eq.f32.partialorder %v6074_v45, inf  ;;  %v6081_v16 = vand.u32 2147483648, %v6074_v45  ;;  %vm6080_vm1 = vcmp.eq.f32.partialorder %v6074_v45, 0.0 }
0x295c   :  { %v6073_v52 = vpop.xlane.xlu0 %6072 }
0x295d   :  { %v6075_v53 = vmul.f32 0.032258064, %v6073_v52 }
0x295f   :  { %11204 = vrsqrt.f32 %v6075_v53  ;;  %vm6085_vm2 = vcmp.eq.f32.partialorder %v6075_v53, inf  ;;  %v6088_v9 = vand.u32 2147483648, %v6075_v53  ;;  %vm6087_vm3 = vcmp.eq.f32.partialorder %v6075_v53, 0.0 }
0x2965   :  { %v11203_v54 = vpop.eup %11202 }
0x2966   :  { %v6077_v63 = vmul.f32 %v11203_v54, %v6074_v45 }
0x2968   :  { %v6079_v56 = vsel %vm6078_vm15, %v6074_v45, %v6077_v63 }
0x2969   :  { %v11205_v57 = vpop.eup %11204  ;;  %v6082_v59 = vsel %vm6080_vm1, %v6081_v16, %v6079_v56 }
0x296a   :  { %v6084_v62 = vmul.f32 %v11205_v57, %v6075_v53  ;;  %v6090_v6 = vadd.f32 1e-06, %v6082_v59 }
0x296c   :  { %v6086_v10 = vsel %vm6085_vm2, %v6075_v53, %v6084_v62  ;;  %11206 = vrcp.f32 %v6090_v6 }
0x296d   :  { %v6089_v51 = vsel %vm6087_vm3, %v6088_v9, %v6086_v10 }
0x296e   :  { %v6091_v11 = vadd.f32 1e-06, %v6089_v51 }
0x2970   :  { %11208 = vrcp.f32 %v6091_v11 }
0x2976   :  { %v11207_v14 = vpop.eup %11206 }
0x2977   :  { %v6101_v19 = vmul.f32 %v11207_v14, %v6099_v13 }
0x2979   :  { %v6108_v21 = vadd.f32 %v9201_v18, %v6101_v19 }
0x297a   :  { %v11209_v23 = vpop.eup %11208 }
0x297b   :  { %v6102_v15 = vmul.f32 %v11209_v23, %v6100_v17  ;;  %10122 = vmatprep.mubr.msk.f32.mxu1 %vm43_vm0, %v6108_v21 }
0x297d   :  { %v6109_v8 = vadd.f32 %v9201_v18, %v6102_v15 }
0x297f   :  { %10123 = vmatmul.mubr.msk.f32.vlgmr.msra.gmra.mrb[46].mxu1 %vm43_vm0, %v6109_v8 }
0x2a52   :  { %v10124_v48 = vpop.f32.mrb[46].mxu1 }
0x2a53   :  { %v12172_v25 = vadd.f32 %v10124_v48, %v9202_v24  ;;  %v6191_v7 = vpop.f32.mrb[47].mxu1 }
0x2a54   :  { %v12174_v26 = vadd.f32 %v9202_v24, %v6191_v7 }
0x2a56   :  { %10129 = vmatprep.mubr.msk.f32.mxu1 %vm197_vm5, %v12174_v26  ;;  %v12180_v27 = vpack.i.bf16 %v12172_v25, %v12174_v26 }
0x2a58   :  { %10941 = vrot.lane.b32.xlu1 %v12180_v27, %s11355_s23  ;;  %10936 = vrot.lane.b32.xlu0 %v12180_v27, %s11356_s24 }
0x2a5c   :  { %10946 = vrot.lane.b32.xlu1 %v12180_v27, %s11358_s26  ;;  %6399 = vrot.lane.b32.xlu0 %v12174_v26, %s11357_s25 }
0x2a60   :  { %6764 = vrot.lane.b32.xlu1 %v12172_v25, %s11359_s27  ;;  %6401 = vrot.lane.b32.xlu0 %v12172_v25, %s11357_s25 }
0x2a64   :  { %6762 = vrot.lane.b32.xlu0 %v12174_v26, %s11359_s27 }
0x2aca   :  { %v10942_v30 = vpop.permute.xlu1 %10941  ;;  %v10937_v31 = vpop.permute.xlu0 %10936 }
0x2acb   :  { %v10944_v32 = vunpack.i.h.bf16 %v10942_v30  ;;  %v10943_v33 = vunpack.i.l.bf16 %v10942_v30  ;;  %v10939_v34 = vunpack.i.h.bf16 %v10937_v31  ;;  %v10938_v46 = vunpack.i.l.bf16 %v10937_v31 }
0x2acd   :  { %v10609_v28 = vpack.c.bf16 %v10939_v34, %v10938_v46  ;;  %v10619_v22 = vpack.c.bf16 %v10944_v32, %v10943_v33 }
0x2ace   :  { %v10947_v35 = vpop.permute.xlu1 %10946  ;;  %v6400_v61 = vpop.permute.xlu0 %6399 }
0x2acf   :  { %10611 = vmatprep.subr.msk.bf16.mxu1 %vm11477_vm6, %v10609_v28  ;;  %v10949_v36 = vunpack.i.h.bf16 %v10947_v35  ;;  %v10948_v37 = vunpack.i.l.bf16 %v10947_v35 }
0x2ad0   :  { %10614 = vmatpush3.bf16.xpose.msk.msra.mxu1 %vm11477_vm6, %v10609_v28 }
0x2ad1   :  { %10621 = vmatprep.subr.msk.bf16.mxu1 %vm11477_vm6, %v10619_v22  ;;  %v10629_v44 = vpack.c.bf16 %v10949_v36, %v10948_v37 }
0x2ad2   :  { %v6402_v2 = vpop.permute.xlu0 %6401  ;;  %v6765_v40 = vpop.permute.xlu1 %6764 }
0x2ad6   :  { %v6763_v38 = vpop.permute.xlu0 %6762 }
0x2ad7   :  { %10130 = vmatmul.mubr.msk.f32.vlgmr.msra.gmra.mrb[48].mxu1 %vm197_vm5, %v12172_v25 }
0x2ad8   :  { %10624 = vmatpush3.bf16.xpose.msk.msra.mxu1 %vm11477_vm6, %v10619_v22  ;;  %10143 = vmatprep.mubr.msk.f32.mxu1 %vm197_vm5, %v6400_v61 }
0x2ad9   :  { %10631 = vmatprep.subr.msk.bf16.mxu1 %vm11477_vm6, %v10629_v44 }
0x2adf   :  { %10144 = vmatmul.mubr.msk.f32.vlgmr.msra.gmra.mrb[50].mxu1 %vm197_vm5, %v6402_v2 }
0x2ae0   :  { %10634 = vmatpush3.bf16.xpose.msk.msra.mxu1 %vm11477_vm6, %v10629_v44  ;;  %10167 = vmatprep.mubr.msk.f32.mxu1 %vm197_vm5, %v6763_v38 }
0x2ae7   :  { %10168 = vmatmul.mubr.msk.f32.vlgmr.msra.gmra.mrb[52].mxu1 %vm197_vm5, %v6765_v40 }
0x2baa   :  { %v10131_v41 = vpop.f32.mrb[48].mxu1 }
0x2bab   :  { %v6286_v4 = vadd.f32 %v12217_v1, %v10131_v41  ;;  %v6280_v42 = vpop.f32.mrb[49].mxu1 }
0x2bac   :  { %v6281_v47 = vadd.f32 %v12223_v20, %v6280_v42 }
0x2bad   :  { %v6292_v39 = vsel %vm281_vm7, %v6286_v4, -inf }
0x2bae   :  { %6293 = vmax.xlane.f32.xlu1 %v6292_v39  ;;  %v6289_v29 = vsel %vm281_vm7, %v6281_v47, -inf }
0x2baf   :  { %6290 = vmax.xlane.f32.xlu0 %v6289_v29 }
0x2bb2   :  { %v10145_v5 = vpop.f32.mrb[50].mxu1 }
0x2bb3   :  { %v6481_v3 = vpop.f32.mrb[51].mxu1  ;;  %v6487_v50 = vadd.f32 %v12217_v1, %v10145_v5 }
0x2bb4   :  { %v6482_v49 = vadd.f32 %v12223_v20, %v6481_v3 }
0x2bb5   :  { %v6493_v53 = vsel %vm281_vm7, %v6487_v50, -inf }
0x2bb6   :  { %v6490_v45 = vsel %vm281_vm7, %v6482_v49, -inf }
0x2bb7   :  { %6491 = vmax.xlane.f32.xlu0 %v6490_v45 }
0x2bba   :  { %v10169_v52 = vpop.f32.mrb[52].mxu1 }
0x2bbb   :  { %v6844_v54 = vpop.f32.mrb[53].mxu1  ;;  %6494 = vmax.xlane.f32.xlu0 %v6493_v53  ;;  %v6850_v8 = vadd.f32 %v12217_v1, %v10169_v52 }
0x2bbc   :  { %v6845_v24 = vadd.f32 %v12223_v20, %v6844_v54 }
0x2bbd   :  { %v6856_v7 = vsel %vm281_vm7, %v6850_v8, -inf }
0x2bbe   :  { %v6853_v48 = vsel %vm281_vm7, %v6845_v24, -inf }
0x2c3b   :  { %v6294_v63 = vpop.xlane.xlu1 %6293 }
0x2c3c   :  { %v6296_v16 = vsub.f32 %v6286_v4, %v6294_v63  ;;  %v6291_v56 = vpop.xlane.xlu0 %6290 }
0x2c3d   :  { %v6295_v57 = vsub.f32 %v6281_v47, %v6291_v56 }
0x2c3e   :  { %v6299_v59 = vmul.f32 1.442695, %v6296_v16 }
0x2c3f   :  { %v6297_v62 = vmul.f32 1.442695, %v6295_v57 }
0x2c40   :  { %11210 = vpow2.f32 %v6299_v59  ;;  %v6599_v59 = vld [vmem:[#allocation2 + $0x268] sm:$0xff] }
0x2c41   :  { %11212 = vpow2.f32 %v6297_v62  ;;  %v6398_v62 = vld [vmem:[#allocation2 + $0x260] sm:$0xff] }
0x2c44   :  { %v6492_v6 = vpop.xlane.xlu0 %6491 }
0x2c45   :  { %v6496_v9 = vsub.f32 %v6482_v49, %v6492_v6 }
0x2c47   :  { %v6498_v10 = vmul.f32 1.442695, %v6496_v9 }
0x2c48   :  { %v6495_v51 = vpop.xlane.xlu0 %6494 }
0x2c49   :  { %11214 = vpow2.f32 %v6498_v10  ;;  %v6497_v11 = vsub.f32 %v6487_v50, %v6495_v51 }
0x2c4a   :  { %v11211_v12 = vpop.eup %11210 }
0x2c4b   :  { %v11213_v13 = vpop.eup %11212  ;;  %v6500_v14 = vmul.f32 1.442695, %v6497_v11  ;;  %v6304_v18 = vsel %vm281_vm7, %v11211_v12, 0.0 }
0x2c4c   :  { %6305 = vadd.xlane.f32.xlu0 %v6304_v18  ;;  %v6301_v19 = vsel %vm281_vm7, %v11213_v13, 0.0 }
0x2c4d   :  { %11216 = vpow2.f32 %v6500_v14  ;;  %6302 = vadd.xlane.f32.xlu1 %v6301_v19 }
0x2c53   :  { %v11215_v17 = vpop.eup %11214 }
0x2c54   :  { %v6502_v21 = vsel %vm281_vm7, %v11215_v17, 0.0 }
0x2c55   :  { %6503 = vadd.xlane.f32.xlu1 %v6502_v21 }
0x2c57   :  { %v11217_v23 = vpop.eup %11216 }
0x2c58   :  { %v6505_v15 = vsel %vm281_vm7, %v11217_v23, 0.0 }
0x2c59   :  { %6506 = vadd.xlane.f32.xlu0 %v6505_v15 }
0x2c66   :  { %10951 = vrot.lane.b32.xlu1 %v12180_v27, %s11360_s9  ;;  %s11366_s9 = smov [#allocation5]  }
0x2c6a   :  { %10961 = vrot.lane.b32.xlu1 %v12180_v27, %s11361_s10 }
0x2c6e   :  { %7046 = vrot.lane.b32.xlu1 %v12174_v26, %s11362_s13 }
0x2c6f   :  { %10956 = vrot.lane.b32.xlu0 %v12180_v27, %s11363_s14  ;;  %s9007_s14 = sshll.u32 %s11366_s9, 4  ;;  %s9008_s14 = int_to_ptr.vmem [resolvable:$true] %s9007_s14 }
0x2c70   :  { %p11331_p9 = scmp.lt.s32.totalorder %s9008_s14, %s9008_s14 }
0x2c73   :  { %7048 = vrot.lane.b32.xlu0 %v12172_v25, %s11362_s13 }
0x2c92   :  { %6854 = vmax.xlane.f32.xlu1 %v6853_v48  ;;  %6857 = vmax.xlane.f32.xlu0 %v6856_v7 }
0x2cd9   :  { %v6306_v31 = vpop.xlane.xlu0 %6305 }
0x2cda   :  { %v6303_v30 = vpop.xlane.xlu1 %6302 }
0x2cdb   :  { %11218 = vrcp.f32 %v6303_v30 }
0x2cdc   :  { %11220 = vrcp.f32 %v6306_v31 }
0x2ce2   :  { %v6504_v26 = vpop.xlane.xlu1 %6503 }
0x2ce3   :  { %11222 = vrcp.f32 %v6504_v26  ;;  %v6962_v26 = vld [vmem:[#allocation2 + $0x270] sm:$0xff] }
0x2ce5   :  { %v11219_v32 = vpop.eup %11218 }
0x2ce6   :  { %v10952_v33 = vpop.permute.xlu1 %10951  ;;  %v6507_v34 = vpop.xlane.xlu0 %6506  ;;  %v6309_v25 = vmul.f32 %v11219_v32, %v11213_v13 }
0x2ce7   :  { %v10954_v46 = vunpack.i.h.bf16 %v10952_v33  ;;  %v10953_v28 = vunpack.i.l.bf16 %v10952_v33  ;;  %11224 = vrcp.f32 %v6507_v34  ;;  %v11221_v35 = vpop.eup %11220 }
0x2ce8   :  { %10136 = vmatprep.mubr.msk.f32.mxu0 %vm281_vm7, %v6309_v25  ;;  %v6310_v41 = vmul.f32 %v11221_v35, %v11211_v12 }
0x2ce9   :  { %v10615_v22 = vpack.c.bf16 %v10954_v46, %v10953_v28 }
0x2cea   :  { %v10962_v36 = vpop.permute.xlu1 %10961  ;;  %v10957_v37 = vpop.permute.xlu0 %10956 }
0x2ceb   :  { %v10964_v61 = vunpack.i.h.bf16 %v10962_v36  ;;  %v10963_v44 = vunpack.i.l.bf16 %v10962_v36  ;;  %v10959_v2 = vunpack.i.h.bf16 %v10957_v37  ;;  %v10958_v38 = vunpack.i.l.bf16 %v10957_v37  ;;  %10616 = vmatprep.subr.bf16.mxu0 %v10615_v22 }
0x2cec   :  { %10618 = vmatpush3.bf16.msra.mxu0 %v10615_v22 }
0x2ced   :  { %v11223_v40 = vpop.eup %11222  ;;  %v10639_v4 = vpack.c.bf16 %v10964_v61, %v10963_v44  ;;  %v10625_v42 = vpack.c.bf16 %v10959_v2, %v10958_v38 }
0x2cee   :  { %v7047_v47 = vpop.permute.xlu1 %7046  ;;  %v6510_v39 = vmul.f32 %v11223_v40, %v11215_v17  ;;  %v7049_v3 = vpop.permute.xlu0 %7048 }
0x2cef   :  { %10137 = vmatmul.mubr.msk.f32.vlgmr.msra.gmra.mrb[48].mxu0 %vm281_vm7, %v6310_v41  ;;  %10626 = vmatprep.subr.bf16.mxu0 %v10625_v42 }
0x2cf0   :  { %10641 = vmatprep.subr.msk.bf16.mxu1 %vm11477_vm6, %v10639_v4  ;;  %10186 = vmatprep.mubr.msk.f32.mxu1 %vm197_vm5, %v7047_v47 }
0x2cf1   :  { %v11225_v29 = vpop.eup %11224  ;;  %10628 = vmatpush3.bf16.msra.mxu0 %v10625_v42  ;;  %10150 = vmatprep.mubr.msk.f32.mxu0 %vm281_vm7, %v6510_v39 }
0x2cf2   :  { %v6511_v5 = vmul.f32 %v11225_v29, %v11217_v23  ;;  %10644 = vmatpush3.bf16.xpose.msk.msra.mxu1 %vm11477_vm6, %v10639_v4  ;;  %10153 = vmatprep.subr.mxu0 %v6599_v59  ;;  %v7246_v4 = vld [vmem:[#allocation2 + $0x278] sm:$0xff]  ;;  %v7483_v29 = vld [vmem:[#allocation2 + $0x2a0] sm:$0xff] }
0x2cf4   :  { %10151 = vmatmul.mubr.msk.f32.vlgmr.msra.gmra.mrb[50].mxu0 %vm281_vm7, %v6511_v5  ;;  %v7484_v5 = vld [vmem:[#allocation2 + $0x2a8] sm:$0xff] }
0x2cf5   :  { %10154 = vmatpush3.msra.mxu0 %v6599_v59 }
0x2cf6   :  { %10158 = vmatprep.subr.mxu0 %v6398_v62 }
0x2cf9   :  { %10187 = vmatmul.mubr.msk.f32.vlgmr.msra.gmra.mrb[54].mxu1 %vm197_vm5, %v7049_v3  ;;  %v10657_v3 = vpack.c.bf16 %v7484_v5, %v7483_v29 }
0x2d1f   :  { %v6855_v49 = vpop.xlane.xlu1 %6854  ;;  %v6858_v50 = vpop.xlane.xlu0 %6857 }
0x2d20   :  { %v6859_v45 = vsub.f32 %v6845_v24, %v6855_v49  ;;  %v6860_v52 = vsub.f32 %v6850_v8, %v6858_v50  ;;  %v7485_v49 = vld [vmem:[#allocation2 + $0x2b0] sm:$0xff]  ;;  %v7486_v50 = vld [vmem:[#allocation2 + $0x2b8] sm:$0xff] }
0x2d22   :  { %v6861_v53 = vmul.f32 1.442695, %v6859_v45  ;;  %v6863_v54 = vmul.f32 1.442695, %v6860_v52 }
0x2d24   :  { %11226 = vpow2.f32 %v6861_v53  ;;  %v10661_v53 = vpack.c.bf16 %v7486_v50, %v7485_v49 }
0x2d25   :  { %11228 = vpow2.f32 %v6863_v54  ;;  %v7393_v54 = vld [vmem:[#allocation2 + $0x280] sm:$0xff] }
0x2d2e   :  { %v11227_v63 = vpop.eup %11226 }
0x2d2f   :  { %v11229_v16 = vpop.eup %11228  ;;  %v6865_v56 = vsel %vm281_vm7, %v11227_v63, 0.0 }
0x2d30   :  { %6866 = vadd.xlane.f32.xlu0 %v6865_v56  ;;  %v6868_v57 = vsel %vm281_vm7, %v11229_v16, 0.0  ;;  %v7395_v56 = vld [vmem:[#allocation2 + $0x290] sm:$0xff] }
0x2d31   :  { %6869 = vadd.xlane.f32.xlu1 %v6868_v57  ;;  %v7396_v57 = vld [vmem:[#allocation2 + $0x298] sm:$0xff] }
0x2d32   :  { %v10653_v59 = vpack.c.bf16 %v7396_v57, %v7395_v56 }
0x2d46   :  { %10966 = vrot.lane.b32.xlu0 %v12180_v27, %s11364_s15  ;;  %s11326_s15 = scalar_lea.vmem %s9008_s14, 256 }
0x2d47   :  { %p11327_p8 = scmp.ne.s32.totalorder %s9008_s14, %s11326_s15  ;;  %p11332_p10 = scmp.lt.s32.totalorder %s11326_s15, %s11326_s15 }
0x2d49   :  { %p11333_p11 = por %p11332_p10, %p11331_p9 }
0x2d4b   :  { %p11334_p12 = pnand %p11333_p11, %p11327_p8 }
0x2dbd   :  { %v6867_v6 = vpop.xlane.xlu0 %6866 }
0x2dbe   :  { %v6870_v11 = vpop.xlane.xlu1 %6869  ;;  %11230 = vrcp.f32 %v6867_v6 }
0x2dbf   :  { %11232 = vrcp.f32 %v6870_v11 }
0x2dc1   :  { %v10967_v10 = vpop.permute.xlu0 %10966 }
0x2dc2   :  { %v10138_v9 = vpop.f32.mrb[48].mxu0  ;;  %v10969_v12 = vunpack.i.h.bf16 %v10967_v10  ;;  %v10968_v13 = vunpack.i.l.bf16 %v10967_v10 }
0x2dc3   :  { %v6389_v51 = vpop.f32.mrb[49].mxu0 }
0x2dc4   :  { %v10635_v19 = vpack.c.bf16 %v10969_v12, %v10968_v13  ;;  %v9243_v12 = vld [vmem:[%s12495_s6 + $0x28] ss:$0 sm:$0xff] }
0x2dc7   :  { %v10152_v14 = vpop.f32.mrb[50].mxu0 }
0x2dc8   :  { %v6590_v18 = vpop.f32.mrb[51].mxu0  ;;  %v11231_v23 = vpop.eup %11230 }
0x2dc9   :  { %10155 = vmatprep.mubr.msk.f32.mxu0 %vm197_vm5, %v6590_v18  ;;  %v11233_v48 = vpop.eup %11232  ;;  %v6873_v7 = vmul.f32 %v11231_v23, %v11227_v63  ;;  %v7394_v63 = vld [vmem:[#allocation2 + $0x288] sm:$0xff] }
0x2dca   :  { %10156 = vmatmul.mubr.msk.f32.vlgmr.msra.gmra.mrb[52].mxu0 %vm197_vm5, %v10152_v14  ;;  %v6874_v30 = vmul.f32 %v11233_v48, %v11229_v16  ;;  %v10649_v16 = vpack.c.bf16 %v7394_v63, %v7393_v54 }
0x2dcb   :  { %10159 = vmatpush3.msra.mxu0 %v6398_v62  ;;  %10160 = vmatprep.mubr.msk.f32.mxu0 %vm197_vm5, %v6389_v51  ;;  %v9237_v62 = vld [vmem:[%s12495_s6 + $0x26] ss:$0 sm:$0xff] }
0x2dcc   :  { %v10188_v17 = vpop.f32.mrb[54].mxu1  ;;  %10636 = vmatprep.subr.bf16.mxu0 %v10635_v19  ;;  %10650 = vmatprep.subr.bf16.mxu1 %v10649_v16 }
0x2dcd   :  { %v7128_v21 = vpop.f32.mrb[55].mxu1  ;;  %v7134_v8 = vadd.f32 %v12217_v1, %v10188_v17  ;;  %10652 = vmatpush3.bf16.msra.mxu1 %v10649_v16 }
0x2dce   :  { %v7129_v15 = vadd.f32 %v12223_v20, %v7128_v21  ;;  %10654 = vmatprep.subr.bf16.mxu1 %v10653_v59 }
0x2dcf   :  { %v7140_v31 = vsel %vm281_vm7, %v7134_v8, -inf }
0x2dd0   :  { %v7137_v24 = vsel %vm281_vm7, %v7129_v15, -inf }
0x2dd1   :  { %7138 = vmax.xlane.f32.xlu1 %v7137_v24  ;;  %10656 = vmatpush3.bf16.msra.mxu1 %v10653_v59 }
0x2dd2   :  { %10161 = vmatmul.mubr.msk.f32.vlgmr.msra.gmra.mrb[52].mxu0 %vm197_vm5, %v10138_v9 }
0x2dd3   :  { %10638 = vmatpush3.bf16.msra.mxu0 %v10635_v19  ;;  %10174 = vmatprep.mubr.msk.f32.mxu0 %vm281_vm7, %v6873_v7 }
0x2dd4   :  { %10177 = vmatprep.subr.mxu0 %v6962_v26 }
0x2dd5   :  { %7141 = vmax.xlane.f32.xlu1 %v7140_v31 }
0x2dd6   :  { %10175 = vmatmul.mubr.msk.f32.vlgmr.msra.gmra.mrb[54].mxu0 %vm281_vm7, %v6874_v30 }
0x2dd7   :  { %10178 = vmatpush3.msra.mxu0 %v6962_v26 }
0x2e5e   :  { %v7139_v1 = vpop.xlane.xlu1 %7138 }
0x2e5f   :  { %v7143_v20 = vsub.f32 %v7129_v15, %v7139_v1 }
0x2e61   :  { %v7145_v34 = vmul.f32 1.442695, %v7143_v20 }
0x2e62   :  { %v7142_v32 = vpop.xlane.xlu1 %7141 }
0x2e63   :  { %v7144_v33 = vsub.f32 %v7134_v8, %v7142_v32 }
0x2e65   :  { %v7147_v25 = vmul.f32 1.442695, %v7144_v33 }
0x2e67   :  { %11234 = vpow2.f32 %v7147_v25 }
0x2e68   :  { %11236 = vpow2.f32 %v7145_v34 }
0x2e71   :  { %v11235_v46 = vpop.eup %11234 }
0x2e72   :  { %v7152_v28 = vsel %vm281_vm7, %v11235_v46, 0.0  ;;  %v11237_v22 = vpop.eup %11236 }
0x2e73   :  { %7153 = vadd.xlane.f32.xlu1 %v7152_v28  ;;  %v7149_v35 = vsel %vm281_vm7, %v11237_v22, 0.0 }
0x2e77   :  { %7150 = vadd.xlane.f32.xlu1 %v7149_v35 }
0x2e88   :  { %10971 = vrot.lane.b32.xlu1 %v12180_v27, %s11365_s16 }
0x2ea9   :  { %v10176_v36 = vpop.f32.mrb[54].mxu0 }
0x2eaa   :  { %v6953_v37 = vpop.f32.mrb[55].mxu0 }
0x2eab   :  { %10179 = vmatprep.mubr.msk.f32.mxu0 %vm197_vm5, %v6953_v37 }
0x2eac   :  { %10180 = vmatmul.mubr.msk.f32.vlgmr.msra.gmra.mrb[52].mxu0 %vm197_vm5, %v10176_v36 }
0x2f00   :  { %v7154_v61 = vpop.xlane.xlu1 %7153 }
0x2f01   :  { %11238 = vrcp.f32 %v7154_v61 }
0x2f04   :  { %v7151_v44 = vpop.xlane.xlu1 %7150 }
0x2f05   :  { %11240 = vrcp.f32 %v7151_v44 }
0x2f08   :  { %v10972_v2 = vpop.permute.xlu1 %10971 }
0x2f09   :  { %v10974_v38 = vunpack.i.h.bf16 %v10972_v2  ;;  %v10973_v40 = vunpack.i.l.bf16 %v10972_v2 }
0x2f0b   :  { %v10645_v41 = vpack.c.bf16 %v10974_v38, %v10973_v40  ;;  %v11239_v42 = vpop.eup %11238  ;;  %v9238_v40 = vld [vmem:[%s12495_s6 + $0x21] ss:$0 sm:$0xff] }
0x2f0c   :  { %v7158_v39 = vmul.f32 %v11239_v42, %v11235_v46  ;;  %v9239_v42 = vld [vmem:[%s12495_s6 + $0x22] ss:$0 sm:$0xff] }
0x2f0d   :  { %10646 = vmatprep.subr.bf16.mxu0 %v10645_v41 }
0x2f0e   :  { %10648 = vmatpush3.bf16.msra.mxu0 %v10645_v41 }
0x2f0f   :  { %v11241_v47 = vpop.eup %11240  ;;  %10196 = vmatprep.subr.mxu0 %v7246_v4 }
0x2f10   :  { %v7157_v27 = vmul.f32 %v11241_v47, %v11237_v22 }
0x2f12   :  { %10193 = vmatprep.mubr.msk.f32.mxu0 %vm281_vm7, %v7157_v27 }
0x2f13   :  { %10194 = vmatmul.mubr.msk.f32.vlgmr.msra.gmra.mrb[56].mxu0 %vm281_vm7, %v7158_v39 }
0x2f14   :  { %10197 = vmatpush3.msra.mxu0 %v7246_v4 }
0x2f15   :  { %10658 = vmatprep.subr.bf16.mxu0 %v10657_v3 }
0x2fe6   :  { %v10195_v45 = vpop.f32.mrb[56].mxu0 }
0x2fe7   :  { %v7237_v52 = vpop.f32.mrb[57].mxu0 }
0x2fe8   :  { %10198 = vmatprep.mubr.msk.f32.mxu0 %vm197_vm5, %v7237_v52 }
0x2fe9   :  { %10199 = vmatmul.mubr.msk.f32.vlgmr.msra.gmra.mrb[52].mxu0 %vm197_vm5, %v10195_v45 }
0x2fea   :  { %10660 = vmatpush3.bf16.msra.mxu0 %v10657_v3  ;;  %10220 = vmatprep.mubr.msk.f32.mxu0 %vm43_vm0, %v11982_v43 }
0x2feb   :  { %10662 = vmatprep.subr.bf16.mxu0 %v10661_v53 }
0x2fee   :  { %10664 = vmatpush3.bf16.msra.mxu0 %v10661_v53  ;;  %v9240_v53 = vld [vmem:[%s12495_s6 + $0x27] ss:$0 sm:$0xff] }
0x2ff1   :  { %10221 = vmatmul.mubr.msk.f32.vlgmr.msra.gmra.mrb[58].mxu0 %vm43_vm0, %v11986_v55 }
0x30bc   :  { %v10200_v43 = vpop.f32.mrb[52].mxu0 }
0x30bd   :  { %v7336_v6 = vadd.f32 %v10200_v43, %v9237_v62  ;;  %v7319_v9 = vpop.f32.mrb[53].mxu0 }
0x30be   :  { %v7335_v10 = vadd.f32 %v9237_v62, %v7319_v9 }
0x30bf   :  { %v12292_v55 = vadd.f32 %v7336_v6, %v12151_v0 }
0x30c0   :  { %v12295_v51 = vadd.f32 %v7335_v10, %v12148_v60 }
0x30c1   :  { %v7342_v11 = vsel %vm43_vm0, %v12292_v55, 0.0 }
0x30c2   :  { %7343 = vadd.xlane.f32.xlu1 %v7342_v11  ;;  %v7339_v13 = vsel %vm43_vm0, %v12295_v51, 0.0 }
0x30c3   :  { %7340 = vadd.xlane.f32.xlu0 %v7339_v13  ;;  %v12360_v13 = vld [vmem:[%s12493_s4 + $0x8] sm:$0xff] }
0x30c4   :  { %v10222_v14 = vpop.f32.mrb[58].mxu0 }
0x30c5   :  { %v7564_v18 = vadd.f32 %v10222_v14, %v9243_v12  ;;  %v7558_v19 = vpop.f32.mrb[59].mxu0 }
0x30c6   :  { %v7559_v0 = vadd.f32 %v9243_v12, %v7558_v19  ;;  %v12366_v19 = vld [vmem:[%s12493_s4] sm:$0xff] }
0x30c8   :  { %v10665_v17 = vpack.c.bf16 %v7564_v18, %v7559_v0  ;;  %v12304_v21 = vpack.i.bf16 %v7564_v18, %v7559_v0 }
0x30ca   :  { %10667 = vmatprep.subr.msk.bf16.mxu1 %vm11477_vm6, %v10665_v17 }
0x314f   :  { %v7344_v60 = vpop.xlane.xlu1 %7343 }
0x3150   :  { %v7346_v23 = vmul.f32 0.03125, %v7344_v60  ;;  %v7341_v15 = vpop.xlane.xlu0 %7340 }
0x3151   :  { %v7345_v8 = vmul.f32 0.03125, %v7341_v15 }
0x3152   :  { %v7348_v24 = vsub.f32 %v12292_v55, %v7346_v23 }
0x3153   :  { %v7347_v48 = vsub.f32 %v12295_v51, %v7345_v8 }
0x3154   :  { %v7350_v31 = vmul.f32 %v7348_v24, %v7348_v24  ;;  %v7383_v39 = vmul.f32 %v9238_v40, %v7348_v24 }
0x3155   :  { %v7349_v7 = vmul.f32 %v7347_v48, %v7347_v48  ;;  %v7382_v41 = vmul.f32 %v9238_v40, %v7347_v48 }
0x3156   :  { %v7354_v26 = vsel %vm43_vm0, %v7350_v31, 0.0 }
0x3157   :  { %v7351_v30 = vsel %vm43_vm0, %v7349_v7, 0.0 }
0x3158   :  { %7352 = vadd.xlane.f32.xlu0 %v7351_v30 }
0x315c   :  { %7355 = vadd.xlane.f32.xlu0 %v7354_v26 }
0x3172   :  { %10976 = vrot.lane.b32.xlu0 %v12304_v21, %s11357_s25 }
0x31e5   :  { %v7353_v1 = vpop.xlane.xlu0 %7352 }
0x31e6   :  { %v7357_v20 = vmul.f32 0.032258064, %v7353_v1 }
0x31e8   :  { %11242 = vrsqrt.f32 %v7357_v20  ;;  %vm7361_vm4 = vcmp.eq.f32.partialorder %v7357_v20, inf  ;;  %v7364_v46 = vand.u32 2147483648, %v7357_v20  ;;  %vm7363_vm8 = vcmp.eq.f32.partialorder %v7357_v20, 0.0 }
0x31e9   :  { %v7356_v32 = vpop.xlane.xlu0 %7355 }
0x31ea   :  { %v7358_v33 = vmul.f32 0.032258064, %v7356_v32 }
0x31ec   :  { %11244 = vrsqrt.f32 %v7358_v33  ;;  %vm7368_vm9 = vcmp.eq.f32.partialorder %v7358_v33, inf  ;;  %v7371_v61 = vand.u32 2147483648, %v7358_v33  ;;  %vm7370_vm10 = vcmp.eq.f32.partialorder %v7358_v33, 0.0 }
0x31ed   :  { %v10977_v27 = vpop.permute.xlu0 %10976 }
0x31ee   :  { %v10979_v3 = vunpack.i.h.bf16 %v10977_v27  ;;  %v10978_v49 = vunpack.i.l.bf16 %v10977_v27 }
0x31f0   :  { %v10675_v52 = vpack.c.bf16 %v10979_v3, %v10978_v49 }
0x31f2   :  { %v11243_v34 = vpop.eup %11242 }
0x31f3   :  { %v7360_v25 = vmul.f32 %v11243_v34, %v7357_v20 }
0x31f5   :  { %v7362_v28 = vsel %vm7361_vm4, %v7357_v20, %v7360_v25 }
0x31f6   :  { %v11245_v22 = vpop.eup %11244  ;;  %v7365_v35 = vsel %vm7363_vm8, %v7364_v46, %v7362_v28 }
0x31f7   :  { %v7367_v36 = vmul.f32 %v11245_v22, %v7358_v33  ;;  %v7373_v37 = vadd.f32 1e-06, %v7365_v35 }
0x31f9   :  { %v7369_v44 = vsel %vm7368_vm9, %v7358_v33, %v7367_v36  ;;  %11246 = vrcp.f32 %v7373_v37 }
0x31fa   :  { %v7372_v2 = vsel %vm7370_vm10, %v7371_v61, %v7369_v44 }
0x31fb   :  { %v7374_v38 = vadd.f32 1e-06, %v7372_v2 }
0x31fd   :  { %11248 = vrcp.f32 %v7374_v38 }
0x3203   :  { %v11247_v4 = vpop.eup %11246 }
0x3204   :  { %v7384_v47 = vmul.f32 %v11247_v4, %v7382_v41 }
0x3206   :  { %v7391_v29 = vadd.f32 %v9239_v42, %v7384_v47 }
0x3207   :  { %v11249_v5 = vpop.eup %11248 }
0x3208   :  { %v7385_v50 = vmul.f32 %v11249_v5, %v7383_v39  ;;  %10209 = vmatprep.mubr.msk.f32.mxu1 %vm43_vm0, %v7391_v29 }
0x320a   :  { %v7392_v45 = vadd.f32 %v9239_v42, %v7385_v50 }
0x320c   :  { %10210 = vmatmul.mubr.msk.f32.vlgmr.msra.gmra.mrb[56].mxu1 %vm43_vm0, %v7392_v45 }
0x320d   :  { %10670 = vmatpush3.bf16.xpose.msk.msra.mxu1 %vm11477_vm6, %v10665_v17 }
0x320e   :  { %10677 = vmatprep.subr.msk.bf16.mxu1 %vm11477_vm6, %v10675_v52 }
0x32df   :  { %v10211_v54 = vpop.f32.mrb[56].mxu1 }
0x32e0   :  { %v12329_v63 = vadd.f32 %v10211_v54, %v9240_v53  ;;  %v7474_v16 = vpop.f32.mrb[57].mxu1 }
0x32e1   :  { %v12331_v56 = vadd.f32 %v9240_v53, %v7474_v16 }
0x32e2   :  { %7766 = vrot.lane.b32.xlu0 %v12329_v63, %s11357_s25 }
0x32e3   :  { %7764 = vrot.lane.b32.xlu1 %v12331_v56, %s11357_s25  ;;  %10227 = vmatprep.mubr.msk.f32.mxu1 %vm197_vm5, %v12331_v56 }
0x32e4   :  { %10228 = vmatmul.mubr.msk.f32.vlgmr.msra.gmra.mrb[58].mxu1 %vm197_vm5, %v12329_v63 }
0x32e5   :  { %10680 = vmatpush3.bf16.xpose.msk.msra.mxu1 %vm11477_vm6, %v10675_v52 }
0x32e6   :  { %10981 = vrot.lane.b32.xlu0 %v12304_v21, %s11359_s27 }
0x32e7   :  { %8127 = vrot.lane.b32.xlu1 %v12331_v56, %s11359_s27 }
0x32ea   :  { %8129 = vrot.lane.b32.xlu0 %v12329_v63, %s11359_s27 }
0x3354   :  { %v7767_v57 = vpop.permute.xlu0 %7766 }
0x3355   :  { %v7765_v59 = vpop.permute.xlu1 %7764 }
0x3356   :  { %10241 = vmatprep.mubr.msk.f32.mxu1 %vm197_vm5, %v7765_v59 }
0x3357   :  { %10242 = vmatmul.mubr.msk.f32.vlgmr.msra.gmra.mrb[60].mxu1 %vm197_vm5, %v7767_v57 }
0x3358   :  { %v10982_v62 = vpop.permute.xlu0 %10981 }
0x3359   :  { %v10984_v43 = vunpack.i.h.bf16 %v10982_v62  ;;  %v10983_v6 = vunpack.i.l.bf16 %v10982_v62  ;;  %v8128_v9 = vpop.permute.xlu1 %8127 }
0x335a   :  { %10265 = vmatprep.mubr.msk.f32.mxu1 %vm197_vm5, %v8128_v9 }
0x335b   :  { %v10685_v10 = vpack.c.bf16 %v10984_v43, %v10983_v6 }
0x335c   :  { %v8130_v11 = vpop.permute.xlu0 %8129 }
0x335d   :  { %10687 = vmatprep.subr.msk.bf16.mxu1 %vm11477_vm6, %v10685_v10 }
0x335e   :  { %10690 = vmatpush3.bf16.xpose.msk.msra.mxu1 %vm11477_vm6, %v10685_v10 }
0x3365   :  { %10266 = vmatmul.mubr.msk.f32.vlgmr.msra.gmra.mrb[62].mxu1 %vm197_vm5, %v8130_v11 }
0x33b7   :  { %v10229_v12 = vpop.f32.mrb[58].mxu1 }
0x33b8   :  { %v7651_v14 = vadd.f32 %v12360_v13, %v10229_v12  ;;  %v7645_v18 = vpop.f32.mrb[59].mxu1 }
0x33b9   :  { %v7646_v0 = vadd.f32 %v12366_v19, %v7645_v18 }
0x33ba   :  { %v7657_v17 = vsel %vm281_vm7, %v7651_v14, -inf }
0x33bb   :  { %7658 = vmax.xlane.f32.xlu0 %v7657_v17  ;;  %v7654_v60 = vsel %vm281_vm7, %v7646_v0, -inf }
0x33bc   :  { %7655 = vmax.xlane.f32.xlu1 %v7654_v60 }
0x342a   :  { %v10243_v23 = vpop.f32.mrb[60].mxu1 }
0x342b   :  { %v7852_v15 = vadd.f32 %v12360_v13, %v10243_v23  ;;  %v7846_v8 = vpop.f32.mrb[61].mxu1 }
0x342c   :  { %v7847_v24 = vadd.f32 %v12366_v19, %v7846_v8 }
0x342d   :  { %v7858_v48 = vsel %vm281_vm7, %v7852_v15, -inf }
0x342e   :  { %7859 = vmax.xlane.f32.xlu1 %v7858_v48  ;;  %v7855_v7 = vsel %vm281_vm7, %v7847_v24, -inf }
0x342f   :  { %7856 = vmax.xlane.f32.xlu0 %v7855_v7 }
0x3438   :  { %v10267_v30 = vpop.f32.mrb[62].mxu1 }
0x3439   :  { %v8209_v31 = vpop.f32.mrb[63].mxu1  ;;  %v8215_v29 = vadd.f32 %v12360_v13, %v10267_v30 }
0x343a   :  { %v8210_v39 = vadd.f32 %v12366_v19, %v8209_v31 }
0x343b   :  { %v8221_v3 = vsel %vm281_vm7, %v8215_v29, -inf }
0x343c   :  { %v8218_v5 = vsel %vm281_vm7, %v8210_v39, -inf }
0x3448   :  { %v7659_v26 = vpop.xlane.xlu0 %7658 }
0x3449   :  { %v7661_v1 = vsub.f32 %v7651_v14, %v7659_v26  ;;  %v7656_v20 = vpop.xlane.xlu1 %7655  ;;  %v7964_v26 = vld [vmem:[#allocation2 + $0x2c8] sm:$0xff] }
0x344a   :  { %v7660_v32 = vsub.f32 %v7646_v0, %v7656_v20 }
0x344b   :  { %v7664_v33 = vmul.f32 1.442695, %v7661_v1  ;;  %v7763_v1 = vld [vmem:[#allocation2 + $0x2c0] sm:$0xff] }
0x344c   :  { %v7662_v34 = vmul.f32 1.442695, %v7660_v32 }
0x344d   :  { %11250 = vpow2.f32 %v7664_v33 }
0x344e   :  { %11252 = vpow2.f32 %v7662_v34 }
0x3457   :  { %v11251_v25 = vpop.eup %11250 }
0x3458   :  { %v11253_v46 = vpop.eup %11252  ;;  %v7669_v28 = vsel %vm281_vm7, %v11251_v25, 0.0 }
0x3459   :  { %7670 = vadd.xlane.f32.xlu1 %v7669_v28  ;;  %v7666_v22 = vsel %vm281_vm7, %v11253_v46, 0.0 }
0x345a   :  { %7667 = vadd.xlane.f32.xlu0 %v7666_v22 }
0x34bb   :  { %v7860_v35 = vpop.xlane.xlu1 %7859 }
0x34bc   :  { %v7862_v36 = vsub.f32 %v7852_v15, %v7860_v35  ;;  %v7857_v37 = vpop.xlane.xlu0 %7856 }
0x34bd   :  { %v7861_v61 = vsub.f32 %v7847_v24, %v7857_v37 }
0x34be   :  { %v7865_v44 = vmul.f32 1.442695, %v7862_v36 }
0x34bf   :  { %v7863_v2 = vmul.f32 1.442695, %v7861_v61 }
0x34c0   :  { %11254 = vpow2.f32 %v7865_v44 }
0x34c1   :  { %11256 = vpow2.f32 %v7863_v2 }
0x34ca   :  { %v11255_v38 = vpop.eup %11254 }
0x34cb   :  { %v11257_v40 = vpop.eup %11256  ;;  %v7870_v41 = vsel %vm281_vm7, %v11255_v38, 0.0 }
0x34cc   :  { %7871 = vadd.xlane.f32.xlu1 %v7870_v41  ;;  %v7867_v4 = vsel %vm281_vm7, %v11257_v40, 0.0 }
0x34cd   :  { %7868 = vadd.xlane.f32.xlu0 %v7867_v4 }
0x34dd   :  { %10991 = vrot.lane.b32.xlu1 %v12304_v21, %s11355_s23 }
0x34e1   :  { %10996 = vrot.lane.b32.xlu1 %v12304_v21, %s11362_s13 }
0x34e3   :  { %10986 = vrot.lane.b32.xlu0 %v12304_v21, %s11356_s24 }
0x34e5   :  { %8413 = vrot.lane.b32.xlu1 %v12329_v63, %s11362_s13 }
0x34e6   :  { %v7671_v49 = vpop.xlane.xlu1 %7670 }
0x34e7   :  { %8411 = vrot.lane.b32.xlu0 %v12331_v56, %s11362_s13  ;;  %v7668_v42 = vpop.xlane.xlu0 %7667 }
0x34e8   :  { %11258 = vrcp.f32 %v7668_v42  ;;  %v8327_v42 = vld [vmem:[#allocation2 + $0x2d0] sm:$0xff] }
0x34e9   :  { %11260 = vrcp.f32 %v7671_v49 }
0x34f2   :  { %v11259_v47 = vpop.eup %11258 }
0x34f3   :  { %v7674_v27 = vmul.f32 %v11259_v47, %v11253_v46  ;;  %v11261_v62 = vpop.eup %11260 }
0x34f4   :  { %v7675_v12 = vmul.f32 %v11261_v62, %v11251_v25 }
0x34f5   :  { %10234 = vmatprep.mubr.msk.f32.mxu0 %vm281_vm7, %v7674_v27 }
0x3506   :  { %8219 = vmax.xlane.f32.xlu0 %v8218_v5 }
0x3509   :  { %8222 = vmax.xlane.f32.xlu1 %v8221_v3 }
0x351a   :  { %11001 = vrot.lane.b32.xlu1 %v12304_v21, %s11358_s26 }
0x351e   :  { %11006 = vrot.lane.b32.xlu1 %v12304_v21, %s11361_s10 }
0x3559   :  { %v7872_v50 = vpop.xlane.xlu1 %7871 }
0x355a   :  { %v7869_v45 = vpop.xlane.xlu0 %7868 }
0x355b   :  { %11262 = vrcp.f32 %v7869_v45 }
0x355c   :  { %11264 = vrcp.f32 %v7872_v50 }
0x355d   :  { %v10992_v52 = vpop.permute.xlu1 %10991 }
0x355e   :  { %v10987_v53 = vpop.permute.xlu0 %10986  ;;  %v10994_v54 = vunpack.i.h.bf16 %v10992_v52  ;;  %v10993_v63 = vunpack.i.l.bf16 %v10992_v52 }
0x355f   :  { %v10989_v16 = vunpack.i.h.bf16 %v10987_v53  ;;  %v10988_v56 = vunpack.i.l.bf16 %v10987_v53 }
0x3560   :  { %v10681_v10 = vpack.c.bf16 %v10994_v54, %v10993_v63 }
0x3561   :  { %v10671_v57 = vpack.c.bf16 %v10989_v16, %v10988_v56  ;;  %v10997_v59 = vpop.permute.xlu1 %10996 }
0x3562   :  { %v10999_v43 = vunpack.i.h.bf16 %v10997_v59  ;;  %v10998_v6 = vunpack.i.l.bf16 %v10997_v59  ;;  %v8412_v9 = vpop.permute.xlu0 %8411  ;;  %v8611_v59 = vld [vmem:[#allocation2 + $0x2d8] sm:$0xff] }
0x3563   :  { %10672 = vmatprep.subr.bf16.mxu0 %v10671_v57  ;;  %10284 = vmatprep.mubr.msk.f32.mxu1 %vm197_vm5, %v8412_v9 }
0x3564   :  { %v10695_v21 = vpack.c.bf16 %v10999_v43, %v10998_v6  ;;  %10674 = vmatpush3.bf16.msra.mxu0 %v10671_v57 }
0x3565   :  { %v11263_v11 = vpop.eup %11262  ;;  %10682 = vmatprep.subr.bf16.mxu0 %v10681_v10  ;;  %v8414_v17 = vpop.permute.xlu1 %8413 }
0x3566   :  { %v11265_v14 = vpop.eup %11264  ;;  %10697 = vmatprep.subr.msk.bf16.mxu1 %vm11477_vm6, %v10695_v21  ;;  %v7875_v18 = vmul.f32 %v11263_v11, %v11257_v40 }
0x3567   :  { %10235 = vmatmul.mubr.msk.f32.vlgmr.msra.gmra.mrb[60].mxu0 %vm281_vm7, %v7675_v12  ;;  %10700 = vmatpush3.bf16.xpose.msk.msra.mxu1 %vm11477_vm6, %v10695_v21  ;;  %v7876_v0 = vmul.f32 %v11265_v14, %v11255_v38  ;;  %v9278_v14 = vld [vmem:[%s12495_s6 + $0x29] ss:$0 sm:$0xff] }
0x3568   :  { %10684 = vmatpush3.bf16.msra.mxu0 %v10681_v10  ;;  %10248 = vmatprep.mubr.msk.f32.mxu0 %vm281_vm7, %v7875_v18 }
0x3569   :  { %10251 = vmatprep.subr.mxu0 %v7964_v26 }
0x356b   :  { %10249 = vmatmul.mubr.msk.f32.vlgmr.msra.gmra.mrb[62].mxu0 %vm281_vm7, %v7876_v0 }
0x356c   :  { %10252 = vmatpush3.msra.mxu0 %v7964_v26 }
0x356d   :  { %10256 = vmatprep.subr.mxu0 %v7763_v1 }
0x356e   :  { %10285 = vmatmul.mubr.msk.f32.vlgmr.msra.gmra.mrb[64].mxu1 %vm197_vm5, %v8414_v17 }
0x3593   :  { %v8220_v60 = vpop.xlane.xlu0 %8219 }
0x3594   :  { %v8224_v23 = vsub.f32 %v8210_v39, %v8220_v60 }
0x3596   :  { %v8226_v15 = vmul.f32 1.442695, %v8224_v23  ;;  %v8223_v8 = vpop.xlane.xlu1 %8222 }
0x3597   :  { %v8225_v24 = vsub.f32 %v8215_v29, %v8223_v8 }
0x3598   :  { %11266 = vpow2.f32 %v8226_v15 }
0x3599   :  { %v8228_v48 = vmul.f32 1.442695, %v8225_v24 }
0x359a   :  { %v11002_v32 = vpop.permute.xlu1 %11001 }
0x359b   :  { %11268 = vpow2.f32 %v8228_v48  ;;  %v11004_v46 = vunpack.i.h.bf16 %v11002_v32  ;;  %v11003_v28 = vunpack.i.l.bf16 %v11002_v32  ;;  %v8758_v32 = vld [vmem:[#allocation2 + $0x2e0] sm:$0xff] }
0x359d   :  { %v10691_v36 = vpack.c.bf16 %v11004_v46, %v11003_v28  ;;  %v8761_v46 = vld [vmem:[#allocation2 + $0x2f8] sm:$0xff] }
0x359e   :  { %v11007_v41 = vpop.permute.xlu1 %11006 }
0x359f   :  { %v11009_v47 = vunpack.i.h.bf16 %v11007_v41  ;;  %v11008_v27 = vunpack.i.l.bf16 %v11007_v41 }
0x35a2   :  { %v11267_v7 = vpop.eup %11266 }
0x35a3   :  { %v8230_v58 = vsel %vm281_vm7, %v11267_v7, 0.0 }
0x35a4   :  { %8231 = vadd.xlane.f32.xlu0 %v8230_v58 }
0x35a5   :  { %v11269_v30 = vpop.eup %11268 }
0x35a6   :  { %v8233_v31 = vsel %vm281_vm7, %v11269_v30, 0.0 }
0x35a8   :  { %8234 = vadd.xlane.f32.xlu0 %v8233_v31 }
0x3631   :  { %v8232_v20 = vpop.xlane.xlu0 %8231 }
0x3632   :  { %11270 = vrcp.f32 %v8232_v20 }
0x3635   :  { %v8235_v34 = vpop.xlane.xlu0 %8234 }
0x3636   :  { %11272 = vrcp.f32 %v8235_v34  ;;  %v8760_v34 = vld [vmem:[#allocation2 + $0x2f0] sm:$0xff] }
0x3637   :  { %v10709_v28 = vpack.c.bf16 %v8761_v46, %v8760_v34 }
0x363a   :  { %v10236_v33 = vpop.f32.mrb[60].mxu0 }
0x363b   :  { %v7754_v25 = vpop.f32.mrb[61].mxu0 }
0x363c   :  { %v11271_v40 = vpop.eup %11270 }
0x363d   :  { %v8238_v29 = vmul.f32 %v11271_v40, %v11267_v7 }
0x363e   :  { %v10250_v22 = vpop.f32.mrb[62].mxu0 }
0x363f   :  { %v7955_v35 = vpop.f32.mrb[63].mxu0 }
0x3640   :  { %10253 = vmatprep.mubr.msk.f32.mxu0 %vm197_vm5, %v7955_v35  ;;  %v11273_v4 = vpop.eup %11272  ;;  %v8851_v35 = vld [vmem:[#allocation2 + $0x308] sm:$0xff] }
0x3641   :  { %10254 = vmatmul.mubr.msk.f32.vlgmr.msra.gmra.mrb[64].mxu0 %vm197_vm5, %v10250_v22  ;;  %v10286_v37 = vpop.f32.mrb[64].mxu1  ;;  %v8239_v5 = vmul.f32 %v11273_v4, %v11269_v30  ;;  %v8850_v22 = vld [vmem:[#allocation2 + $0x300] sm:$0xff] }
0x3642   :  { %10257 = vmatpush3.msra.mxu0 %v7763_v1  ;;  %10258 = vmatprep.mubr.msk.f32.mxu0 %vm197_vm5, %v7754_v25  ;;  %v8493_v61 = vpop.f32.mrb[65].mxu1  ;;  %v8499_v2 = vadd.f32 %v12360_v13, %v10286_v37  ;;  %v10701_v13 = vpack.c.bf16 %v11009_v47, %v11008_v27  ;;  %v10713_v37 = vpack.c.bf16 %v8851_v35, %v8850_v22 }
0x3643   :  { %10692 = vmatprep.subr.bf16.mxu0 %v10691_v36  ;;  %v8494_v44 = vadd.f32 %v12366_v19, %v8493_v61  ;;  %v8853_v61 = vld [vmem:[#allocation2 + $0x318] sm:$0xff] }
0x3644   :  { %v8505_v39 = vsel %vm281_vm7, %v8499_v2, -inf }
0x3645   :  { %v8502_v38 = vsel %vm281_vm7, %v8494_v44, -inf }
0x3646   :  { %8503 = vmax.xlane.f32.xlu0 %v8502_v38  ;;  %v8855_v38 = vld [vmem:[#allocation2 + $0x328] sm:$0xff] }
0x3649   :  { %10259 = vmatmul.mubr.msk.f32.vlgmr.msra.gmra.mrb[64].mxu0 %vm197_vm5, %v10236_v33  ;;  %v8759_v33 = vld [vmem:[#allocation2 + $0x2e8] sm:$0xff] }
0x364a   :  { %10694 = vmatpush3.bf16.msra.mxu0 %v10691_v36  ;;  %8506 = vmax.xlane.f32.xlu0 %v8505_v39  ;;  %v10705_v25 = vpack.c.bf16 %v8759_v33, %v8758_v32  ;;  %v8852_v36 = vld [vmem:[#allocation2 + $0x310] sm:$0xff] }
0x364b   :  { %10272 = vmatprep.mubr.msk.f32.mxu0 %vm281_vm7, %v8238_v29  ;;  %10275 = vmatprep.subr.mxu0 %v8327_v42 }
0x364c   :  { %10706 = vmatprep.subr.bf16.mxu1 %v10705_v25 }
0x364d   :  { %10273 = vmatmul.mubr.msk.f32.vlgmr.msra.gmra.mrb[66].mxu0 %vm281_vm7, %v8239_v5  ;;  %10708 = vmatpush3.bf16.msra.mxu1 %v10705_v25 }
0x364e   :  { %10276 = vmatpush3.msra.mxu0 %v8327_v42  ;;  %10710 = vmatprep.subr.bf16.mxu1 %v10709_v28 }
0x364f   :  { %10702 = vmatprep.subr.bf16.mxu0 %v10701_v13 }
0x3651   :  { %10712 = vmatpush3.bf16.msra.mxu1 %v10709_v28 }
0x36d3   :  { %v8504_v19 = vpop.xlane.xlu0 %8503 }
0x36d4   :  { %v8508_v3 = vsub.f32 %v8494_v44, %v8504_v19  ;;  %v10717_v44 = vpack.c.bf16 %v8853_v61, %v8852_v36 }
0x36d6   :  { %v8510_v49 = vmul.f32 1.442695, %v8508_v3 }
0x36d7   :  { %v8507_v50 = vpop.xlane.xlu0 %8506 }
0x36d8   :  { %11274 = vpow2.f32 %v8510_v49  ;;  %v8509_v45 = vsub.f32 %v8499_v2, %v8507_v50  ;;  %v8854_v2 = vld [vmem:[#allocation2 + $0x320] sm:$0xff] }
0x36d9   :  { %v10721_v40 = vpack.c.bf16 %v8855_v38, %v8854_v2 }
0x36da   :  { %v8512_v52 = vmul.f32 1.442695, %v8509_v45 }
0x36dc   :  { %11276 = vpow2.f32 %v8512_v52 }
0x36e2   :  { %v11275_v53 = vpop.eup %11274 }
0x36e3   :  { %v8514_v54 = vsel %vm281_vm7, %v11275_v53, 0.0 }
0x36e4   :  { %8515 = vadd.xlane.f32.xlu0 %v8514_v54  ;;  %v9279_v54 = vld [vmem:[%s12495_s6 + $0x23] ss:$0 sm:$0xff] }
0x36e6   :  { %v11277_v63 = vpop.eup %11276 }
0x36e7   :  { %v8517_v16 = vsel %vm281_vm7, %v11277_v63, 0.0 }
0x36e8   :  { %8518 = vadd.xlane.f32.xlu0 %v8517_v16 }
0x3720   :  { %v10274_v56 = vpop.f32.mrb[66].mxu0 }
0x3721   :  { %v8318_v57 = vpop.f32.mrb[67].mxu0 }
0x3722   :  { %10277 = vmatprep.mubr.msk.f32.mxu0 %vm197_vm5, %v8318_v57 }
0x3723   :  { %10278 = vmatmul.mubr.msk.f32.vlgmr.msra.gmra.mrb[64].mxu0 %vm197_vm5, %v10274_v56  ;;  %v9280_v56 = vld [vmem:[%s12495_s6 + $0x24] ss:$0 sm:$0xff] }
0x3724   :  { %10704 = vmatpush3.bf16.msra.mxu0 %v10701_v13 }
0x3725   :  { %10294 = vmatprep.subr.mxu0 %v8611_v59 }
0x3771   :  { %v8516_v62 = vpop.xlane.xlu0 %8515 }
0x3772   :  { %11278 = vrcp.f32 %v8516_v62 }
0x3775   :  { %v8519_v43 = vpop.xlane.xlu0 %8518 }
0x3776   :  { %11280 = vrcp.f32 %v8519_v43 }
0x377c   :  { %v11279_v6 = vpop.eup %11278 }
0x377d   :  { %v8522_v9 = vmul.f32 %v11279_v6, %v11275_v53 }
0x377f   :  { %10291 = vmatprep.mubr.msk.f32.mxu0 %vm281_vm7, %v8522_v9 }
0x3780   :  { %v11281_v10 = vpop.eup %11280 }
0x3781   :  { %v8523_v21 = vmul.f32 %v11281_v10, %v11277_v63  ;;  %v8856_v10 = vld [vmem:[#allocation2 + $0x330] sm:$0xff] }
0x3783   :  { %10292 = vmatmul.mubr.msk.f32.vlgmr.msra.gmra.mrb[68].mxu0 %vm281_vm7, %v8523_v21  ;;  %v8857_v21 = vld [vmem:[#allocation2 + $0x338] sm:$0xff] }
0x3784   :  { %10295 = vmatpush3.msra.mxu0 %v8611_v59 }
0x3785   :  { %10714 = vmatprep.subr.bf16.mxu0 %v10713_v37 }
0x3856   :  { %v10293_v11 = vpop.f32.mrb[68].mxu0 }
0x3857   :  { %v8602_v12 = vpop.f32.mrb[69].mxu0 }
0x3858   :  { %10296 = vmatprep.mubr.msk.f32.mxu0 %vm197_vm5, %v8602_v12  ;;  %v9281_v12 = vld [vmem:[%s12495_s6 + $0x2a] ss:$0 sm:$0xff] }
0x3859   :  { %10297 = vmatmul.mubr.msk.f32.vlgmr.msra.gmra.mrb[64].mxu0 %vm197_vm5, %v10293_v11  ;;  %v10725_v11 = vpack.c.bf16 %v8857_v21, %v8856_v10 }
0x385a   :  { %10716 = vmatpush3.bf16.msra.mxu0 %v10713_v37 }
0x385b   :  { %10718 = vmatprep.subr.bf16.mxu0 %v10717_v44 }
0x385e   :  { %10720 = vmatpush3.bf16.msra.mxu0 %v10717_v44 }
0x385f   :  { %10722 = vmatprep.subr.bf16.mxu0 %v10721_v40 }
0x3862   :  { %10724 = vmatpush3.bf16.msra.mxu0 %v10721_v40 }
0x3863   :  { %10726 = vmatprep.subr.bf16.mxu0 %v10725_v11 }
0x3866   :  { %10728 = vmatpush3.bf16.msra.mxu0 %v10725_v11 }
0x392c   :  { %v10298_v18 = vpop.f32.mrb[64].mxu0 }
0x392d   :  { %v8701_v0 = vadd.f32 %v10298_v18, %v9278_v14  ;;  %v8684_v17 = vpop.f32.mrb[65].mxu0 }
0x392e   :  { %v8700_v60 = vadd.f32 %v9278_v14, %v8684_v17 }
0x392f   :  { %v12431_v23 = vadd.f32 %v8701_v0, %v12292_v55 }
0x3930   :  { %v12434_v15 = vadd.f32 %v8700_v60, %v12295_v51 }
0x3931   :  { %v8707_v8 = vsel %vm43_vm0, %v12431_v23, 0.0 }
0x3932   :  { %8708 = vadd.xlane.f32.xlu1 %v8707_v8  ;;  %v8704_v24 = vsel %vm43_vm0, %v12434_v15, 0.0 }
0x3933   :  { %8705 = vadd.xlane.f32.xlu0 %v8704_v24  ;;  %v9284_v24 = vld [vmem:[%s12495_s6 + $0x2b] ss:$0 sm:$0xff] }
0x39bf   :  { %v8709_v48 = vpop.xlane.xlu1 %8708 }
0x39c0   :  { %v8711_v7 = vmul.f32 0.03125, %v8709_v48  ;;  %v8706_v58 = vpop.xlane.xlu0 %8705 }
0x39c1   :  { %v8710_v30 = vmul.f32 0.03125, %v8706_v58 }
0x39c2   :  { %v8713_v31 = vsub.f32 %v12431_v23, %v8711_v7 }
0x39c3   :  { %v8712_v55 = vsub.f32 %v12434_v15, %v8710_v30 }
0x39c4   :  { %v8715_v1 = vmul.f32 %v8713_v31, %v8713_v31  ;;  %v8748_v59 = vmul.f32 %v9279_v54, %v8713_v31 }
0x39c5   :  { %v8714_v26 = vmul.f32 %v8712_v55, %v8712_v55  ;;  %v8747_v63 = vmul.f32 %v9279_v54, %v8712_v55 }
0x39c6   :  { %v8719_v20 = vsel %vm43_vm0, %v8715_v1, 0.0 }
0x39c7   :  { %v8716_v51 = vsel %vm43_vm0, %v8714_v26, 0.0 }
0x39c8   :  { %8717 = vadd.xlane.f32.xlu0 %v8716_v51 }
0x39cc   :  { %8720 = vadd.xlane.f32.xlu0 %v8719_v20 }
0x3a55   :  { %v8718_v41 = vpop.xlane.xlu0 %8717 }
0x3a56   :  { %v8722_v4 = vmul.f32 0.032258064, %v8718_v41 }
0x3a58   :  { %11282 = vrsqrt.f32 %v8722_v4  ;;  %vm8726_vm5 = vcmp.eq.f32.partialorder %v8722_v4, inf  ;;  %v8729_v29 = vand.u32 2147483648, %v8722_v4  ;;  %vm8728_vm6 = vcmp.eq.f32.partialorder %v8722_v4, 0.0 }
0x3a59   :  { %v8721_v42 = vpop.xlane.xlu0 %8720 }
0x3a5a   :  { %v8723_v47 = vmul.f32 0.032258064, %v8721_v42 }
0x3a5c   :  { %11284 = vrsqrt.f32 %v8723_v47  ;;  %vm8733_vm7 = vcmp.eq.f32.partialorder %v8723_v47, inf  ;;  %v8736_v50 = vand.u32 2147483648, %v8723_v47  ;;  %vm8735_vm11 = vcmp.eq.f32.partialorder %v8723_v47, 0.0 }
0x3a62   :  { %v11283_v27 = vpop.eup %11282 }
0x3a63   :  { %v8725_v39 = vmul.f32 %v11283_v27, %v8722_v4 }
0x3a65   :  { %v8727_v5 = vsel %vm8726_vm5, %v8722_v4, %v8725_v39 }
0x3a66   :  { %v11285_v13 = vpop.eup %11284  ;;  %v8730_v19 = vsel %vm8728_vm6, %v8729_v29, %v8727_v5  ;;  %v9287_v5 = vld [vmem:[%s12495_s6 + $0x2c] ss:$0 sm:$0xff] }
0x3a67   :  { %v8732_v3 = vmul.f32 %v11285_v13, %v8723_v47  ;;  %v8738_v49 = vadd.f32 1e-06, %v8730_v19 }
0x3a69   :  { %v8734_v45 = vsel %vm8733_vm7, %v8723_v47, %v8732_v3  ;;  %11286 = vrcp.f32 %v8738_v49  ;;  %v9288_v3 = vld [vmem:[%s12495_s6 + $0x2d] ss:$0 sm:$0xff] }
0x3a6a   :  { %v8737_v52 = vsel %vm8735_vm11, %v8736_v50, %v8734_v45 }
0x3a6b   :  { %v8739_v53 = vadd.f32 1e-06, %v8737_v52 }
0x3a6d   :  { %11288 = vrcp.f32 %v8739_v53 }
0x3a73   :  { %v11287_v16 = vpop.eup %11286 }
0x3a74   :  { %v8749_v57 = vmul.f32 %v11287_v16, %v8747_v63 }
0x3a76   :  { %v8756_v62 = vadd.f32 %v9280_v56, %v8749_v57 }
0x3a77   :  { %v11289_v43 = vpop.eup %11288 }
0x3a78   :  { %v8750_v6 = vmul.f32 %v11289_v43, %v8748_v59  ;;  %10307 = vmatprep.mubr.msk.f32.mxu1 %vm43_vm0, %v8756_v62 }
0x3a7a   :  { %v8757_v9 = vadd.f32 %v9280_v56, %v8750_v6 }
0x3a7c   :  { %10308 = vmatmul.mubr.msk.f32.vlgmr.msra.gmra.mrb[66].mxu1 %vm43_vm0, %v8757_v9 }
0x3b4f   :  { %v10309_v14 = vpop.f32.mrb[66].mxu1 }
0x3b50   :  { %v8845_v18 = vadd.f32 %v10309_v14, %v9281_v12  ;;  %v8839_v0 = vpop.f32.mrb[67].mxu1 }
0x3b51   :  { %v8840_v17 = vadd.f32 %v9281_v12, %v8839_v0 }
0x3b52   :  { %v8849_v8 = vmax.f32 %v8845_v18, 0.0 }
0x3b53   :  { %v8848_v60 = vmax.f32 %v8840_v17, 0.0 }
0x3b55   :  { %10326 = vmatprep.mubr.msk.f32.mxu0 %vm1491_vm12, %v8848_v60 }
0x3b56   :  { %10327 = vmatmul.mubr.msk.f32.vlgmr.msra.gmra.mrb[70].mxu0 %vm1491_vm12, %v8849_v8 }
0x3c29   :  { %v10328_v48 = vpop.f32.mrb[70].mxu0 }
0x3c2a   :  { %v8935_v7 = vpop.f32.mrb[71].mxu0  ;;  %v8941_v58 = vadd.f32 %v10328_v48, %v9284_v24 }
0x3c2b   :  { %v8936_v30 = vadd.f32 %v9284_v24, %v8935_v7 }
0x3c2c   :  { %v8945_v55 = vadd.f32 %v8941_v58, %v12431_v23 }
0x3c2d   :  { %v8944_v31 = vadd.f32 %v8936_v30, %v12434_v15 }
0x3c2e   :  { %v8949_v51 = vsel %vm43_vm0, %v8945_v55, 0.0 }
0x3c2f   :  { %v8946_v26 = vsel %vm43_vm0, %v8944_v31, 0.0 }
0x3c30   :  { %8947 = vadd.xlane.f32.xlu0 %v8946_v26 }
0x3c34   :  { %8950 = vadd.xlane.f32.xlu0 %v8949_v51 }
0x3cbd   :  { %v8948_v1 = vpop.xlane.xlu0 %8947 }
0x3cbe   :  { %v8952_v20 = vmul.f32 0.03125, %v8948_v1 }
0x3cc0   :  { %v8954_v32 = vsub.f32 %v8944_v31, %v8952_v20 }
0x3cc1   :  { %v8951_v33 = vpop.xlane.xlu0 %8950 }
0x3cc2   :  { %v8953_v34 = vmul.f32 0.03125, %v8951_v33  ;;  %v8956_v25 = vmul.f32 %v8954_v32, %v8954_v32  ;;  %v8989_v13 = vmul.f32 %v9287_v5, %v8954_v32 }
0x3cc4   :  { %v8955_v46 = vsub.f32 %v8945_v55, %v8953_v34  ;;  %v8958_v28 = vsel %vm43_vm0, %v8956_v25, 0.0 }
0x3cc5   :  { %8959 = vadd.xlane.f32.xlu0 %v8958_v28 }
0x3cc6   :  { %v8957_v22 = vmul.f32 %v8955_v46, %v8955_v46  ;;  %v8990_v50 = vmul.f32 %v9287_v5, %v8955_v46 }
0x3cc8   :  { %v8961_v15 = vsel %vm43_vm0, %v8957_v22, 0.0 }
0x3cc9   :  { %8962 = vadd.xlane.f32.xlu0 %v8961_v15 }
0x3d52   :  { %v8960_v23 = vpop.xlane.xlu0 %8959 }
0x3d53   :  { %v8964_v35 = vmul.f32 0.032258064, %v8960_v23 }
0x3d55   :  { %11290 = vrsqrt.f32 %v8964_v35  ;;  %vm8968_vm12 = vcmp.eq.f32.partialorder %v8964_v35, inf  ;;  %v8971_v2 = vand.u32 2147483648, %v8964_v35  ;;  %vm8970_vm13 = vcmp.eq.f32.partialorder %v8964_v35, 0.0 }
0x3d56   :  { %v8963_v36 = vpop.xlane.xlu0 %8962 }
0x3d57   :  { %v8965_v37 = vmul.f32 0.032258064, %v8963_v36 }
0x3d59   :  { %11292 = vrsqrt.f32 %v8965_v37  ;;  %vm8975_vm14 = vcmp.eq.f32.partialorder %v8965_v37, inf  ;;  %v8978_v47 = vand.u32 2147483648, %v8965_v37  ;;  %vm8977_vm15 = vcmp.eq.f32.partialorder %v8965_v37, 0.0 }
0x3d5f   :  { %v11291_v61 = vpop.eup %11290 }
0x3d60   :  { %v8967_v44 = vmul.f32 %v11291_v61, %v8964_v35 }
0x3d62   :  { %v8969_v38 = vsel %vm8968_vm12, %v8964_v35, %v8967_v44 }
0x3d63   :  { %v11293_v40 = vpop.eup %11292  ;;  %v8972_v41 = vsel %vm8970_vm13, %v8971_v2, %v8969_v38 }
0x3d64   :  { %v8980_v4 = vadd.f32 1e-06, %v8972_v41  ;;  %v8974_v42 = vmul.f32 %v11293_v40, %v8965_v37 }
0x3d66   :  { %v8976_v27 = vsel %vm8975_vm14, %v8965_v37, %v8974_v42  ;;  %11294 = vrcp.f32 %v8980_v4 }
0x3d67   :  { %v8979_v39 = vsel %vm8977_vm15, %v8978_v47, %v8976_v27 }
0x3d68   :  { %v8981_v29 = vadd.f32 1e-06, %v8979_v39 }
0x3d6a   :  { %11296 = vrcp.f32 %v8981_v29 }
0x3d70   :  { %v11295_v19 = vpop.eup %11294 }
0x3d71   :  { %v8991_v49 = vmul.f32 %v11295_v19, %v8989_v13 }
0x3d73   :  { %v8998_v45 = vadd.f32 %v9288_v3, %v8991_v49 }
0x3d74   :  { %v11297_v52 = vpop.eup %11296 }
0x3d75   :  { %v8992_v53 = vmul.f32 %v11297_v52, %v8990_v50  ;;  %9000 = vst.msk [vmem:[#allocation5] sm:$0xff] %vm43_vm0, %v8998_v45 }
0x3d77   :  { %v8999_v54 = vadd.f32 %v9288_v3, %v8992_v53 }
0x3d79   :  { %9001 = vst.msk [vmem:[#allocation5 + $0x8] sm:$0xff] %vm43_vm0, %v8999_v54 }
0x3d7a   :  { %11337 = shalt.err (!%p11334_p12)
}
0x3d7b   :  { %s11338_s1 = scalar_lea.hbm %s12496_s7, 256 }
0x3d7c   :  { %p11339_p13 = scmp.ne.s32.totalorder %s12496_s7, %s11338_s1  ;;  %p11342_p0 = scmp.lt.u32.totalorder %s11338_s1, %s12496_s7 }
0x3d7e   :  { %p11344_p1 = pnand %p11342_p0, %p11339_p13 }
0x3d80   :  { %11347 = shalt.err (!%p11344_p1)
}
0x3d81   :  { %9013 = dma.vmem_to_hbm [thread:$0]  %s9008_s14, 256, %s12496_s7, [#allocation4], %s11353_s11, %s11353_s11, %s11354_s12  }
0x3d82   :  { %11350 = dma.done.wait [#allocation4], 256  }
0x3d83   :  { %11351 = vsyncadd [#allocation4], 4294967040 }
0x3d84   :  { %9017 = vsyncpa [#allocation3], 1 }
0x3d85   :  { %9018 = vsyncpa [#allocation4], 1 }

</bundles_post_ra>
